<compile_context>
chip_gen: v5e
topology: v5e:2x2
jax: 0.10.0
libtpu: 0.0.40
codegen_flags: <defaults>
</compile_context>

<pallas_src>
import jax
import jax.numpy as jnp
from jax.experimental import pallas as pl
from jax.experimental.pallas import tpu as pltpu

# Small, TPU-friendly sizes.
B, S, D, H, F, L = 2, 16, 128, 4, 256, 2   # batch, seq, embed, heads, ffn-dim, layers
DH = D // H
BS = B * S
VW = 3 * D            # packed small-vector row width (widest vector = 3D)
EPS = 1e-5


def _fused_kernel(x_ref, wqkv_ref, wo_ref, w1_ref, w2_ref, vec_ref, out_ref):
    """All L post-norm BaseTransformerLayers fused; activations never leave VMEM."""
    x = x_ref[...].reshape(BS, D)                       # (B*S, D) f32 tokens
    scale = 1.0 / (DH ** 0.5)

    for l in range(L):                                  # static unroll over layers
        vec = vec_ref[l]                                # (8, 3D) packed small params
        bqkv = vec[0:1, :]                              # (1, 3D)
        bo, g1, be1 = vec[1:2, :D], vec[2:3, :D], vec[3:4, :D]
        b1 = vec[4:5, :F]
        b2, g2, be2 = vec[5:6, :D], vec[6:7, :D], vec[7:8, :D]

        # ---- QKV projection over all B*S tokens (bf16 in, f32 accumulate) ----
        qkv = jnp.dot(x.astype(jnp.bfloat16), wqkv_ref[l],
                      preferred_element_type=jnp.float32) + bqkv        # (BS, 3D)
        q = (qkv[:, :D] * scale).reshape(B, S, D)       # scale folded into q
        k = qkv[:, D:2 * D].reshape(B, S, D)
        v = qkv[:, 2 * D:].reshape(B, S, D)

        # ---- self-attention: batched-over-B einsum per head; out-projection
        #      accumulated per head (no lane-axis concatenate) ----
        wo = wo_ref[l]                                  # (D, D) bf16
        attn = jnp.zeros((BS, D), jnp.float32)
        for h in range(H):                              # static unroll over heads
            sl = slice(h * DH, (h + 1) * DH)
            qh = q[:, :, sl].astype(jnp.bfloat16)       # (B, S, DH)
            kh = k[:, :, sl].astype(jnp.bfloat16)
            vh = v[:, :, sl].astype(jnp.bfloat16)
            s = jnp.einsum('bqd,bkd->bqk', qh, kh,
                           preferred_element_type=jnp.float32)          # (B, S, S)
            s = s - jnp.max(s, axis=-1, keepdims=True)
            p = jnp.exp(s)
            p = p * pl.reciprocal(jnp.sum(p, axis=-1, keepdims=True), approx=True)
            oh = jnp.einsum('bqk,bkd->bqd', p.astype(jnp.bfloat16), vh,
                            preferred_element_type=jnp.float32)         # (B, S, DH)
            attn = attn + jnp.dot(oh.reshape(BS, DH).astype(jnp.bfloat16),
                                  wo[sl, :], preferred_element_type=jnp.float32)
        x = x + attn + bo                               # residual (+ out-proj bias)

        # ---- LayerNorm 1 ----
        mu = jnp.mean(x, axis=-1, keepdims=True)
        var = jnp.mean((x - mu) ** 2, axis=-1, keepdims=True)
        x = (x - mu) * jax.lax.rsqrt(var + EPS) * g1 + be1

        # ---- FFN: Linear -> ReLU -> Linear ----
        hdn = jnp.dot(x.astype(jnp.bfloat16), w1_ref[l],
                      preferred_element_type=jnp.float32) + b1
        hdn = jnp.maximum(hdn, 0.0)
        ffn = jnp.dot(hdn.astype(jnp.bfloat16), w2_ref[l],
                      preferred_element_type=jnp.float32) + b2
        x = x + ffn                                     # residual

        # ---- LayerNorm 2 ----
        mu = jnp.mean(x, axis=-1, keepdims=True)
        var = jnp.mean((x - mu) ** 2, axis=-1, keepdims=True)
        x = (x - mu) * jax.lax.rsqrt(var + EPS) * g2 + be2

    out_ref[...] = x.reshape(B, S, D)


def _full_spec(shape):
    n = len(shape)
    return pl.BlockSpec(shape, lambda i, n=n: (0,) * n)


@jax.jit
def transformer_layer_sequence(x, packed):
    """Single fused pallas_call applying all L transformer layers."""
    wqkv, wo, w1, w2, vec = packed
    return pl.pallas_call(
        _fused_kernel,
        out_shape=jax.ShapeDtypeStruct((B, S, D), jnp.float32),
        grid=(1,),
        in_specs=[_full_spec((B, S, D)), _full_spec(wqkv.shape),
                  _full_spec(wo.shape), _full_spec(w1.shape),
                  _full_spec(w2.shape), _full_spec(vec.shape)],
        out_specs=_full_spec((B, S, D)),
        compiler_params=pltpu.CompilerParams(
            dimension_semantics=("arbitrary",)),
    )(x, wqkv, wo, w1, w2, vec)


def init_params(key):
    """Per-layer params (shapes follow nn.MultiheadAttention + 2-layer FFN +
    2 LayerNorms with embed_dim=D, ffn_dim=F)."""
    params = []
    for _ in range(L):
        key, *ks = jax.random.split(key, 5)
        wqkv = 0.02 * jax.random.normal(ks[0], (D, 3 * D), jnp.float32)
        bqkv = jnp.zeros((1, 3 * D), jnp.float32)
        wo = 0.02 * jax.random.normal(ks[1], (D, D), jnp.float32)
        bo = jnp.zeros((1, D), jnp.float32)
        g1 = jnp.ones((1, D), jnp.float32)
        be1 = jnp.zeros((1, D), jnp.float32)
        w1 = 0.02 * jax.random.normal(ks[2], (D, F), jnp.float32)
        b1 = jnp.zeros((1, F), jnp.float32)
        w2 = 0.02 * jax.random.normal(ks[3], (F, D), jnp.float32)
        b2 = jnp.zeros((1, D), jnp.float32)
        g2 = jnp.ones((1, D), jnp.float32)
        be2 = jnp.zeros((1, D), jnp.float32)
        params.append((wqkv, bqkv, wo, bo, g1, be1, w1, b1, w2, b2, g2, be2))
    return tuple(params)


def prepare_params(params):
    """Stack weights across layers (bf16, one DMA each) and pack the eight tiny
    bias/LayerNorm vectors per layer into a single (L, 8, 3D) f32 block."""
    def pad_row(v):
        return jnp.pad(v, ((0, 0), (0, VW - v.shape[1])))

    wqkv = jnp.stack([p[0] for p in params]).astype(jnp.bfloat16)   # (L, D, 3D)
    wo = jnp.stack([p[2] for p in params]).astype(jnp.bfloat16)     # (L, D, D)
    w1 = jnp.stack([p[6] for p in params]).astype(jnp.bfloat16)     # (L, D, F)
    w2 = jnp.stack([p[8] for p in params]).astype(jnp.bfloat16)     # (L, F, D)
    vecs = []
    for (_, bqkv, _, bo, g1, be1, _, b1, _, b2, g2, be2) in params:
        vecs.append(jnp.concatenate(
            [pad_row(v) for v in (bqkv, bo, g1, be1, b1, b2, g2, be2)], axis=0))
    vec = jnp.stack(vecs)                                           # (L, 8, 3D) f32
    return wqkv, wo, w1, w2, vec


if __name__ == "__main__":
    key = jax.random.PRNGKey(0)
    kx, kp = jax.random.split(key)
    x = jax.random.normal(kx, (B, S, D), jnp.float32)
    params = init_params(kp)
    packed = prepare_params(params)

    out = transformer_layer_sequence(x, packed)
    jax.block_until_ready(out)
    assert out.shape == (B, S, D) and out.dtype == jnp.float32
    print("KERNEL_OK")
</pallas_src>

<mosaic_0001>
module attributes {stable_mosaic.version = 11 : i64} {
  func.func @_fused_kernel(%arg0: i32, %arg1: memref<2x16x128xf32, #tpu.memory_space<vmem>>, %arg2: memref<2x128x384xbf16, #tpu.memory_space<vmem>>, %arg3: memref<2x128x128xbf16, #tpu.memory_space<vmem>>, %arg4: memref<2x128x256xbf16, #tpu.memory_space<vmem>>, %arg5: memref<2x256x128xbf16, #tpu.memory_space<vmem>>, %arg6: memref<2x8x384xf32, #tpu.memory_space<vmem>>, %arg7: memref<2x16x128xf32, #tpu.memory_space<vmem>>) attributes {dimension_semantics = [#tpu.dimension_semantics<arbitrary>], iteration_bounds = array<i64: 1>, scalar_prefetch = 0 : i64, scratch_operands = 0 : i64, tpu.core_type = #tpu.core_type<tc>, window_params = [{pipeline_mode = #tpu.pipeline_mode<synchronous>, transform_indices = @transform_0, window_bounds = array<i64: 2, 16, 128>}, {pipeline_mode = #tpu.pipeline_mode<synchronous>, transform_indices = @transform_1, window_bounds = array<i64: 2, 128, 384>}, {pipeline_mode = #tpu.pipeline_mode<synchronous>, transform_indices = @transform_2, window_bounds = array<i64: 2, 128, 128>}, {pipeline_mode = #tpu.pipeline_mode<synchronous>, transform_indices = @transform_3, window_bounds = array<i64: 2, 128, 256>}, {pipeline_mode = #tpu.pipeline_mode<synchronous>, transform_indices = @transform_4, window_bounds = array<i64: 2, 256, 128>}, {pipeline_mode = #tpu.pipeline_mode<synchronous>, transform_indices = @transform_5, window_bounds = array<i64: 2, 8, 384>}, {pipeline_mode = #tpu.pipeline_mode<synchronous>, transform_indices = @transform_6, window_bounds = array<i64: 2, 16, 128>}]} {
    %c0 = arith.constant 0 : index
    %c0_0 = arith.constant 0 : index
    %c0_1 = arith.constant 0 : index
    %0 = vector.load %arg1[%c0, %c0_0, %c0_1] : memref<2x16x128xf32, #tpu.memory_space<vmem>>, vector<2x16x128xf32>
    %1 = vector.shape_cast %0 : vector<2x16x128xf32> to vector<32x128xf32>
    %c0_2 = arith.constant 0 : index
    %c0_3 = arith.constant 0 : index
    %c0_4 = arith.constant 0 : index
    %2 = vector.load %arg6[%c0_2, %c0_3, %c0_4] : memref<2x8x384xf32, #tpu.memory_space<vmem>>, vector<1x8x384xf32>
    %3 = vector.shape_cast %2 : vector<1x8x384xf32> to vector<8x384xf32>
    %4 = vector.extract_strided_slice %3 {offsets = [0, 0], sizes = [1, 384], strides = [1, 1]} : vector<8x384xf32> to vector<1x384xf32>
    %5 = vector.extract_strided_slice %3 {offsets = [1, 0], sizes = [1, 128], strides = [1, 1]} : vector<8x384xf32> to vector<1x128xf32>
    %6 = vector.extract_strided_slice %3 {offsets = [2, 0], sizes = [1, 128], strides = [1, 1]} : vector<8x384xf32> to vector<1x128xf32>
    %7 = vector.extract_strided_slice %3 {offsets = [3, 0], sizes = [1, 128], strides = [1, 1]} : vector<8x384xf32> to vector<1x128xf32>
    %8 = vector.extract_strided_slice %3 {offsets = [4, 0], sizes = [1, 256], strides = [1, 1]} : vector<8x384xf32> to vector<1x256xf32>
    %9 = vector.extract_strided_slice %3 {offsets = [5, 0], sizes = [1, 128], strides = [1, 1]} : vector<8x384xf32> to vector<1x128xf32>
    %10 = vector.extract_strided_slice %3 {offsets = [6, 0], sizes = [1, 128], strides = [1, 1]} : vector<8x384xf32> to vector<1x128xf32>
    %11 = vector.extract_strided_slice %3 {offsets = [7, 0], sizes = [1, 128], strides = [1, 1]} : vector<8x384xf32> to vector<1x128xf32>
    %12 = arith.truncf %1 : vector<32x128xf32> to vector<32x128xbf16>
    %c0_5 = arith.constant 0 : index
    %c0_6 = arith.constant 0 : index
    %c0_7 = arith.constant 0 : index
    %13 = vector.load %arg2[%c0_5, %c0_6, %c0_7] : memref<2x128x384xbf16, #tpu.memory_space<vmem>>, vector<1x128x384xbf16>
    %14 = vector.shape_cast %13 : vector<1x128x384xbf16> to vector<128x384xbf16>
    %cst = arith.constant dense<0.000000e+00> : vector<32x384xf32>
    %15 = tpu.matmul %12, %14, %cst {dimension_numbers = #tpu.dot_dimension_numbers<[1], [0], [0], [1], [0, 0, 1, 1], [], []>} : vector<32x128xbf16>, vector<128x384xbf16>, vector<32x384xf32> -> vector<32x384xf32>
    %16 = vector.broadcast %4 : vector<1x384xf32> to vector<32x384xf32>
    %17 = arith.addf %15, %16 : vector<32x384xf32>
    %18 = vector.extract_strided_slice %17 {offsets = [0, 0], sizes = [32, 128], strides = [1, 1]} : vector<32x384xf32> to vector<32x128xf32>
    %cst_8 = arith.constant 0.176776692 : f32
    %19 = vector.broadcast %cst_8 : f32 to vector<32x128xf32>
    %20 = arith.mulf %18, %19 : vector<32x128xf32>
    %21 = vector.shape_cast %20 : vector<32x128xf32> to vector<2x16x128xf32>
    %22 = vector.extract_strided_slice %17 {offsets = [0, 128], sizes = [32, 128], strides = [1, 1]} : vector<32x384xf32> to vector<32x128xf32>
    %23 = vector.shape_cast %22 : vector<32x128xf32> to vector<2x16x128xf32>
    %24 = vector.extract_strided_slice %17 {offsets = [0, 256], sizes = [32, 128], strides = [1, 1]} : vector<32x384xf32> to vector<32x128xf32>
    %25 = vector.shape_cast %24 : vector<32x128xf32> to vector<2x16x128xf32>
    %c0_9 = arith.constant 0 : index
    %c0_10 = arith.constant 0 : index
    %c0_11 = arith.constant 0 : index
    %26 = vector.load %arg3[%c0_9, %c0_10, %c0_11] : memref<2x128x128xbf16, #tpu.memory_space<vmem>>, vector<1x128x128xbf16>
    %27 = vector.shape_cast %26 : vector<1x128x128xbf16> to vector<128x128xbf16>
    %cst_12 = arith.constant 0.000000e+00 : f32
    %28 = vector.broadcast %cst_12 : f32 to vector<32x128xf32>
    %29 = vector.extract_strided_slice %21 {offsets = [0, 0, 0], sizes = [2, 16, 32], strides = [1, 1, 1]} : vector<2x16x128xf32> to vector<2x16x32xf32>
    %30 = arith.truncf %29 : vector<2x16x32xf32> to vector<2x16x32xbf16>
    %31 = vector.extract_strided_slice %23 {offsets = [0, 0, 0], sizes = [2, 16, 32], strides = [1, 1, 1]} : vector<2x16x128xf32> to vector<2x16x32xf32>
    %32 = arith.truncf %31 : vector<2x16x32xf32> to vector<2x16x32xbf16>
    %33 = vector.extract_strided_slice %25 {offsets = [0, 0, 0], sizes = [2, 16, 32], strides = [1, 1, 1]} : vector<2x16x128xf32> to vector<2x16x32xf32>
    %34 = arith.truncf %33 : vector<2x16x32xf32> to vector<2x16x32xbf16>
    "tpu.trace_start"() <{level = 10 : i32, message = "bqd,bkd->bqk"}> : () -> ()
    %cst_13 = arith.constant dense<0.000000e+00> : vector<2x16x16xf32>
    %35 = tpu.matmul %30, %32, %cst_13 {dimension_numbers = #tpu.dot_dimension_numbers<[2], [2], [1], [1], [0, 0, 0, 1, 1, 1], [0], [0]>} : vector<2x16x32xbf16>, vector<2x16x32xbf16>, vector<2x16x16xf32> -> vector<2x16x16xf32>
    "tpu.trace_stop"() : () -> ()
    %cst_14 = arith.constant dense<0xFF800000> : vector<2x16xf32>
    %36 = vector.multi_reduction <maximumf>, %35, %cst_14 [2] : vector<2x16x16xf32> to vector<2x16xf32>
    %37 = vector.shape_cast %36 : vector<2x16xf32> to vector<2x16x1xf32>
    %38 = vector.broadcast %37 : vector<2x16x1xf32> to vector<2x16x16xf32>
    %39 = arith.subf %35, %38 : vector<2x16x16xf32>
    %40 = math.exp %39 : vector<2x16x16xf32>
    %cst_15 = arith.constant dense<0.000000e+00> : vector<2x16xf32>
    %41 = vector.multi_reduction <add>, %40, %cst_15 [2] : vector<2x16x16xf32> to vector<2x16xf32>
    %42 = vector.shape_cast %41 : vector<2x16xf32> to vector<2x16x1xf32>
    %43 = tpu.reciprocal %42 {approx = true} : vector<2x16x1xf32> -> vector<2x16x1xf32>
    %44 = vector.broadcast %43 : vector<2x16x1xf32> to vector<2x16x16xf32>
    %45 = arith.mulf %40, %44 : vector<2x16x16xf32>
    %46 = arith.truncf %45 : vector<2x16x16xf32> to vector<2x16x16xbf16>
    "tpu.trace_start"() <{level = 10 : i32, message = "bqk,bkd->bqd"}> : () -> ()
    %cst_16 = arith.constant dense<0.000000e+00> : vector<2x16x32xf32>
    %47 = tpu.matmul %46, %34, %cst_16 {dimension_numbers = #tpu.dot_dimension_numbers<[2], [1], [1], [2], [0, 0, 0, 1, 1, 2], [0], [0]>} : vector<2x16x16xbf16>, vector<2x16x32xbf16>, vector<2x16x32xf32> -> vector<2x16x32xf32>
    "tpu.trace_stop"() : () -> ()
    %48 = vector.shape_cast %47 : vector<2x16x32xf32> to vector<32x32xf32>
    %49 = arith.truncf %48 : vector<32x32xf32> to vector<32x32xbf16>
    %50 = vector.extract_strided_slice %27 {offsets = [0, 0], sizes = [32, 128], strides = [1, 1]} : vector<128x128xbf16> to vector<32x128xbf16>
    %cst_17 = arith.constant dense<0.000000e+00> : vector<32x128xf32>
    %51 = tpu.matmul %49, %50, %cst_17 {dimension_numbers = #tpu.dot_dimension_numbers<[1], [0], [0], [1], [0, 0, 1, 1], [], []>} : vector<32x32xbf16>, vector<32x128xbf16>, vector<32x128xf32> -> vector<32x128xf32>
    %52 = arith.addf %28, %51 : vector<32x128xf32>
    %53 = vector.extract_strided_slice %21 {offsets = [0, 0, 32], sizes = [2, 16, 32], strides = [1, 1, 1]} : vector<2x16x128xf32> to vector<2x16x32xf32>
    %54 = arith.truncf %53 : vector<2x16x32xf32> to vector<2x16x32xbf16>
    %55 = vector.extract_strided_slice %23 {offsets = [0, 0, 32], sizes = [2, 16, 32], strides = [1, 1, 1]} : vector<2x16x128xf32> to vector<2x16x32xf32>
    %56 = arith.truncf %55 : vector<2x16x32xf32> to vector<2x16x32xbf16>
    %57 = vector.extract_strided_slice %25 {offsets = [0, 0, 32], sizes = [2, 16, 32], strides = [1, 1, 1]} : vector<2x16x128xf32> to vector<2x16x32xf32>
    %58 = arith.truncf %57 : vector<2x16x32xf32> to vector<2x16x32xbf16>
    "tpu.trace_start"() <{level = 10 : i32, message = "bqd,bkd->bqk"}> : () -> ()
    %cst_18 = arith.constant dense<0.000000e+00> : vector<2x16x16xf32>
    %59 = tpu.matmul %54, %56, %cst_18 {dimension_numbers = #tpu.dot_dimension_numbers<[2], [2], [1], [1], [0, 0, 0, 1, 1, 1], [0], [0]>} : vector<2x16x32xbf16>, vector<2x16x32xbf16>, vector<2x16x16xf32> -> vector<2x16x16xf32>
    "tpu.trace_stop"() : () -> ()
    %cst_19 = arith.constant dense<0xFF800000> : vector<2x16xf32>
    %60 = vector.multi_reduction <maximumf>, %59, %cst_19 [2] : vector<2x16x16xf32> to vector<2x16xf32>
    %61 = vector.shape_cast %60 : vector<2x16xf32> to vector<2x16x1xf32>
    %62 = vector.broadcast %61 : vector<2x16x1xf32> to vector<2x16x16xf32>
    %63 = arith.subf %59, %62 : vector<2x16x16xf32>
    %64 = math.exp %63 : vector<2x16x16xf32>
    %cst_20 = arith.constant dense<0.000000e+00> : vector<2x16xf32>
    %65 = vector.multi_reduction <add>, %64, %cst_20 [2] : vector<2x16x16xf32> to vector<2x16xf32>
    %66 = vector.shape_cast %65 : vector<2x16xf32> to vector<2x16x1xf32>
    %67 = tpu.reciprocal %66 {approx = true} : vector<2x16x1xf32> -> vector<2x16x1xf32>
    %68 = vector.broadcast %67 : vector<2x16x1xf32> to vector<2x16x16xf32>
    %69 = arith.mulf %64, %68 : vector<2x16x16xf32>
    %70 = arith.truncf %69 : vector<2x16x16xf32> to vector<2x16x16xbf16>
    "tpu.trace_start"() <{level = 10 : i32, message = "bqk,bkd->bqd"}> : () -> ()
    %cst_21 = arith.constant dense<0.000000e+00> : vector<2x16x32xf32>
    %71 = tpu.matmul %70, %58, %cst_21 {dimension_numbers = #tpu.dot_dimension_numbers<[2], [1], [1], [2], [0, 0, 0, 1, 1, 2], [0], [0]>} : vector<2x16x16xbf16>, vector<2x16x32xbf16>, vector<2x16x32xf32> -> vector<2x16x32xf32>
    "tpu.trace_stop"() : () -> ()
    %72 = vector.shape_cast %71 : vector<2x16x32xf32> to vector<32x32xf32>
    %73 = arith.truncf %72 : vector<32x32xf32> to vector<32x32xbf16>
    %74 = vector.extract_strided_slice %27 {offsets = [32, 0], sizes = [32, 128], strides = [1, 1]} : vector<128x128xbf16> to vector<32x128xbf16>
    %cst_22 = arith.constant dense<0.000000e+00> : vector<32x128xf32>
    %75 = tpu.matmul %73, %74, %cst_22 {dimension_numbers = #tpu.dot_dimension_numbers<[1], [0], [0], [1], [0, 0, 1, 1], [], []>} : vector<32x32xbf16>, vector<32x128xbf16>, vector<32x128xf32> -> vector<32x128xf32>
    %76 = arith.addf %52, %75 : vector<32x128xf32>
    %77 = vector.extract_strided_slice %21 {offsets = [0, 0, 64], sizes = [2, 16, 32], strides = [1, 1, 1]} : vector<2x16x128xf32> to vector<2x16x32xf32>
    %78 = arith.truncf %77 : vector<2x16x32xf32> to vector<2x16x32xbf16>
    %79 = vector.extract_strided_slice %23 {offsets = [0, 0, 64], sizes = [2, 16, 32], strides = [1, 1, 1]} : vector<2x16x128xf32> to vector<2x16x32xf32>
    %80 = arith.truncf %79 : vector<2x16x32xf32> to vector<2x16x32xbf16>
    %81 = vector.extract_strided_slice %25 {offsets = [0, 0, 64], sizes = [2, 16, 32], strides = [1, 1, 1]} : vector<2x16x128xf32> to vector<2x16x32xf32>
    %82 = arith.truncf %81 : vector<2x16x32xf32> to vector<2x16x32xbf16>
    "tpu.trace_start"() <{level = 10 : i32, message = "bqd,bkd->bqk"}> : () -> ()
    %cst_23 = arith.constant dense<0.000000e+00> : vector<2x16x16xf32>
    %83 = tpu.matmul %78, %80, %cst_23 {dimension_numbers = #tpu.dot_dimension_numbers<[2], [2], [1], [1], [0, 0, 0, 1, 1, 1], [0], [0]>} : vector<2x16x32xbf16>, vector<2x16x32xbf16>, vector<2x16x16xf32> -> vector<2x16x16xf32>
    "tpu.trace_stop"() : () -> ()
    %cst_24 = arith.constant dense<0xFF800000> : vector<2x16xf32>
    %84 = vector.multi_reduction <maximumf>, %83, %cst_24 [2] : vector<2x16x16xf32> to vector<2x16xf32>
    %85 = vector.shape_cast %84 : vector<2x16xf32> to vector<2x16x1xf32>
    %86 = vector.broadcast %85 : vector<2x16x1xf32> to vector<2x16x16xf32>
    %87 = arith.subf %83, %86 : vector<2x16x16xf32>
    %88 = math.exp %87 : vector<2x16x16xf32>
    %cst_25 = arith.constant dense<0.000000e+00> : vector<2x16xf32>
    %89 = vector.multi_reduction <add>, %88, %cst_25 [2] : vector<2x16x16xf32> to vector<2x16xf32>
    %90 = vector.shape_cast %89 : vector<2x16xf32> to vector<2x16x1xf32>
    %91 = tpu.reciprocal %90 {approx = true} : vector<2x16x1xf32> -> vector<2x16x1xf32>
    %92 = vector.broadcast %91 : vector<2x16x1xf32> to vector<2x16x16xf32>
    %93 = arith.mulf %88, %92 : vector<2x16x16xf32>
    %94 = arith.truncf %93 : vector<2x16x16xf32> to vector<2x16x16xbf16>
    "tpu.trace_start"() <{level = 10 : i32, message = "bqk,bkd->bqd"}> : () -> ()
    %cst_26 = arith.constant dense<0.000000e+00> : vector<2x16x32xf32>
    %95 = tpu.matmul %94, %82, %cst_26 {dimension_numbers = #tpu.dot_dimension_numbers<[2], [1], [1], [2], [0, 0, 0, 1, 1, 2], [0], [0]>} : vector<2x16x16xbf16>, vector<2x16x32xbf16>, vector<2x16x32xf32> -> vector<2x16x32xf32>
    "tpu.trace_stop"() : () -> ()
    %96 = vector.shape_cast %95 : vector<2x16x32xf32> to vector<32x32xf32>
    %97 = arith.truncf %96 : vector<32x32xf32> to vector<32x32xbf16>
    %98 = vector.extract_strided_slice %27 {offsets = [64, 0], sizes = [32, 128], strides = [1, 1]} : vector<128x128xbf16> to vector<32x128xbf16>
    %cst_27 = arith.constant dense<0.000000e+00> : vector<32x128xf32>
    %99 = tpu.matmul %97, %98, %cst_27 {dimension_numbers = #tpu.dot_dimension_numbers<[1], [0], [0], [1], [0, 0, 1, 1], [], []>} : vector<32x32xbf16>, vector<32x128xbf16>, vector<32x128xf32> -> vector<32x128xf32>
    %100 = arith.addf %76, %99 : vector<32x128xf32>
    %101 = vector.extract_strided_slice %21 {offsets = [0, 0, 96], sizes = [2, 16, 32], strides = [1, 1, 1]} : vector<2x16x128xf32> to vector<2x16x32xf32>
    %102 = arith.truncf %101 : vector<2x16x32xf32> to vector<2x16x32xbf16>
    %103 = vector.extract_strided_slice %23 {offsets = [0, 0, 96], sizes = [2, 16, 32], strides = [1, 1, 1]} : vector<2x16x128xf32> to vector<2x16x32xf32>
    %104 = arith.truncf %103 : vector<2x16x32xf32> to vector<2x16x32xbf16>
    %105 = vector.extract_strided_slice %25 {offsets = [0, 0, 96], sizes = [2, 16, 32], strides = [1, 1, 1]} : vector<2x16x128xf32> to vector<2x16x32xf32>
    %106 = arith.truncf %105 : vector<2x16x32xf32> to vector<2x16x32xbf16>
    "tpu.trace_start"() <{level = 10 : i32, message = "bqd,bkd->bqk"}> : () -> ()
    %cst_28 = arith.constant dense<0.000000e+00> : vector<2x16x16xf32>
    %107 = tpu.matmul %102, %104, %cst_28 {dimension_numbers = #tpu.dot_dimension_numbers<[2], [2], [1], [1], [0, 0, 0, 1, 1, 1], [0], [0]>} : vector<2x16x32xbf16>, vector<2x16x32xbf16>, vector<2x16x16xf32> -> vector<2x16x16xf32>
    "tpu.trace_stop"() : () -> ()
    %cst_29 = arith.constant dense<0xFF800000> : vector<2x16xf32>
    %108 = vector.multi_reduction <maximumf>, %107, %cst_29 [2] : vector<2x16x16xf32> to vector<2x16xf32>
    %109 = vector.shape_cast %108 : vector<2x16xf32> to vector<2x16x1xf32>
    %110 = vector.broadcast %109 : vector<2x16x1xf32> to vector<2x16x16xf32>
    %111 = arith.subf %107, %110 : vector<2x16x16xf32>
    %112 = math.exp %111 : vector<2x16x16xf32>
    %cst_30 = arith.constant dense<0.000000e+00> : vector<2x16xf32>
    %113 = vector.multi_reduction <add>, %112, %cst_30 [2] : vector<2x16x16xf32> to vector<2x16xf32>
    %114 = vector.shape_cast %113 : vector<2x16xf32> to vector<2x16x1xf32>
    %115 = tpu.reciprocal %114 {approx = true} : vector<2x16x1xf32> -> vector<2x16x1xf32>
    %116 = vector.broadcast %115 : vector<2x16x1xf32> to vector<2x16x16xf32>
    %117 = arith.mulf %112, %116 : vector<2x16x16xf32>
    %118 = arith.truncf %117 : vector<2x16x16xf32> to vector<2x16x16xbf16>
    "tpu.trace_start"() <{level = 10 : i32, message = "bqk,bkd->bqd"}> : () -> ()
    %cst_31 = arith.constant dense<0.000000e+00> : vector<2x16x32xf32>
    %119 = tpu.matmul %118, %106, %cst_31 {dimension_numbers = #tpu.dot_dimension_numbers<[2], [1], [1], [2], [0, 0, 0, 1, 1, 2], [0], [0]>} : vector<2x16x16xbf16>, vector<2x16x32xbf16>, vector<2x16x32xf32> -> vector<2x16x32xf32>
    "tpu.trace_stop"() : () -> ()
    %120 = vector.shape_cast %119 : vector<2x16x32xf32> to vector<32x32xf32>
    %121 = arith.truncf %120 : vector<32x32xf32> to vector<32x32xbf16>
    %122 = vector.extract_strided_slice %27 {offsets = [96, 0], sizes = [32, 128], strides = [1, 1]} : vector<128x128xbf16> to vector<32x128xbf16>
    %cst_32 = arith.constant dense<0.000000e+00> : vector<32x128xf32>
    %123 = tpu.matmul %121, %122, %cst_32 {dimension_numbers = #tpu.dot_dimension_numbers<[1], [0], [0], [1], [0, 0, 1, 1], [], []>} : vector<32x32xbf16>, vector<32x128xbf16>, vector<32x128xf32> -> vector<32x128xf32>
    %124 = arith.addf %100, %123 : vector<32x128xf32>
    %125 = arith.addf %1, %124 : vector<32x128xf32>
    %126 = vector.broadcast %5 : vector<1x128xf32> to vector<32x128xf32>
    %127 = arith.addf %125, %126 : vector<32x128xf32>
    %cst_33 = arith.constant dense<0.000000e+00> : vector<32xf32>
    %128 = vector.multi_reduction <add>, %127, %cst_33 [1] : vector<32x128xf32> to vector<32xf32>
    %129 = vector.shape_cast %128 : vector<32xf32> to vector<32x1xf32>
    %cst_34 = arith.constant 1.280000e+02 : f32
    %130 = vector.broadcast %cst_34 : f32 to vector<32x1xf32>
    %131 = arith.divf %129, %130 : vector<32x1xf32>
    %132 = vector.broadcast %131 : vector<32x1xf32> to vector<32x128xf32>
    %133 = arith.subf %127, %132 : vector<32x128xf32>
    %134 = arith.mulf %133, %133 : vector<32x128xf32>
    %cst_35 = arith.constant dense<0.000000e+00> : vector<32xf32>
    %135 = vector.multi_reduction <add>, %134, %cst_35 [1] : vector<32x128xf32> to vector<32xf32>
    %136 = vector.shape_cast %135 : vector<32xf32> to vector<32x1xf32>
    %cst_36 = arith.constant 1.280000e+02 : f32
    %137 = vector.broadcast %cst_36 : f32 to vector<32x1xf32>
    %138 = arith.divf %136, %137 : vector<32x1xf32>
    %139 = vector.broadcast %131 : vector<32x1xf32> to vector<32x128xf32>
    %140 = arith.subf %127, %139 : vector<32x128xf32>
    %cst_37 = arith.constant 9.99999974E-6 : f32
    %141 = vector.broadcast %cst_37 : f32 to vector<32x1xf32>
    %142 = arith.addf %138, %141 : vector<32x1xf32>
    %143 = math.rsqrt %142 : vector<32x1xf32>
    %144 = vector.broadcast %143 : vector<32x1xf32> to vector<32x128xf32>
    %145 = arith.mulf %140, %144 : vector<32x128xf32>
    %146 = vector.broadcast %6 : vector<1x128xf32> to vector<32x128xf32>
    %147 = arith.mulf %145, %146 : vector<32x128xf32>
    %148 = vector.broadcast %7 : vector<1x128xf32> to vector<32x128xf32>
    %149 = arith.addf %147, %148 : vector<32x128xf32>
    %150 = arith.truncf %149 : vector<32x128xf32> to vector<32x128xbf16>
    %c0_38 = arith.constant 0 : index
    %c0_39 = arith.constant 0 : index
    %c0_40 = arith.constant 0 : index
    %151 = vector.load %arg4[%c0_38, %c0_39, %c0_40] : memref<2x128x256xbf16, #tpu.memory_space<vmem>>, vector<1x128x256xbf16>
    %152 = vector.shape_cast %151 : vector<1x128x256xbf16> to vector<128x256xbf16>
    %cst_41 = arith.constant dense<0.000000e+00> : vector<32x256xf32>
    %153 = tpu.matmul %150, %152, %cst_41 {dimension_numbers = #tpu.dot_dimension_numbers<[1], [0], [0], [1], [0, 0, 1, 1], [], []>} : vector<32x128xbf16>, vector<128x256xbf16>, vector<32x256xf32> -> vector<32x256xf32>
    %154 = vector.broadcast %8 : vector<1x256xf32> to vector<32x256xf32>
    %155 = arith.addf %153, %154 : vector<32x256xf32>
    %cst_42 = arith.constant 0.000000e+00 : f32
    %156 = vector.broadcast %cst_42 : f32 to vector<32x256xf32>
    %157 = arith.maximumf %155, %156 : vector<32x256xf32>
    %158 = arith.truncf %157 : vector<32x256xf32> to vector<32x256xbf16>
    %c0_43 = arith.constant 0 : index
    %c0_44 = arith.constant 0 : index
    %c0_45 = arith.constant 0 : index
    %159 = vector.load %arg5[%c0_43, %c0_44, %c0_45] : memref<2x256x128xbf16, #tpu.memory_space<vmem>>, vector<1x256x128xbf16>
    %160 = vector.shape_cast %159 : vector<1x256x128xbf16> to vector<256x128xbf16>
    %cst_46 = arith.constant dense<0.000000e+00> : vector<32x128xf32>
    %161 = tpu.matmul %158, %160, %cst_46 {dimension_numbers = #tpu.dot_dimension_numbers<[1], [0], [0], [1], [0, 0, 1, 1], [], []>} : vector<32x256xbf16>, vector<256x128xbf16>, vector<32x128xf32> -> vector<32x128xf32>
    %162 = vector.broadcast %9 : vector<1x128xf32> to vector<32x128xf32>
    %163 = arith.addf %161, %162 : vector<32x128xf32>
    %164 = arith.addf %149, %163 : vector<32x128xf32>
    %cst_47 = arith.constant dense<0.000000e+00> : vector<32xf32>
    %165 = vector.multi_reduction <add>, %164, %cst_47 [1] : vector<32x128xf32> to vector<32xf32>
    %166 = vector.shape_cast %165 : vector<32xf32> to vector<32x1xf32>
    %cst_48 = arith.constant 1.280000e+02 : f32
    %167 = vector.broadcast %cst_48 : f32 to vector<32x1xf32>
    %168 = arith.divf %166, %167 : vector<32x1xf32>
    %169 = vector.broadcast %168 : vector<32x1xf32> to vector<32x128xf32>
    %170 = arith.subf %164, %169 : vector<32x128xf32>
    %171 = arith.mulf %170, %170 : vector<32x128xf32>
    %cst_49 = arith.constant dense<0.000000e+00> : vector<32xf32>
    %172 = vector.multi_reduction <add>, %171, %cst_49 [1] : vector<32x128xf32> to vector<32xf32>
    %173 = vector.shape_cast %172 : vector<32xf32> to vector<32x1xf32>
    %cst_50 = arith.constant 1.280000e+02 : f32
    %174 = vector.broadcast %cst_50 : f32 to vector<32x1xf32>
    %175 = arith.divf %173, %174 : vector<32x1xf32>
    %176 = vector.broadcast %168 : vector<32x1xf32> to vector<32x128xf32>
    %177 = arith.subf %164, %176 : vector<32x128xf32>
    %cst_51 = arith.constant 9.99999974E-6 : f32
    %178 = vector.broadcast %cst_51 : f32 to vector<32x1xf32>
    %179 = arith.addf %175, %178 : vector<32x1xf32>
    %180 = math.rsqrt %179 : vector<32x1xf32>
    %181 = vector.broadcast %180 : vector<32x1xf32> to vector<32x128xf32>
    %182 = arith.mulf %177, %181 : vector<32x128xf32>
    %183 = vector.broadcast %10 : vector<1x128xf32> to vector<32x128xf32>
    %184 = arith.mulf %182, %183 : vector<32x128xf32>
    %185 = vector.broadcast %11 : vector<1x128xf32> to vector<32x128xf32>
    %186 = arith.addf %184, %185 : vector<32x128xf32>
    %c1 = arith.constant 1 : index
    %c0_52 = arith.constant 0 : index
    %c0_53 = arith.constant 0 : index
    %187 = vector.load %arg6[%c1, %c0_52, %c0_53] : memref<2x8x384xf32, #tpu.memory_space<vmem>>, vector<1x8x384xf32>
    %188 = vector.shape_cast %187 : vector<1x8x384xf32> to vector<8x384xf32>
    %189 = vector.extract_strided_slice %188 {offsets = [0, 0], sizes = [1, 384], strides = [1, 1]} : vector<8x384xf32> to vector<1x384xf32>
    %190 = vector.extract_strided_slice %188 {offsets = [1, 0], sizes = [1, 128], strides = [1, 1]} : vector<8x384xf32> to vector<1x128xf32>
    %191 = vector.extract_strided_slice %188 {offsets = [2, 0], sizes = [1, 128], strides = [1, 1]} : vector<8x384xf32> to vector<1x128xf32>
    %192 = vector.extract_strided_slice %188 {offsets = [3, 0], sizes = [1, 128], strides = [1, 1]} : vector<8x384xf32> to vector<1x128xf32>
    %193 = vector.extract_strided_slice %188 {offsets = [4, 0], sizes = [1, 256], strides = [1, 1]} : vector<8x384xf32> to vector<1x256xf32>
    %194 = vector.extract_strided_slice %188 {offsets = [5, 0], sizes = [1, 128], strides = [1, 1]} : vector<8x384xf32> to vector<1x128xf32>
    %195 = vector.extract_strided_slice %188 {offsets = [6, 0], sizes = [1, 128], strides = [1, 1]} : vector<8x384xf32> to vector<1x128xf32>
    %196 = vector.extract_strided_slice %188 {offsets = [7, 0], sizes = [1, 128], strides = [1, 1]} : vector<8x384xf32> to vector<1x128xf32>
    %197 = arith.truncf %186 : vector<32x128xf32> to vector<32x128xbf16>
    %c1_54 = arith.constant 1 : index
    %c0_55 = arith.constant 0 : index
    %c0_56 = arith.constant 0 : index
    %198 = vector.load %arg2[%c1_54, %c0_55, %c0_56] : memref<2x128x384xbf16, #tpu.memory_space<vmem>>, vector<1x128x384xbf16>
    %199 = vector.shape_cast %198 : vector<1x128x384xbf16> to vector<128x384xbf16>
    %cst_57 = arith.constant dense<0.000000e+00> : vector<32x384xf32>
    %200 = tpu.matmul %197, %199, %cst_57 {dimension_numbers = #tpu.dot_dimension_numbers<[1], [0], [0], [1], [0, 0, 1, 1], [], []>} : vector<32x128xbf16>, vector<128x384xbf16>, vector<32x384xf32> -> vector<32x384xf32>
    %201 = vector.broadcast %189 : vector<1x384xf32> to vector<32x384xf32>
    %202 = arith.addf %200, %201 : vector<32x384xf32>
    %203 = vector.extract_strided_slice %202 {offsets = [0, 0], sizes = [32, 128], strides = [1, 1]} : vector<32x384xf32> to vector<32x128xf32>
    %cst_58 = arith.constant 0.176776692 : f32
    %204 = vector.broadcast %cst_58 : f32 to vector<32x128xf32>
    %205 = arith.mulf %203, %204 : vector<32x128xf32>
    %206 = vector.shape_cast %205 : vector<32x128xf32> to vector<2x16x128xf32>
    %207 = vector.extract_strided_slice %202 {offsets = [0, 128], sizes = [32, 128], strides = [1, 1]} : vector<32x384xf32> to vector<32x128xf32>
    %208 = vector.shape_cast %207 : vector<32x128xf32> to vector<2x16x128xf32>
    %209 = vector.extract_strided_slice %202 {offsets = [0, 256], sizes = [32, 128], strides = [1, 1]} : vector<32x384xf32> to vector<32x128xf32>
    %210 = vector.shape_cast %209 : vector<32x128xf32> to vector<2x16x128xf32>
    %c1_59 = arith.constant 1 : index
    %c0_60 = arith.constant 0 : index
    %c0_61 = arith.constant 0 : index
    %211 = vector.load %arg3[%c1_59, %c0_60, %c0_61] : memref<2x128x128xbf16, #tpu.memory_space<vmem>>, vector<1x128x128xbf16>
    %212 = vector.shape_cast %211 : vector<1x128x128xbf16> to vector<128x128xbf16>
    %cst_62 = arith.constant 0.000000e+00 : f32
    %213 = vector.broadcast %cst_62 : f32 to vector<32x128xf32>
    %214 = vector.extract_strided_slice %206 {offsets = [0, 0, 0], sizes = [2, 16, 32], strides = [1, 1, 1]} : vector<2x16x128xf32> to vector<2x16x32xf32>
    %215 = arith.truncf %214 : vector<2x16x32xf32> to vector<2x16x32xbf16>
    %216 = vector.extract_strided_slice %208 {offsets = [0, 0, 0], sizes = [2, 16, 32], strides = [1, 1, 1]} : vector<2x16x128xf32> to vector<2x16x32xf32>
    %217 = arith.truncf %216 : vector<2x16x32xf32> to vector<2x16x32xbf16>
    %218 = vector.extract_strided_slice %210 {offsets = [0, 0, 0], sizes = [2, 16, 32], strides = [1, 1, 1]} : vector<2x16x128xf32> to vector<2x16x32xf32>
    %219 = arith.truncf %218 : vector<2x16x32xf32> to vector<2x16x32xbf16>
    "tpu.trace_start"() <{level = 10 : i32, message = "bqd,bkd->bqk"}> : () -> ()
    %cst_63 = arith.constant dense<0.000000e+00> : vector<2x16x16xf32>
    %220 = tpu.matmul %215, %217, %cst_63 {dimension_numbers = #tpu.dot_dimension_numbers<[2], [2], [1], [1], [0, 0, 0, 1, 1, 1], [0], [0]>} : vector<2x16x32xbf16>, vector<2x16x32xbf16>, vector<2x16x16xf32> -> vector<2x16x16xf32>
    "tpu.trace_stop"() : () -> ()
    %cst_64 = arith.constant dense<0xFF800000> : vector<2x16xf32>
    %221 = vector.multi_reduction <maximumf>, %220, %cst_64 [2] : vector<2x16x16xf32> to vector<2x16xf32>
    %222 = vector.shape_cast %221 : vector<2x16xf32> to vector<2x16x1xf32>
    %223 = vector.broadcast %222 : vector<2x16x1xf32> to vector<2x16x16xf32>
    %224 = arith.subf %220, %223 : vector<2x16x16xf32>
    %225 = math.exp %224 : vector<2x16x16xf32>
    %cst_65 = arith.constant dense<0.000000e+00> : vector<2x16xf32>
    %226 = vector.multi_reduction <add>, %225, %cst_65 [2] : vector<2x16x16xf32> to vector<2x16xf32>
    %227 = vector.shape_cast %226 : vector<2x16xf32> to vector<2x16x1xf32>
    %228 = tpu.reciprocal %227 {approx = true} : vector<2x16x1xf32> -> vector<2x16x1xf32>
    %229 = vector.broadcast %228 : vector<2x16x1xf32> to vector<2x16x16xf32>
    %230 = arith.mulf %225, %229 : vector<2x16x16xf32>
    %231 = arith.truncf %230 : vector<2x16x16xf32> to vector<2x16x16xbf16>
    "tpu.trace_start"() <{level = 10 : i32, message = "bqk,bkd->bqd"}> : () -> ()
    %cst_66 = arith.constant dense<0.000000e+00> : vector<2x16x32xf32>
    %232 = tpu.matmul %231, %219, %cst_66 {dimension_numbers = #tpu.dot_dimension_numbers<[2], [1], [1], [2], [0, 0, 0, 1, 1, 2], [0], [0]>} : vector<2x16x16xbf16>, vector<2x16x32xbf16>, vector<2x16x32xf32> -> vector<2x16x32xf32>
    "tpu.trace_stop"() : () -> ()
    %233 = vector.shape_cast %232 : vector<2x16x32xf32> to vector<32x32xf32>
    %234 = arith.truncf %233 : vector<32x32xf32> to vector<32x32xbf16>
    %235 = vector.extract_strided_slice %212 {offsets = [0, 0], sizes = [32, 128], strides = [1, 1]} : vector<128x128xbf16> to vector<32x128xbf16>
    %cst_67 = arith.constant dense<0.000000e+00> : vector<32x128xf32>
    %236 = tpu.matmul %234, %235, %cst_67 {dimension_numbers = #tpu.dot_dimension_numbers<[1], [0], [0], [1], [0, 0, 1, 1], [], []>} : vector<32x32xbf16>, vector<32x128xbf16>, vector<32x128xf32> -> vector<32x128xf32>
    %237 = arith.addf %213, %236 : vector<32x128xf32>
    %238 = vector.extract_strided_slice %206 {offsets = [0, 0, 32], sizes = [2, 16, 32], strides = [1, 1, 1]} : vector<2x16x128xf32> to vector<2x16x32xf32>
    %239 = arith.truncf %238 : vector<2x16x32xf32> to vector<2x16x32xbf16>
    %240 = vector.extract_strided_slice %208 {offsets = [0, 0, 32], sizes = [2, 16, 32], strides = [1, 1, 1]} : vector<2x16x128xf32> to vector<2x16x32xf32>
    %241 = arith.truncf %240 : vector<2x16x32xf32> to vector<2x16x32xbf16>
    %242 = vector.extract_strided_slice %210 {offsets = [0, 0, 32], sizes = [2, 16, 32], strides = [1, 1, 1]} : vector<2x16x128xf32> to vector<2x16x32xf32>
    %243 = arith.truncf %242 : vector<2x16x32xf32> to vector<2x16x32xbf16>
    "tpu.trace_start"() <{level = 10 : i32, message = "bqd,bkd->bqk"}> : () -> ()
    %cst_68 = arith.constant dense<0.000000e+00> : vector<2x16x16xf32>
    %244 = tpu.matmul %239, %241, %cst_68 {dimension_numbers = #tpu.dot_dimension_numbers<[2], [2], [1], [1], [0, 0, 0, 1, 1, 1], [0], [0]>} : vector<2x16x32xbf16>, vector<2x16x32xbf16>, vector<2x16x16xf32> -> vector<2x16x16xf32>
    "tpu.trace_stop"() : () -> ()
    %cst_69 = arith.constant dense<0xFF800000> : vector<2x16xf32>
    %245 = vector.multi_reduction <maximumf>, %244, %cst_69 [2] : vector<2x16x16xf32> to vector<2x16xf32>
    %246 = vector.shape_cast %245 : vector<2x16xf32> to vector<2x16x1xf32>
    %247 = vector.broadcast %246 : vector<2x16x1xf32> to vector<2x16x16xf32>
    %248 = arith.subf %244, %247 : vector<2x16x16xf32>
    %249 = math.exp %248 : vector<2x16x16xf32>
    %cst_70 = arith.constant dense<0.000000e+00> : vector<2x16xf32>
    %250 = vector.multi_reduction <add>, %249, %cst_70 [2] : vector<2x16x16xf32> to vector<2x16xf32>
    %251 = vector.shape_cast %250 : vector<2x16xf32> to vector<2x16x1xf32>
    %252 = tpu.reciprocal %251 {approx = true} : vector<2x16x1xf32> -> vector<2x16x1xf32>
    %253 = vector.broadcast %252 : vector<2x16x1xf32> to vector<2x16x16xf32>
    %254 = arith.mulf %249, %253 : vector<2x16x16xf32>
    %255 = arith.truncf %254 : vector<2x16x16xf32> to vector<2x16x16xbf16>
    "tpu.trace_start"() <{level = 10 : i32, message = "bqk,bkd->bqd"}> : () -> ()
    %cst_71 = arith.constant dense<0.000000e+00> : vector<2x16x32xf32>
    %256 = tpu.matmul %255, %243, %cst_71 {dimension_numbers = #tpu.dot_dimension_numbers<[2], [1], [1], [2], [0, 0, 0, 1, 1, 2], [0], [0]>} : vector<2x16x16xbf16>, vector<2x16x32xbf16>, vector<2x16x32xf32> -> vector<2x16x32xf32>
    "tpu.trace_stop"() : () -> ()
    %257 = vector.shape_cast %256 : vector<2x16x32xf32> to vector<32x32xf32>
    %258 = arith.truncf %257 : vector<32x32xf32> to vector<32x32xbf16>
    %259 = vector.extract_strided_slice %212 {offsets = [32, 0], sizes = [32, 128], strides = [1, 1]} : vector<128x128xbf16> to vector<32x128xbf16>
    %cst_72 = arith.constant dense<0.000000e+00> : vector<32x128xf32>
    %260 = tpu.matmul %258, %259, %cst_72 {dimension_numbers = #tpu.dot_dimension_numbers<[1], [0], [0], [1], [0, 0, 1, 1], [], []>} : vector<32x32xbf16>, vector<32x128xbf16>, vector<32x128xf32> -> vector<32x128xf32>
    %261 = arith.addf %237, %260 : vector<32x128xf32>
    %262 = vector.extract_strided_slice %206 {offsets = [0, 0, 64], sizes = [2, 16, 32], strides = [1, 1, 1]} : vector<2x16x128xf32> to vector<2x16x32xf32>
    %263 = arith.truncf %262 : vector<2x16x32xf32> to vector<2x16x32xbf16>
    %264 = vector.extract_strided_slice %208 {offsets = [0, 0, 64], sizes = [2, 16, 32], strides = [1, 1, 1]} : vector<2x16x128xf32> to vector<2x16x32xf32>
    %265 = arith.truncf %264 : vector<2x16x32xf32> to vector<2x16x32xbf16>
    %266 = vector.extract_strided_slice %210 {offsets = [0, 0, 64], sizes = [2, 16, 32], strides = [1, 1, 1]} : vector<2x16x128xf32> to vector<2x16x32xf32>
    %267 = arith.truncf %266 : vector<2x16x32xf32> to vector<2x16x32xbf16>
    "tpu.trace_start"() <{level = 10 : i32, message = "bqd,bkd->bqk"}> : () -> ()
    %cst_73 = arith.constant dense<0.000000e+00> : vector<2x16x16xf32>
    %268 = tpu.matmul %263, %265, %cst_73 {dimension_numbers = #tpu.dot_dimension_numbers<[2], [2], [1], [1], [0, 0, 0, 1, 1, 1], [0], [0]>} : vector<2x16x32xbf16>, vector<2x16x32xbf16>, vector<2x16x16xf32> -> vector<2x16x16xf32>
    "tpu.trace_stop"() : () -> ()
    %cst_74 = arith.constant dense<0xFF800000> : vector<2x16xf32>
    %269 = vector.multi_reduction <maximumf>, %268, %cst_74 [2] : vector<2x16x16xf32> to vector<2x16xf32>
    %270 = vector.shape_cast %269 : vector<2x16xf32> to vector<2x16x1xf32>
    %271 = vector.broadcast %270 : vector<2x16x1xf32> to vector<2x16x16xf32>
    %272 = arith.subf %268, %271 : vector<2x16x16xf32>
    %273 = math.exp %272 : vector<2x16x16xf32>
    %cst_75 = arith.constant dense<0.000000e+00> : vector<2x16xf32>
    %274 = vector.multi_reduction <add>, %273, %cst_75 [2] : vector<2x16x16xf32> to vector<2x16xf32>
    %275 = vector.shape_cast %274 : vector<2x16xf32> to vector<2x16x1xf32>
    %276 = tpu.reciprocal %275 {approx = true} : vector<2x16x1xf32> -> vector<2x16x1xf32>
    %277 = vector.broadcast %276 : vector<2x16x1xf32> to vector<2x16x16xf32>
    %278 = arith.mulf %273, %277 : vector<2x16x16xf32>
    %279 = arith.truncf %278 : vector<2x16x16xf32> to vector<2x16x16xbf16>
    "tpu.trace_start"() <{level = 10 : i32, message = "bqk,bkd->bqd"}> : () -> ()
    %cst_76 = arith.constant dense<0.000000e+00> : vector<2x16x32xf32>
    %280 = tpu.matmul %279, %267, %cst_76 {dimension_numbers = #tpu.dot_dimension_numbers<[2], [1], [1], [2], [0, 0, 0, 1, 1, 2], [0], [0]>} : vector<2x16x16xbf16>, vector<2x16x32xbf16>, vector<2x16x32xf32> -> vector<2x16x32xf32>
    "tpu.trace_stop"() : () -> ()
    %281 = vector.shape_cast %280 : vector<2x16x32xf32> to vector<32x32xf32>
    %282 = arith.truncf %281 : vector<32x32xf32> to vector<32x32xbf16>
    %283 = vector.extract_strided_slice %212 {offsets = [64, 0], sizes = [32, 128], strides = [1, 1]} : vector<128x128xbf16> to vector<32x128xbf16>
    %cst_77 = arith.constant dense<0.000000e+00> : vector<32x128xf32>
    %284 = tpu.matmul %282, %283, %cst_77 {dimension_numbers = #tpu.dot_dimension_numbers<[1], [0], [0], [1], [0, 0, 1, 1], [], []>} : vector<32x32xbf16>, vector<32x128xbf16>, vector<32x128xf32> -> vector<32x128xf32>
    %285 = arith.addf %261, %284 : vector<32x128xf32>
    %286 = vector.extract_strided_slice %206 {offsets = [0, 0, 96], sizes = [2, 16, 32], strides = [1, 1, 1]} : vector<2x16x128xf32> to vector<2x16x32xf32>
    %287 = arith.truncf %286 : vector<2x16x32xf32> to vector<2x16x32xbf16>
    %288 = vector.extract_strided_slice %208 {offsets = [0, 0, 96], sizes = [2, 16, 32], strides = [1, 1, 1]} : vector<2x16x128xf32> to vector<2x16x32xf32>
    %289 = arith.truncf %288 : vector<2x16x32xf32> to vector<2x16x32xbf16>
    %290 = vector.extract_strided_slice %210 {offsets = [0, 0, 96], sizes = [2, 16, 32], strides = [1, 1, 1]} : vector<2x16x128xf32> to vector<2x16x32xf32>
    %291 = arith.truncf %290 : vector<2x16x32xf32> to vector<2x16x32xbf16>
    "tpu.trace_start"() <{level = 10 : i32, message = "bqd,bkd->bqk"}> : () -> ()
    %cst_78 = arith.constant dense<0.000000e+00> : vector<2x16x16xf32>
    %292 = tpu.matmul %287, %289, %cst_78 {dimension_numbers = #tpu.dot_dimension_numbers<[2], [2], [1], [1], [0, 0, 0, 1, 1, 1], [0], [0]>} : vector<2x16x32xbf16>, vector<2x16x32xbf16>, vector<2x16x16xf32> -> vector<2x16x16xf32>
    "tpu.trace_stop"() : () -> ()
    %cst_79 = arith.constant dense<0xFF800000> : vector<2x16xf32>
    %293 = vector.multi_reduction <maximumf>, %292, %cst_79 [2] : vector<2x16x16xf32> to vector<2x16xf32>
    %294 = vector.shape_cast %293 : vector<2x16xf32> to vector<2x16x1xf32>
    %295 = vector.broadcast %294 : vector<2x16x1xf32> to vector<2x16x16xf32>
    %296 = arith.subf %292, %295 : vector<2x16x16xf32>
    %297 = math.exp %296 : vector<2x16x16xf32>
    %cst_80 = arith.constant dense<0.000000e+00> : vector<2x16xf32>
    %298 = vector.multi_reduction <add>, %297, %cst_80 [2] : vector<2x16x16xf32> to vector<2x16xf32>
    %299 = vector.shape_cast %298 : vector<2x16xf32> to vector<2x16x1xf32>
    %300 = tpu.reciprocal %299 {approx = true} : vector<2x16x1xf32> -> vector<2x16x1xf32>
    %301 = vector.broadcast %300 : vector<2x16x1xf32> to vector<2x16x16xf32>
    %302 = arith.mulf %297, %301 : vector<2x16x16xf32>
    %303 = arith.truncf %302 : vector<2x16x16xf32> to vector<2x16x16xbf16>
    "tpu.trace_start"() <{level = 10 : i32, message = "bqk,bkd->bqd"}> : () -> ()
    %cst_81 = arith.constant dense<0.000000e+00> : vector<2x16x32xf32>
    %304 = tpu.matmul %303, %291, %cst_81 {dimension_numbers = #tpu.dot_dimension_numbers<[2], [1], [1], [2], [0, 0, 0, 1, 1, 2], [0], [0]>} : vector<2x16x16xbf16>, vector<2x16x32xbf16>, vector<2x16x32xf32> -> vector<2x16x32xf32>
    "tpu.trace_stop"() : () -> ()
    %305 = vector.shape_cast %304 : vector<2x16x32xf32> to vector<32x32xf32>
    %306 = arith.truncf %305 : vector<32x32xf32> to vector<32x32xbf16>
    %307 = vector.extract_strided_slice %212 {offsets = [96, 0], sizes = [32, 128], strides = [1, 1]} : vector<128x128xbf16> to vector<32x128xbf16>
    %cst_82 = arith.constant dense<0.000000e+00> : vector<32x128xf32>
    %308 = tpu.matmul %306, %307, %cst_82 {dimension_numbers = #tpu.dot_dimension_numbers<[1], [0], [0], [1], [0, 0, 1, 1], [], []>} : vector<32x32xbf16>, vector<32x128xbf16>, vector<32x128xf32> -> vector<32x128xf32>
    %309 = arith.addf %285, %308 : vector<32x128xf32>
    %310 = arith.addf %186, %309 : vector<32x128xf32>
    %311 = vector.broadcast %190 : vector<1x128xf32> to vector<32x128xf32>
    %312 = arith.addf %310, %311 : vector<32x128xf32>
    %cst_83 = arith.constant dense<0.000000e+00> : vector<32xf32>
    %313 = vector.multi_reduction <add>, %312, %cst_83 [1] : vector<32x128xf32> to vector<32xf32>
    %314 = vector.shape_cast %313 : vector<32xf32> to vector<32x1xf32>
    %cst_84 = arith.constant 1.280000e+02 : f32
    %315 = vector.broadcast %cst_84 : f32 to vector<32x1xf32>
    %316 = arith.divf %314, %315 : vector<32x1xf32>
    %317 = vector.broadcast %316 : vector<32x1xf32> to vector<32x128xf32>
    %318 = arith.subf %312, %317 : vector<32x128xf32>
    %319 = arith.mulf %318, %318 : vector<32x128xf32>
    %cst_85 = arith.constant dense<0.000000e+00> : vector<32xf32>
    %320 = vector.multi_reduction <add>, %319, %cst_85 [1] : vector<32x128xf32> to vector<32xf32>
    %321 = vector.shape_cast %320 : vector<32xf32> to vector<32x1xf32>
    %cst_86 = arith.constant 1.280000e+02 : f32
    %322 = vector.broadcast %cst_86 : f32 to vector<32x1xf32>
    %323 = arith.divf %321, %322 : vector<32x1xf32>
    %324 = vector.broadcast %316 : vector<32x1xf32> to vector<32x128xf32>
    %325 = arith.subf %312, %324 : vector<32x128xf32>
    %cst_87 = arith.constant 9.99999974E-6 : f32
    %326 = vector.broadcast %cst_87 : f32 to vector<32x1xf32>
    %327 = arith.addf %323, %326 : vector<32x1xf32>
    %328 = math.rsqrt %327 : vector<32x1xf32>
    %329 = vector.broadcast %328 : vector<32x1xf32> to vector<32x128xf32>
    %330 = arith.mulf %325, %329 : vector<32x128xf32>
    %331 = vector.broadcast %191 : vector<1x128xf32> to vector<32x128xf32>
    %332 = arith.mulf %330, %331 : vector<32x128xf32>
    %333 = vector.broadcast %192 : vector<1x128xf32> to vector<32x128xf32>
    %334 = arith.addf %332, %333 : vector<32x128xf32>
    %335 = arith.truncf %334 : vector<32x128xf32> to vector<32x128xbf16>
    %c1_88 = arith.constant 1 : index
    %c0_89 = arith.constant 0 : index
    %c0_90 = arith.constant 0 : index
    %336 = vector.load %arg4[%c1_88, %c0_89, %c0_90] : memref<2x128x256xbf16, #tpu.memory_space<vmem>>, vector<1x128x256xbf16>
    %337 = vector.shape_cast %336 : vector<1x128x256xbf16> to vector<128x256xbf16>
    %cst_91 = arith.constant dense<0.000000e+00> : vector<32x256xf32>
    %338 = tpu.matmul %335, %337, %cst_91 {dimension_numbers = #tpu.dot_dimension_numbers<[1], [0], [0], [1], [0, 0, 1, 1], [], []>} : vector<32x128xbf16>, vector<128x256xbf16>, vector<32x256xf32> -> vector<32x256xf32>
    %339 = vector.broadcast %193 : vector<1x256xf32> to vector<32x256xf32>
    %340 = arith.addf %338, %339 : vector<32x256xf32>
    %cst_92 = arith.constant 0.000000e+00 : f32
    %341 = vector.broadcast %cst_92 : f32 to vector<32x256xf32>
    %342 = arith.maximumf %340, %341 : vector<32x256xf32>
    %343 = arith.truncf %342 : vector<32x256xf32> to vector<32x256xbf16>
    %c1_93 = arith.constant 1 : index
    %c0_94 = arith.constant 0 : index
    %c0_95 = arith.constant 0 : index
    %344 = vector.load %arg5[%c1_93, %c0_94, %c0_95] : memref<2x256x128xbf16, #tpu.memory_space<vmem>>, vector<1x256x128xbf16>
    %345 = vector.shape_cast %344 : vector<1x256x128xbf16> to vector<256x128xbf16>
    %cst_96 = arith.constant dense<0.000000e+00> : vector<32x128xf32>
    %346 = tpu.matmul %343, %345, %cst_96 {dimension_numbers = #tpu.dot_dimension_numbers<[1], [0], [0], [1], [0, 0, 1, 1], [], []>} : vector<32x256xbf16>, vector<256x128xbf16>, vector<32x128xf32> -> vector<32x128xf32>
    %347 = vector.broadcast %194 : vector<1x128xf32> to vector<32x128xf32>
    %348 = arith.addf %346, %347 : vector<32x128xf32>
    %349 = arith.addf %334, %348 : vector<32x128xf32>
    %cst_97 = arith.constant dense<0.000000e+00> : vector<32xf32>
    %350 = vector.multi_reduction <add>, %349, %cst_97 [1] : vector<32x128xf32> to vector<32xf32>
    %351 = vector.shape_cast %350 : vector<32xf32> to vector<32x1xf32>
    %cst_98 = arith.constant 1.280000e+02 : f32
    %352 = vector.broadcast %cst_98 : f32 to vector<32x1xf32>
    %353 = arith.divf %351, %352 : vector<32x1xf32>
    %354 = vector.broadcast %353 : vector<32x1xf32> to vector<32x128xf32>
    %355 = arith.subf %349, %354 : vector<32x128xf32>
    %356 = arith.mulf %355, %355 : vector<32x128xf32>
    %cst_99 = arith.constant dense<0.000000e+00> : vector<32xf32>
    %357 = vector.multi_reduction <add>, %356, %cst_99 [1] : vector<32x128xf32> to vector<32xf32>
    %358 = vector.shape_cast %357 : vector<32xf32> to vector<32x1xf32>
    %cst_100 = arith.constant 1.280000e+02 : f32
    %359 = vector.broadcast %cst_100 : f32 to vector<32x1xf32>
    %360 = arith.divf %358, %359 : vector<32x1xf32>
    %361 = vector.broadcast %353 : vector<32x1xf32> to vector<32x128xf32>
    %362 = arith.subf %349, %361 : vector<32x128xf32>
    %cst_101 = arith.constant 9.99999974E-6 : f32
    %363 = vector.broadcast %cst_101 : f32 to vector<32x1xf32>
    %364 = arith.addf %360, %363 : vector<32x1xf32>
    %365 = math.rsqrt %364 : vector<32x1xf32>
    %366 = vector.broadcast %365 : vector<32x1xf32> to vector<32x128xf32>
    %367 = arith.mulf %362, %366 : vector<32x128xf32>
    %368 = vector.broadcast %195 : vector<1x128xf32> to vector<32x128xf32>
    %369 = arith.mulf %367, %368 : vector<32x128xf32>
    %370 = vector.broadcast %196 : vector<1x128xf32> to vector<32x128xf32>
    %371 = arith.addf %369, %370 : vector<32x128xf32>
    %372 = vector.shape_cast %371 : vector<32x128xf32> to vector<2x16x128xf32>
    %c0_102 = arith.constant 0 : index
    %c0_103 = arith.constant 0 : index
    %c0_104 = arith.constant 0 : index
    %373 = vector.load %arg7[%c0_102, %c0_103, %c0_104] : memref<2x16x128xf32, #tpu.memory_space<vmem>>, vector<2x16x128xf32>
    tpu.vector_store %arg7[%c0_102, %c0_103, %c0_104], %372 {strides = array<i32>} : memref<2x16x128xf32, #tpu.memory_space<vmem>>, vector<2x16x128xf32>,
    return
  }
  func.func @transform_0(%arg0: i32) -> (i32, i32, i32) {
    %c0_i32 = arith.constant 0 : i32
    %c0_i32_0 = arith.constant 0 : i32
    %c0_i32_1 = arith.constant 0 : i32
    %c0_i32_2 = arith.constant 0 : i32
    return %c0_i32, %c0_i32_0, %c0_i32_1 : i32, i32, i32
  }
  func.func @transform_1(%arg0: i32) -> (i32, i32, i32) {
    %c0_i32 = arith.constant 0 : i32
    %c0_i32_0 = arith.constant 0 : i32
    %c0_i32_1 = arith.constant 0 : i32
    %c0_i32_2 = arith.constant 0 : i32
    return %c0_i32, %c0_i32_0, %c0_i32_1 : i32, i32, i32
  }
  func.func @transform_2(%arg0: i32) -> (i32, i32, i32) {
    %c0_i32 = arith.constant 0 : i32
    %c0_i32_0 = arith.constant 0 : i32
    %c0_i32_1 = arith.constant 0 : i32
    %c0_i32_2 = arith.constant 0 : i32
    return %c0_i32, %c0_i32_0, %c0_i32_1 : i32, i32, i32
  }
  func.func @transform_3(%arg0: i32) -> (i32, i32, i32) {
    %c0_i32 = arith.constant 0 : i32
    %c0_i32_0 = arith.constant 0 : i32
    %c0_i32_1 = arith.constant 0 : i32
    %c0_i32_2 = arith.constant 0 : i32
    return %c0_i32, %c0_i32_0, %c0_i32_1 : i32, i32, i32
  }
  func.func @transform_4(%arg0: i32) -> (i32, i32, i32) {
    %c0_i32 = arith.constant 0 : i32
    %c0_i32_0 = arith.constant 0 : i32
    %c0_i32_1 = arith.constant 0 : i32
    %c0_i32_2 = arith.constant 0 : i32
    return %c0_i32, %c0_i32_0, %c0_i32_1 : i32, i32, i32
  }
  func.func @transform_5(%arg0: i32) -> (i32, i32, i32) {
    %c0_i32 = arith.constant 0 : i32
    %c0_i32_0 = arith.constant 0 : i32
    %c0_i32_1 = arith.constant 0 : i32
    %c0_i32_2 = arith.constant 0 : i32
    return %c0_i32, %c0_i32_0, %c0_i32_1 : i32, i32, i32
  }
  func.func @transform_6(%arg0: i32) -> (i32, i32, i32) {
    %c0_i32 = arith.constant 0 : i32
    %c0_i32_0 = arith.constant 0 : i32
    %c0_i32_1 = arith.constant 0 : i32
    %c0_i32_2 = arith.constant 0 : i32
    return %c0_i32, %c0_i32_0, %c0_i32_1 : i32, i32, i32
  }
}

</mosaic_0001>

<bundles_post_ra>
// kernel: transformer_layer_sequence.1
= control target key start
LH: loop header
LB: loop body
LE: loop exit
PB: predicated region body
PF: predicated region fallthrough
CT: control target
= control target key end

     0   :  { %11 = vsyncpa [#allocation3], 0  ;;  %s4900_s0 = inlined_call_operand.hbm [shape: f32[2,16,128], index: 0, kind: input, shape index: {}]   ;;  %s4901_s1 = inlined_call_operand.hbm [shape: bf16[2,128,384], index: 1, kind: input, shape index: {}]   ;;  %s4902_s2 = inlined_call_operand.hbm [shape: bf16[2,128,128], index: 2, kind: input, shape index: {}]   ;;  %s4903_s3 = inlined_call_operand.hbm [shape: bf16[2,128,256], index: 3, kind: input, shape index: {}]   ;;  %s4904_s4 = inlined_call_operand.hbm [shape: bf16[2,256,128], index: 4, kind: input, shape index: {}]   ;;  %s4905_s5 = inlined_call_operand.hbm [shape: f32[2,8,384], index: 5, kind: input, shape index: {}]   ;;  %s4906_s6 = inlined_call_operand.hbm [shape: f32[2,16,128], index: 6, kind: output, shape index: {}]  }
   0x1   :  { %12 = vsyncpa [#allocation6], 0 }
   0x2   :  { %13 = vsyncpa [#allocation9], 0 }
   0x3   :  { %14 = vsyncpa [#allocation12], 0  ;;  %s33_s23 = sshll.u32 %s4901_s1, 4  ;;  %s34_s23 = int_to_ptr.hbm [resolvable:$true] %s33_s23 }
   0x4   :  { %15 = vsyncpa [#allocation4], 0  ;;  %s4279_s24 = smov [#allocation5]   ;;  %s4280_s26 = smov 192  }
   0x5   :  { %s35_s25 = sshll.u32 %s4279_s24, 4  ;;  %s4281_s27 = smov 12   ;;  %s36_s25 = int_to_ptr.vmem [resolvable:$true] %s35_s25 }
   0x6   :  { %41 = dma.hbm_to_vmem [thread:$0]  %s34_s23, 6144, %s36_s25, [#allocation6], %s4280_s26, %s4280_s26, %s4281_s27  }
   0x7   :  { %s59_s30 = sshll.u32 %s4903_s3, 4  ;;  %s4282_s7 = smov [#allocation8]   ;;  %s60_s30 = int_to_ptr.hbm [resolvable:$true] %s59_s30 }
   0x8   :  { %s61_s8 = sshll.u32 %s4282_s7, 4  ;;  %s20_s11 = sshll.u32 %s4900_s0, 4  ;;  %s62_s8 = int_to_ptr.vmem [resolvable:$true] %s61_s8  ;;  %s21_s11 = int_to_ptr.hbm [resolvable:$true] %s20_s11 }
   0x9   :  { %s4283_s1 = smov 128   ;;  %s4284_s12 = smov 8  }
   0xa   :  { %67 = dma.hbm_to_vmem [thread:$0]  %s60_s30, 4096, %s62_s8, [#allocation9], %s4283_s1, %s4283_s1, %s4284_s12  }
   0xb   :  { %s46_s15 = sshll.u32 %s4902_s2, 4  ;;  %s4285_s3 = smov [#allocation2]   ;;  %s47_s15 = int_to_ptr.hbm [resolvable:$true] %s46_s15 }
   0xc   :  { %s22_s16 = sshll.u32 %s4285_s3, 4  ;;  %s4286_s0 = smov [#allocation7]   ;;  %s23_s16 = int_to_ptr.vmem [resolvable:$true] %s22_s16 }
   0xd   :  { %28 = dma.hbm_to_vmem [thread:$0]  %s21_s11, 512, %s23_s16, [#allocation3], %s4283_s1, %s4283_s1, %s4284_s12  }
   0xe   :  { %s48_s17 = sshll.u32 %s4286_s0, 4  ;;  %s4287_s18 = smov 64   ;;  %s49_s17 = int_to_ptr.vmem [resolvable:$true] %s48_s17 }
   0xf   :  { %s4288_s19 = smov 4   ;;  %s72_s2 = sshll.u32 %s4904_s4, 4  ;;  %s73_s2 = int_to_ptr.hbm [resolvable:$true] %s72_s2 }
  0x10   :  { %54 = dma.hbm_to_vmem [thread:$0]  %s47_s15, 2048, %s49_s17, [#allocation6], %s4287_s18, %s4287_s18, %s4288_s19  }
  0x11   :  { %s4289_s22 = smov [#allocation10]   ;;  %s85_s26 = sshll.u32 %s4905_s5, 4  ;;  %s86_s26 = int_to_ptr.hbm [resolvable:$true] %s85_s26 }
  0x12   :  { %s74_s23 = sshll.u32 %s4289_s22, 4  ;;  %s4290_s27 = smov [#allocation11]   ;;  %s75_s23 = int_to_ptr.vmem [resolvable:$true] %s74_s23 }
  0x13   :  { %80 = dma.hbm_to_vmem [thread:$0]  %s73_s2, 4096, %s75_s23, [#allocation9], %s4287_s18, %s4287_s18, %s4288_s19  }
  0x14   :  { %s87_s28 = sshll.u32 %s4290_s27, 4  ;;  %s4291_s29 = smov 384   ;;  %s88_s28 = int_to_ptr.vmem [resolvable:$true] %s87_s28 }
  0x15   :  { %s4292_s30 = smov 24  }
  0x16   :  { %93 = dma.hbm_to_vmem [thread:$0]  %s86_s26, 768, %s88_s28, [#allocation12], %s4291_s29, %s4291_s29, %s4292_s30  }
  0x17   :  { %4269 = dma.done.wait [#allocation3], 512  }
  0x18   :  { %4270 = vsyncadd [#allocation3], 4294966784 }
  0x19   :  { %4271 = dma.done.wait [#allocation6], 8192  }
  0x1a   :  { %4272 = vsyncadd [#allocation6], 4294959104 }
  0x1b   :  { %4273 = dma.done.wait [#allocation9], 8192  }
  0x1c   :  { %4274 = vsyncadd [#allocation9], 4294959104 }
  0x1d   :  { %4275 = dma.done.wait [#allocation12], 768  }
  0x1e   :  { %4276 = vsyncadd [#allocation12], 4294966528  ;;  %v3315_v0 = vld [vmem:[#allocation5 + $0xa8] sm:$0xf]  ;;  %v3811_v1 = vld [vmem:[#allocation5 + $0xb0] sm:$0xf0] }
  0x1f   :  { %v3810_v2 = vld [vmem:[#allocation5 + $0xac] sm:$0xf]  ;;  %v3316_v3 = vor.u32 %v3811_v1, %v3315_v0  ;;  %v3317_v4 = vld [vmem:[#allocation5 + $0xb4] sm:$0xf0]  ;;  %v3303_v5 = vld [vmem:[#allocation5 + $0x90] sm:$0xf] }
  0x20   :  { %v3808_v6 = vld [vmem:[#allocation5 + $0x98] sm:$0xf0]  ;;  %v3320_v7 = vor.u32 %v3810_v2, %v3317_v4  ;;  %v3807_v8 = vld [vmem:[#allocation5 + $0x94] sm:$0xf]  ;;  %v3305_v9 = vld [vmem:[#allocation5 + $0x9c] sm:$0xf0] }
  0x21   :  { %291 = vmatpush.bf16.msra.mxu0 %v3316_v3  ;;  %v3304_v10 = vor.u32 %v3808_v6, %v3303_v5  ;;  %v3308_v11 = vor.u32 %v3807_v8, %v3305_v9  ;;  %v3291_v12 = vld [vmem:[#allocation5 + $0x78] sm:$0xf]  ;;  %v3805_v13 = vld [vmem:[#allocation5 + $0x80] sm:$0xf0]  ;;  %v3804_v14 = vld [vmem:[#allocation5 + $0x7c] sm:$0xf] }
  0x22   :  { %310 = vmatpush.bf16.msra.mxu1 %v3320_v7  ;;  %v3293_v15 = vld [vmem:[#allocation5 + $0x84] sm:$0xf0]  ;;  %v3292_v16 = vor.u32 %v3805_v13, %v3291_v12  ;;  %v3279_v18 = vld [vmem:[#allocation5 + $0x60] sm:$0xf]  ;;  %v3802_v19 = vld [vmem:[#allocation5 + $0x68] sm:$0xf0] }
  0x23   :  { %v3296_v17 = vor.u32 %v3804_v14, %v3293_v15  ;;  %v3801_v20 = vld [vmem:[#allocation5 + $0x64] sm:$0xf]  ;;  %v3281_v21 = vld [vmem:[#allocation5 + $0x6c] sm:$0xf0]  ;;  %v3280_v22 = vor.u32 %v3802_v19, %v3279_v18  ;;  %v3267_v23 = vld [vmem:[#allocation5 + $0x48] sm:$0xf] }
  0x24   :  { %v3323_v24 = vld [vmem:[#allocation5 + $0xb0] sm:$0xf]  ;;  %v3812_v25 = vld [vmem:[#allocation5 + $0xb8] sm:$0xf0]  ;;  %v3284_v26 = vor.u32 %v3801_v20, %v3281_v21  ;;  %v3799_v27 = vld [vmem:[#allocation5 + $0x50] sm:$0xf0] }
  0x25   :  { %292 = vmatpush.bf16.msra.mxu0 %v3304_v10  ;;  %v3324_v28 = vor.u32 %v3812_v25, %v3323_v24  ;;  %v3311_v29 = vld [vmem:[#allocation5 + $0x98] sm:$0xf]  ;;  %v3809_v30 = vld [vmem:[#allocation5 + $0xa0] sm:$0xf0]  ;;  %v3798_v31 = vld [vmem:[#allocation5 + $0x4c] sm:$0xf]  ;;  %v3268_v34 = vor.u32 %v3799_v27, %v3267_v23 }
  0x26   :  { %311 = vmatpush.bf16.msra.mxu1 %v3308_v11  ;;  %v3269_v32 = vld [vmem:[#allocation5 + $0x54] sm:$0xf0]  ;;  %v3312_v33 = vor.u32 %v3809_v30, %v3311_v29  ;;  %v3299_v35 = vld [vmem:[#allocation5 + $0x80] sm:$0xf]  ;;  %v3806_v36 = vld [vmem:[#allocation5 + $0x88] sm:$0xf0] }
  0x27   :  { %329 = vmatpush.bf16.msra.mxu2 %v3324_v28  ;;  %v3272_v37 = vor.u32 %v3798_v31, %v3269_v32  ;;  %v3255_v38 = vld [vmem:[#allocation5 + $0x30] sm:$0xf]  ;;  %v3796_v39 = vld [vmem:[#allocation5 + $0x38] sm:$0xf0]  ;;  %v3795_v40 = vld [vmem:[#allocation5 + $0x34] sm:$0xf]  ;;  %v3300_v42 = vor.u32 %v3806_v36, %v3299_v35 }
  0x28   :  { %v3257_v41 = vld [vmem:[#allocation5 + $0x3c] sm:$0xf0]  ;;  %v3256_v43 = vor.u32 %v3796_v39, %v3255_v38  ;;  %v3287_v44 = vld [vmem:[#allocation5 + $0x68] sm:$0xf]  ;;  %v3803_v45 = vld [vmem:[#allocation5 + $0x70] sm:$0xf0] }
  0x29   :  { %293 = vmatpush.bf16.msra.mxu0 %v3292_v16  ;;  %v3260_v46 = vor.u32 %v3795_v40, %v3257_v41  ;;  %v3243_v47 = vld [vmem:[#allocation5 + $0x18] sm:$0xf]  ;;  %v3793_v48 = vld [vmem:[#allocation5 + $0x20] sm:$0xf0]  ;;  %v3792_v49 = vld [vmem:[#allocation5 + $0x1c] sm:$0xf]  ;;  %v3288_v51 = vor.u32 %v3803_v45, %v3287_v44 }
  0x2a   :  { %312 = vmatpush.bf16.msra.mxu1 %v3296_v17  ;;  %v3245_v50 = vld [vmem:[#allocation5 + $0x24] sm:$0xf0]  ;;  %v3244_v52 = vor.u32 %v3793_v48, %v3243_v47  ;;  %v3275_v53 = vld [vmem:[#allocation5 + $0x50] sm:$0xf]  ;;  %v3800_v54 = vld [vmem:[#allocation5 + $0x58] sm:$0xf0] }
  0x2b   :  { %330 = vmatpush.bf16.msra.mxu2 %v3312_v33  ;;  %v3248_v55 = vor.u32 %v3792_v49, %v3245_v50  ;;  %v3231_v56 = vld [vmem:[#allocation5] sm:$0xf]  ;;  %v3790_v57 = vld [vmem:[#allocation5 + $0x8] sm:$0xf0]  ;;  %v3789_v58 = vld [vmem:[#allocation5 + $0x4] sm:$0xf]  ;;  %v3276_v61 = vor.u32 %v3800_v54, %v3275_v53 }
  0x2c   :  { %v3233_v59 = vld [vmem:[#allocation5 + $0xc] sm:$0xf0]  ;;  %v4360_v60 = vld [vmem:[#allocation2] sm:$0xff]  ;;  %v3232_v62 = vor.u32 %v3790_v57, %v3231_v56  ;;  %v4362_v63 = vld [vmem:[#allocation2 + $0x8] sm:$0xff]  ;;  %vm390_vm0 = vcmask 261120   ;;  %s4293_s4 = smov 96  }
  0x2d   :  { %294 = vmatpush.bf16.msra.mxu0 %v3280_v22  ;;  %v3263_v0 = vld [vmem:[#allocation5 + $0x38] sm:$0xf]  ;;  %v3797_v1 = vld [vmem:[#allocation5 + $0x40] sm:$0xf0]  ;;  %v3236_v2 = vor.u32 %v3789_v58, %v3233_v59  ;;  %v126_v3 = vpack.c.bf16 %v4362_v63, %v4360_v60  ;;  %v3251_v5 = vld [vmem:[#allocation5 + $0x20] sm:$0xf] }
  0x2e   :  { %313 = vmatpush.bf16.msra.mxu1 %v3284_v26  ;;  %v3264_v4 = vor.u32 %v3797_v1, %v3263_v0  ;;  %v3794_v6 = vld [vmem:[#allocation5 + $0x28] sm:$0xf0]  ;;  %v3239_v8 = vld [vmem:[#allocation5 + $0x8] sm:$0xf]  ;;  %v3791_v9 = vld [vmem:[#allocation5 + $0x10] sm:$0xf0] }
  0x2f   :  { %331 = vmatpush.bf16.msra.mxu2 %v3300_v42  ;;  %v3252_v7 = vor.u32 %v3794_v6, %v3251_v5  ;;  %v3240_v10 = vor.u32 %v3791_v9, %v3239_v8  ;;  %v4366_v11 = vld [vmem:[#allocation2 + $0x10] sm:$0xff]  ;;  %v4368_v12 = vld [vmem:[#allocation2 + $0x18] sm:$0xff]  ;;  %v124_v14 = vld [vmem:[#allocation11 + $0x8] sm:$0xff]  ;;  %vm441_vm1 = vcmask 130048   ;;  %s4294_s5 = smov 32   ;;  %s4296_s7 = smov [#allocation13]  }
  0x30   :  { %v127_v13 = vpack.c.bf16 %v4368_v12, %v4366_v11  ;;  %v161_v17 = vperm.slane %v124_v14, 0  ;;  %v4372_v18 = vld [vmem:[#allocation11] sm:$0xff]  ;;  %v125_v32 = vld [vmem:[#allocation11 + $0x10] sm:$0xff]  ;;  %s3211_s8 = sshll.u32 %s4296_s7, 4  ;;  %s3213_s11 = sshll.u32 %s4906_s6, 4  ;;  %s3212_s8 = int_to_ptr.vmem [resolvable:$true] %s3211_s8  ;;  %s3214_s11 = int_to_ptr.hbm [resolvable:$true] %s3213_s11 }
  0x31   :  { %295 = vmatpush.bf16.msra.mxu0 %v3268_v34  ;;  %v160_v19 = vperm.slane %v4372_v18, 0  ;;  %v4381_v40 = vperm.slane %v125_v32, 0 }
  0x32   :  { %314 = vmatpush.bf16.msra.mxu1 %v3272_v37 }
  0x33   :  { %332 = vmatpush.bf16.msra.mxu2 %v3288_v51 }
  0x35   :  { %296 = vmatpush.bf16.msra.mxu0 %v3256_v43 }
  0x36   :  { %315 = vmatpush.bf16.msra.mxu1 %v3260_v46 }
  0x37   :  { %333 = vmatpush.bf16.msra.mxu2 %v3276_v61 }
  0x39   :  { %297 = vmatpush.bf16.msra.mxu0 %v3244_v52 }
  0x3a   :  { %316 = vmatpush.bf16.msra.mxu1 %v3248_v55 }
  0x3b   :  { %334 = vmatpush.bf16.msra.mxu2 %v3264_v4 }
  0x3d   :  { %298 = vmatpush.bf16.msra.mxu0 %v3232_v62 }
  0x3e   :  { %317 = vmatpush.bf16.msra.mxu1 %v3236_v2 }
  0x3f   :  { %335 = vmatpush.bf16.msra.mxu2 %v3252_v7 }
  0x40   :  { %299 = vmatmul.bf16.vlgmr.msra.gmra.mxu0 %v126_v3 }
  0x41   :  { %318 = vmatmul.bf16.vlgmr.msra.gmra.mxu1 %v126_v3 }
  0x43   :  { %336 = vmatpush.bf16.msra.mxu2 %v3240_v10 }
  0x46   :  { %337 = vmatmul.bf16.vlgmr.msra.gmra.mxu2 %v126_v3 }
  0x50   :  { %304 = vmatmul.bf16.gmra.mxu0 %v127_v13 }
  0x51   :  { %323 = vmatmul.bf16.gmra.mxu1 %v127_v13 }
  0x56   :  { %342 = vmatmul.bf16.gmra.mxu2 %v127_v13 }
  0xbd   :  { %v300_v15 = vpop.f32.mrf.mxu0 }
  0xbe   :  { %v319_v16 = vpop.f32.mrf.mxu1  ;;  %v301_v24 = vadd.f32 %v300_v15, %v160_v19 }
  0xbf   :  { %v320_v20 = vadd.f32 %v319_v16, %v161_v17 }
  0xc0   :  { %v348_v29 = vmul.f32 0.17677669, %v301_v24 }
  0xc1   :  { %v372_v25 = vpack.c.bf16 %v320_v20, %v320_v20 }
  0xc2   :  { %v368_v38 = vpack.c.bf16 %v348_v29, %v348_v29 }
  0xc3   :  { %v387_v30 = vunpack.c.l.b16 %v372_v25 }
  0xc4   :  { %v382_v44 = vunpack.c.l.b16 %v368_v38 }
  0xc5   :  { %v302_v21 = vpop.f32.mrf.mxu0 }
  0xc6   :  { %v303_v22 = vadd.f32 %v302_v21, %v160_v19  ;;  %v321_v23 = vpop.f32.mrf.mxu1 }
  0xc7   :  { %v322_v26 = vadd.f32 %v321_v23, %v161_v17 }
  0xc8   :  { %v349_v27 = vmul.f32 0.17677669, %v303_v22 }
  0xc9   :  { %v373_v28 = vpack.c.bf16 %v322_v26, %v322_v26  ;;  %v338_v37 = vpop.f32.mrf.mxu2 }
  0xca   :  { %v369_v33 = vpack.c.bf16 %v349_v27, %v349_v27  ;;  %v339_v45 = vadd.f32 %v338_v37, %v4381_v40 }
  0xcb   :  { %v388_v31 = vunpack.c.l.b16 %v373_v28 }
  0xcc   :  { %v383_v41 = vunpack.c.l.b16 %v369_v33  ;;  %v376_v54 = vpack.c.bf16 %v339_v45, %v339_v45 }
  0xcd   :  { %v4375_v34 = vpack.c.b16 %v388_v31, %v387_v30  ;;  %v305_v35 = vpop.f32.mrf.mxu0 }
  0xce   :  { %v324_v36 = vpop.f32.mrf.mxu1  ;;  %v306_v43 = vadd.f32 %v305_v35, %v160_v19  ;;  %v4384_v46 = vpack.c.b16 %v383_v41, %v382_v44  ;;  %v497_v1 = vunpack.c.l.b16 %v376_v54 }
  0xcf   :  { %550 = vrot.lane.b32.xlu0 %v4375_v34, %s4293_s4  ;;  %v395_v39 = vsel %vm390_vm0, %v4375_v34, 0  ;;  %v325_v42 = vadd.f32 %v324_v36, %v161_v17 }
  0xd0   :  { %404 = vmatpush.bf16.xpose.msra.mxu3 %v395_v39  ;;  %v350_v49 = vmul.f32 0.17677669, %v306_v43 }
  0xd1   :  { %v374_v47 = vpack.c.bf16 %v325_v42, %v325_v42  ;;  %v340_v52 = vpop.f32.mrf.mxu2 }
  0xd2   :  { %v341_v55 = vadd.f32 %v340_v52, %v4381_v40  ;;  %v370_v61 = vpack.c.bf16 %v350_v49, %v350_v49 }
  0xd3   :  { %v418_v57 = vunpack.c.l.b16 %v374_v47 }
  0xd4   :  { %v377_v59 = vpack.c.bf16 %v341_v55, %v341_v55  ;;  %v413_v4 = vunpack.c.l.b16 %v370_v61 }
  0xd5   :  { %v307_v48 = vpop.f32.mrf.mxu0 }
  0xd6   :  { %v326_v50 = vpop.f32.mrf.mxu1  ;;  %v308_v51 = vadd.f32 %v307_v48, %v160_v19  ;;  %v498_v2 = vunpack.c.l.b16 %v377_v59 }
  0xd7   :  { %548 = vrot.lane.b32.xlu0 %v4384_v46, %s4293_s4  ;;  %3325 = vmatmul.msk.bf16.vlgmr.msra.gmra.mxu3 %vm390_vm0, %v4384_v46  ;;  %v327_v53 = vadd.f32 %v326_v50, %v161_v17 }
  0xd8   :  { %v351_v56 = vmul.f32 0.17677669, %v308_v51  ;;  %v4395_v6 = vpack.c.b16 %v498_v2, %v497_v1 }
  0xd9   :  { %v375_v58 = vpack.c.bf16 %v327_v53, %v327_v53 }
  0xda   :  { %v371_v0 = vpack.c.bf16 %v351_v56, %v351_v56 }
  0xdb   :  { %v419_v62 = vunpack.c.l.b16 %v375_v58 }
  0xdc   :  { %v414_v5 = vunpack.c.l.b16 %v371_v0 }
  0xdd   :  { %v4391_v3 = vpack.c.b16 %v419_v62, %v418_v57 }
  0xde   :  { %v4400_v8 = vpack.c.b16 %v414_v5, %v413_v4 }
  0xdf   :  { %574 = vrot.lane.b32.xlu2 %v4391_v3, %s4293_s4  ;;  %v425_v7 = vsel %vm390_vm0, %v4391_v3, 0 }
  0xe0   :  { %434 = vmatpush.bf16.xpose.msrb.mxu3 %v425_v7 }
  0xe7   :  { %572 = vrot.lane.b32.xlu2 %v4400_v8, %s4293_s4  ;;  %3326 = vmatmul.msk.bf16.vlgmr.msrb.gmra.mxu3 %vm390_vm0, %v4400_v8 }
  0xe8   :  { %511 = vmatpush.bf16.msra.mxu3 %v4395_v6 }
  0xef   :  { %649 = vrot.lane.b32.xlu2 %v4395_v6, %s4293_s4 }
 0x139   :  { %v575_v13 = vpop.permute.xlu2 %574 }
 0x13a   :  { %v580_v25 = vsel %vm390_vm0, %v575_v13, 0 }
 0x13b   :  { %589 = vmatpush.bf16.xpose.msrb.mxu1 %v580_v25 }
 0x141   :  { %v551_v9 = vpop.permute.xlu0 %550  ;;  %v573_v15 = vpop.permute.xlu2 %572 }
 0x142   :  { %v556_v10 = vsel %vm390_vm0, %v551_v9, 0  ;;  %3330 = vmatmul.msk.bf16.vlgmr.msrb.gmra.mxu1 %vm390_vm0, %v573_v15  ;;  %v343_v15 = vpop.f32.mrf.mxu2 }
 0x143   :  { %565 = vmatpush.bf16.xpose.msrb.mxu0 %v556_v10 }
 0x149   :  { %v549_v14 = vpop.permute.xlu0 %548  ;;  %v650_v16 = vpop.permute.xlu2 %649 }
 0x14a   :  { %3329 = vmatmul.msk.bf16.vlgmr.msrb.gmra.mxu0 %vm390_vm0, %v549_v14  ;;  %662 = vmatpush.bf16.msrb.mxu2 %v650_v16  ;;  %v345_v25 = vpop.f32.mrf.mxu2 }
 0x15a   :  { %v406_v17 = vpop.f32.mrf.mxu3 }
 0x15b   :  { %v442_v19 = vsel %vm441_vm1, %v406_v17, -inf }
 0x15c   :  { %443 = vmax.xlane.f32.xlu2 %v442_v19 }
 0x162   :  { %v4411_v20 = vpop.f32.mrf.mxu3 }
 0x163   :  { %v445_v52 = vsel %vm441_vm1, %v4411_v20, -inf }
 0x16a   :  { %v4413_v21 = vpop.f32.mrf.mxu3 }
 0x16b   :  { %v448_v22 = vsel %vm441_vm1, %v4413_v21, -inf }
 0x16c   :  { %449 = vmax.xlane.f32.xlu2 %v448_v22 }
 0x172   :  { %v438_v23 = vpop.f32.mrf.mxu3 }
 0x173   :  { %v451_v24 = vsel %vm441_vm1, %v438_v23, -inf }
 0x174   :  { %452 = vmax.xlane.f32.xlu2 %v451_v24 }
 0x1bf   :  { %v4434_v53 = vpop.f32.mrf.mxu1 }
 0x1c7   :  { %v567_v26 = vpop.f32.mrf.mxu0  ;;  %v593_v56 = vpop.f32.mrf.mxu1 }
 0x1c8   :  { %v596_v27 = vsel %vm441_vm1, %v567_v26, -inf  ;;  %v605_v57 = vsel %vm441_vm1, %v593_v56, -inf }
 0x1c9   :  { %597 = vmax.xlane.f32.xlu1 %v596_v27 }
 0x1cf   :  { %v569_v28 = vpop.f32.mrf.mxu0  ;;  %v444_v42 = vpop.xlane.xlu2 %443 }
 0x1d0   :  { %v599_v29 = vsel %vm441_vm1, %v569_v28, -inf  ;;  %v454_v43 = vsub.f32 %v406_v17, %v444_v42  ;;  %v344_v17 = vadd.f32 %v343_v15, %v4381_v40  ;;  %v3816_v42 = vld [vmem:[#allocation7 + $0x18] sm:$0xff] }
 0x1d1   :  { %600 = vmax.xlane.f32.xlu1 %v599_v29  ;;  %720 = vmatpush.bf16.msra.mxu0 %v3816_v42 }
 0x1d2   :  { %v458_v44 = vmul.f32 1.442695, %v454_v43  ;;  %v378_v24 = vpack.c.bf16 %v344_v17, %v344_v17  ;;  %v3815_v43 = vld [vmem:[#allocation7 + $0x10] sm:$0xff] }
 0x1d4   :  { %v525_v29 = vunpack.c.l.b16 %v378_v24  ;;  %v3814_v24 = vld [vmem:[#allocation7 + $0x8] sm:$0xff] }
 0x1d5   :  { %721 = vmatpush.bf16.msra.mxu0 %v3815_v43  ;;  %757 = vmatpush.bf16.msra.mxu1 %v3814_v24 }
 0x1df   :  { %v450_v45 = vpop.xlane.xlu2 %449 }
 0x1e0   :  { %v456_v22 = vsub.f32 %v4413_v21, %v450_v45 }
 0x1e2   :  { %v462_v27 = vmul.f32 1.442695, %v456_v22 }
 0x1e7   :  { %v453_v49 = vpop.xlane.xlu2 %452 }
 0x1e8   :  { %v457_v50 = vsub.f32 %v438_v23, %v453_v49 }
 0x1ea   :  { %v464_v51 = vmul.f32 1.442695, %v457_v50 }
 0x23c   :  { %v598_v30 = vpop.xlane.xlu1 %597 }
 0x23d   :  { %v608_v31 = vsub.f32 %v567_v26, %v598_v30  ;;  %v346_v26 = vadd.f32 %v345_v25, %v4381_v40  ;;  %v3813_v25 = vld [vmem:[#allocation7] sm:$0xff] }
 0x23e   :  { %758 = vmatpush.bf16.msra.mxu1 %v3813_v25 }
 0x23f   :  { %v612_v32 = vmul.f32 1.442695, %v608_v31  ;;  %v379_v30 = vpack.c.bf16 %v346_v26, %v346_v26 }
 0x241   :  { %3935 = vpow2.f32 %v612_v32  ;;  %v526_v31 = vunpack.c.l.b16 %v379_v30 }
 0x244   :  { %v601_v33 = vpop.xlane.xlu1 %600 }
 0x245   :  { %v609_v35 = vsub.f32 %v569_v28, %v601_v33 }
 0x247   :  { %v3936_v36 = vpop.eup %3935  ;;  %v614_v37 = vmul.f32 1.442695, %v609_v35  ;;  %v4449_v35 = vpack.c.b16 %v526_v31, %v525_v29 }
 0x248   :  { %v620_v38 = vsel %vm441_vm1, %v3936_v36, 0.0 }
 0x249   :  { %3937 = vpow2.f32 %v614_v37  ;;  %621 = vadd.xlane.f32.xlu0 %v620_v38  ;;  %539 = vmatpush.bf16.msrb.mxu3 %v4449_v35 }
 0x24a   :  { %3939 = vpow2.f32 %v458_v44 }
 0x24b   :  { %3941 = vpow2.f32 %v464_v51 }
 0x24f   :  { %v3938_v39 = vpop.eup %3937 }
 0x250   :  { %v623_v41 = vsel %vm441_vm1, %v3938_v39, 0.0  ;;  %v4428_v47 = vpop.eup %3939 }
 0x251   :  { %624 = vadd.xlane.f32.xlu1 %v623_v41  ;;  %v466_v48 = vsel %vm441_vm1, %v4428_v47, 0.0  ;;  %v4436_v54 = vpop.eup %3941 }
 0x252   :  { %v475_v55 = vsel %vm441_vm1, %v4436_v54, 0.0 }
 0x25d   :  { %770 = vrot.lane.b32.xlu0 %v4384_v46, %s4287_s18 }
 0x26a   :  { %772 = vrot.lane.b32.xlu1 %v4375_v34, %s4287_s18 }
 0x287   :  { %467 = vadd.xlane.f32.xlu0 %v466_v48 }
 0x294   :  { %446 = vmax.xlane.f32.xlu1 %v445_v52 }
 0x29b   :  { %674 = vrot.lane.b32.xlu0 %v4449_v35, %s4293_s4 }
 0x29c   :  { %476 = vadd.xlane.f32.xlu1 %v475_v55 }
 0x2a4   :  { %606 = vmax.xlane.f32.xlu1 %v605_v57 }
 0x2bc   :  { %v622_v58 = vpop.xlane.xlu0 %621 }
 0x2bd   :  { %3943 = vrcp.f32 %v622_v58 }
 0x2c3   :  { %v3944_v61 = vpop.eup %3943 }
 0x2c4   :  { %v625_v59 = vpop.xlane.xlu1 %624  ;;  %v636_v62 = vmul.f32 %v3944_v61, %v3936_v36 }
 0x2c5   :  { %3945 = vrcp.f32 %v625_v59 }
 0x2c6   :  { %v640_v1 = vpack.c.bf16 %v636_v62, %v636_v62 }
 0x2c8   :  { %v646_v5 = vunpack.c.l.b16 %v640_v1 }
 0x2cb   :  { %v3946_v0 = vpop.eup %3945 }
 0x2cc   :  { %v637_v2 = vmul.f32 %v3946_v0, %v3938_v39  ;;  %v602_v39 = vsel %vm441_vm1, %v4434_v53, -inf }
 0x2ce   :  { %v641_v4 = vpack.c.bf16 %v637_v2, %v637_v2 }
 0x2cf   :  { %v771_v14 = vpop.permute.xlu0 %770 }
 0x2d0   :  { %v647_v7 = vunpack.c.l.b16 %v641_v4 }
 0x2d2   :  { %v648_v9 = vpack.c.b16 %v647_v7, %v646_v5 }
 0x2d4   :  { %3331 = vmatmul.msk.bf16.vlgmr.msrb.gmra.mxu2 %vm441_vm1, %v648_v9 }
 0x2dc   :  { %v773_v10 = vpop.permute.xlu1 %772 }
 0x2dd   :  { %v778_v13 = vsel %vm390_vm0, %v773_v10, 0 }
 0x2de   :  { %787 = vmatpush.bf16.xpose.msra.mxu2 %v778_v13 }
 0x2e5   :  { %3353 = vmatmul.msk.bf16.vlgmr.msra.gmra.mxu2 %vm390_vm0, %v771_v14 }
 0x2fa   :  { %v468_v52 = vpop.xlane.xlu0 %467 }
 0x307   :  { %v447_v16 = vpop.xlane.xlu1 %446 }
 0x308   :  { %v455_v19 = vsub.f32 %v4411_v20, %v447_v16 }
 0x30a   :  { %v460_v23 = vmul.f32 1.442695, %v455_v19 }
 0x30c   :  { %3947 = vpow2.f32 %v460_v23 }
 0x30d   :  { %3949 = vpow2.f32 %v462_v27 }
 0x30f   :  { %v477_v28 = vpop.xlane.xlu1 %476 }
 0x312   :  { %v3948_v32 = vpop.eup %3947 }
 0x313   :  { %v469_v33 = vsel %vm441_vm1, %v3948_v32, 0.0  ;;  %v3950_v21 = vpop.eup %3949 }
 0x314   :  { %470 = vadd.xlane.f32.xlu2 %v469_v33  ;;  %v472_v37 = vsel %vm441_vm1, %v3950_v21, 0.0 }
 0x317   :  { %v607_v20 = vpop.xlane.xlu1 %606 }
 0x318   :  { %v611_v40 = vsub.f32 %v593_v56, %v607_v20 }
 0x31a   :  { %v618_v36 = vmul.f32 1.442695, %v611_v40 }
 0x31c   :  { %3951 = vpow2.f32 %v618_v36  ;;  %473 = vadd.xlane.f32.xlu2 %v472_v37 }
 0x31d   :  { %3953 = vrcp.f32 %v468_v52 }
 0x322   :  { %v4455_v38 = vpop.eup %3951 }
 0x323   :  { %v629_v41 = vsel %vm441_vm1, %v4455_v38, 0.0  ;;  %v3954_v56 = vpop.eup %3953 }
 0x324   :  { %603 = vmax.xlane.f32.xlu2 %v602_v39  ;;  %630 = vadd.xlane.f32.xlu1 %v629_v41  ;;  %v482_v57 = vmul.f32 %v3954_v56, %v4428_v47 }
 0x326   :  { %v486_v59 = vpack.c.bf16 %v482_v57, %v482_v57 }
 0x328   :  { %v492_v1 = vunpack.c.l.b16 %v486_v59 }
 0x357   :  { %v664_v44 = vpop.f32.mrf.mxu2 }
 0x35f   :  { %v666_v45 = vpop.f32.mrf.mxu2 }
 0x360   :  { %v694_v48 = vpack.c.bf16 %v666_v45, %v664_v44 }
 0x362   :  { %3341 = vmatmul.msk.bf16.vlgmr.msra.gmra.mxu0 %vm390_vm0, %v694_v48 }
 0x368   :  { %v4462_v49 = vpop.f32.mrf.mxu2 }
 0x370   :  { %v791_v50 = vpop.f32.mrf.mxu2 }
 0x371   :  { %v821_v51 = vsel %vm441_vm1, %v791_v50, -inf }
 0x372   :  { %822 = vmax.xlane.f32.xlu1 %v821_v51 }
 0x387   :  { %v471_v55 = vpop.xlane.xlu2 %470 }
 0x388   :  { %3955 = vrcp.f32 %v471_v55 }
 0x38b   :  { %794 = vrot.lane.b32.xlu1 %v4400_v8, %s4287_s18 }
 0x38e   :  { %v3956_v58 = vpop.eup %3955 }
 0x38f   :  { %v483_v61 = vmul.f32 %v3956_v58, %v3948_v32  ;;  %v474_v62 = vpop.xlane.xlu2 %473 }
 0x390   :  { %3957 = vrcp.f32 %v474_v62 }
 0x391   :  { %v487_v0 = vpack.c.bf16 %v483_v61, %v483_v61  ;;  %3959 = vrcp.f32 %v477_v28 }
 0x393   :  { %v493_v2 = vunpack.c.l.b16 %v487_v0  ;;  %961 = vrot.lane.b32.xlu1 %v4375_v34, %s4294_s5 }
 0x395   :  { %v494_v4 = vpack.c.b16 %v493_v2, %v492_v1 }
 0x396   :  { %v3958_v5 = vpop.eup %3957 }
 0x397   :  { %3327 = vmatmul.msk.bf16.vlgmr.msra.gmra.mxu3 %vm441_vm1, %v494_v4  ;;  %v604_v47 = vpop.xlane.xlu2 %603  ;;  %v3960_v7 = vpop.eup %3959  ;;  %v484_v10 = vmul.f32 %v3958_v5, %v3950_v21 }
 0x398   :  { %v610_v9 = vsub.f32 %v4434_v53, %v604_v47  ;;  %v485_v14 = vmul.f32 %v3960_v7, %v4436_v54  ;;  %v675_v54 = vpop.permute.xlu0 %674  ;;  %v631_v23 = vpop.xlane.xlu1 %630 }
 0x399   :  { %v488_v15 = vpack.c.bf16 %v484_v10, %v484_v10  ;;  %687 = vmatpush.bf16.msra.mxu3 %v675_v54 }
 0x39a   :  { %v616_v13 = vmul.f32 1.442695, %v610_v9  ;;  %v489_v16 = vpack.c.bf16 %v485_v14, %v485_v14 }
 0x39b   :  { %959 = vrot.lane.b32.xlu1 %v4384_v46, %s4294_s5  ;;  %v520_v17 = vunpack.c.l.b16 %v488_v15  ;;  %v818_v46 = vsel %vm441_vm1, %v4462_v49, -inf }
 0x39c   :  { %3961 = vpow2.f32 %v616_v13  ;;  %v521_v19 = vunpack.c.l.b16 %v489_v16 }
 0x39e   :  { %v522_v53 = vpack.c.b16 %v521_v19, %v520_v17 }
 0x3a2   :  { %v3962_v34 = vpop.eup %3961 }
 0x3a3   :  { %871 = vrot.lane.b32.xlu1 %v4395_v6, %s4287_s18  ;;  %v626_v22 = vsel %vm441_vm1, %v3962_v34, 0.0 }
 0x3a4   :  { %627 = vadd.xlane.f32.xlu2 %v626_v22 }
 0x3a7   :  { %3328 = vmatmul.msk.bf16.vlgmr.msrb.gmra.mxu3 %vm441_vm1, %v522_v53 }
 0x3ab   :  { %985 = vrot.lane.b32.xlu1 %v4391_v3, %s4294_s5 }
 0x3ac   :  { %819 = vmax.xlane.f32.xlu2 %v818_v46 }
 0x3b3   :  { %983 = vrot.lane.b32.xlu1 %v4400_v8, %s4294_s5 }
 0x3c4   :  { %796 = vrot.lane.b32.xlu2 %v4391_v3, %s4287_s18 }
 0x3e5   :  { %v823_v26 = vpop.xlane.xlu1 %822 }
 0x3e6   :  { %v831_v27 = vsub.f32 %v791_v50, %v823_v26 }
 0x3e8   :  { %v836_v28 = vmul.f32 1.442695, %v831_v27 }
 0x3ea   :  { %3963 = vpow2.f32 %v836_v28 }
 0x3eb   :  { %3965 = vrcp.f32 %v631_v23 }
 0x3f0   :  { %v3964_v29 = vpop.eup %3963 }
 0x3f1   :  { %v845_v30 = vsel %vm441_vm1, %v3964_v29, 0.0  ;;  %v3966_v21 = vpop.eup %3965 }
 0x3f2   :  { %846 = vadd.xlane.f32.xlu2 %v845_v30  ;;  %v639_v36 = vmul.f32 %v3966_v21, %v4455_v38 }
 0x3f4   :  { %v643_v42 = vpack.c.bf16 %v639_v36, %v639_v36 }
 0x3f6   :  { %v672_v52 = vunpack.c.l.b16 %v643_v42 }
 0x3fd   :  { %v795_v31 = vpop.permute.xlu1 %794 }
 0x405   :  { %v962_v8 = vpop.permute.xlu1 %961 }
 0x406   :  { %v967_v32 = vsel %vm390_vm0, %v962_v8, 0  ;;  %v3817_v8 = vld [vmem:[#allocation7 + $0x20] sm:$0xff] }
 0x407   :  { %976 = vmatpush.bf16.xpose.msrb.mxu1 %v967_v32 }
 0x40d   :  { %v960_v3 = vpop.permute.xlu1 %959 }
 0x415   :  { %v872_v33 = vpop.permute.xlu1 %871 }
 0x416   :  { %884 = vmatpush.bf16.msrb.mxu2 %v872_v33 }
 0x417   :  { %v628_v20 = vpop.xlane.xlu2 %627 }
 0x418   :  { %3967 = vrcp.f32 %v628_v20 }
 0x41a   :  { %v513_v40 = vpop.f32.mrf.mxu3 }
 0x41d   :  { %v986_v37 = vpop.permute.xlu1 %985 }
 0x41e   :  { %v3968_v39 = vpop.eup %3967  ;;  %v991_v41 = vsel %vm390_vm0, %v986_v37, 0 }
 0x41f   :  { %v638_v43 = vmul.f32 %v3968_v39, %v3962_v34  ;;  %1000 = vmatpush.bf16.xpose.msra.mxu2 %v991_v41  ;;  %v820_v44 = vpop.xlane.xlu2 %819 }
 0x420   :  { %v830_v45 = vsub.f32 %v4462_v49, %v820_v44 }
 0x421   :  { %v642_v48 = vpack.c.bf16 %v638_v43, %v638_v43 }
 0x422   :  { %v834_v50 = vmul.f32 1.442695, %v830_v45  ;;  %v515_v51 = vpop.f32.mrf.mxu3 }
 0x423   :  { %v671_v55 = vunpack.c.l.b16 %v642_v48  ;;  %v546_v56 = vpack.c.bf16 %v515_v51, %v513_v40 }
 0x424   :  { %3969 = vpow2.f32 %v834_v50 }
 0x425   :  { %v673_v57 = vpack.c.b16 %v672_v52, %v671_v55  ;;  %3351 = vmatmul.msk.bf16.vlgmr.msra.gmra.mxu1 %vm390_vm0, %v546_v56  ;;  %v984_v24 = vpop.permute.xlu1 %983 }
 0x427   :  { %3332 = vmatmul.msk.bf16.vlgmr.msra.gmra.mxu3 %vm441_vm1, %v673_v57  ;;  %v797_v38 = vpop.permute.xlu2 %796 }
 0x428   :  { %v802_v58 = vsel %vm390_vm0, %v797_v38, 0 }
 0x429   :  { %811 = vmatpush.bf16.xpose.msrb.mxu3 %v802_v58 }
 0x42a   :  { %v3970_v59 = vpop.eup %3969  ;;  %v541_v61 = vpop.f32.mrf.mxu3 }
 0x42b   :  { %v842_v49 = vsel %vm441_vm1, %v3970_v59, 0.0 }
 0x42c   :  { %843 = vadd.xlane.f32.xlu0 %v842_v49 }
 0x432   :  { %v543_v62 = vpop.f32.mrf.mxu3 }
 0x433   :  { %v547_v0 = vpack.c.bf16 %v543_v62, %v541_v61 }
 0x435   :  { %3352 = vmatmul.msk.bf16.gmra.mxu1 %vm390_vm0, %v547_v0 }
 0x437   :  { %3354 = vmatmul.msk.bf16.vlgmr.msrb.gmra.mxu3 %vm390_vm0, %v795_v31  ;;  %v3818_v31 = vld [vmem:[#allocation7 + $0x28] sm:$0xff] }
 0x438   :  { %942 = vmatpush.bf16.msrb.mxu0 %v3818_v31 }
 0x43c   :  { %943 = vmatpush.bf16.msrb.mxu0 %v3817_v8 }
 0x445   :  { %3367 = vmatmul.msk.bf16.vlgmr.msrb.gmra.mxu1 %vm390_vm0, %v960_v3 }
 0x465   :  { %v847_v1 = vpop.xlane.xlu2 %846 }
 0x466   :  { %3971 = vrcp.f32 %v847_v1 }
 0x46c   :  { %v3972_v4 = vpop.eup %3971 }
 0x46d   :  { %v859_v47 = vmul.f32 %v3972_v4, %v3964_v29 }
 0x46f   :  { %v863_v9 = vpack.c.bf16 %v859_v47, %v859_v47 }
 0x471   :  { %v869_v16 = vunpack.c.l.b16 %v863_v9 }
 0x49f   :  { %v844_v2 = vpop.xlane.xlu0 %843 }
 0x4a0   :  { %3973 = vrcp.f32 %v844_v2 }
 0x4a2   :  { %v4499_v5 = vpop.f32.mrf.mxu1 }
 0x4a6   :  { %v3974_v7 = vpop.eup %3973 }
 0x4a7   :  { %v858_v10 = vmul.f32 %v3974_v7, %v3970_v59 }
 0x4a9   :  { %v862_v13 = vpack.c.bf16 %v858_v10, %v858_v10 }
 0x4aa   :  { %v689_v14 = vpop.f32.mrf.mxu3  ;;  %v4501_v15 = vpop.f32.mrf.mxu1 }
 0x4ab   :  { %v868_v17 = vunpack.c.l.b16 %v862_v13 }
 0x4ad   :  { %v870_v34 = vpack.c.b16 %v869_v16, %v868_v17 }
 0x4af   :  { %3355 = vmatmul.msk.bf16.vlgmr.msrb.gmra.mxu2 %vm441_vm1, %v870_v34 }
 0x4b2   :  { %v691_v19 = vpop.f32.mrf.mxu3  ;;  %v4504_v22 = vpop.f32.mrf.mxu1 }
 0x4b3   :  { %v695_v53 = vpack.c.bf16 %v691_v19, %v689_v14 }
 0x4b5   :  { %3342 = vmatmul.msk.bf16.gmra.mxu0 %vm390_vm0, %v695_v53 }
 0x4ba   :  { %v4507_v46 = vpop.f32.mrf.mxu1  ;;  %v813_v54 = vpop.f32.mrf.mxu3 }
 0x4bb   :  { %v824_v23 = vsel %vm441_vm1, %v813_v54, -inf }
 0x4bc   :  { %825 = vmax.xlane.f32.xlu0 %v824_v23 }
 0x4bf   :  { %3368 = vmatmul.msk.bf16.vlgmr.msra.gmra.mxu2 %vm390_vm0, %v984_v24 }
 0x4c2   :  { %v815_v25 = vpop.f32.mrf.mxu3  ;;  %v978_v26 = vpop.f32.mrf.mxu1 }
 0x4c3   :  { %v1007_v27 = vsel %vm441_vm1, %v978_v26, -inf  ;;  %v827_v28 = vsel %vm441_vm1, %v815_v25, -inf }
 0x4c4   :  { %1008 = vmax.xlane.f32.xlu1 %v1007_v27  ;;  %828 = vmax.xlane.f32.xlu2 %v827_v28 }
 0x4ca   :  { %v980_v29 = vpop.f32.mrf.mxu1 }
 0x4cb   :  { %v1010_v30 = vsel %vm441_vm1, %v980_v29, -inf }
 0x4cc   :  { %1011 = vmax.xlane.f32.xlu0 %v1010_v30 }
 0x52f   :  { %v826_v32 = vpop.xlane.xlu0 %825 }
 0x530   :  { %v832_v3 = vsub.f32 %v813_v54, %v826_v32 }
 0x532   :  { %v838_v33 = vmul.f32 1.442695, %v832_v3  ;;  %v886_v20 = vpop.f32.mrf.mxu2 }
 0x534   :  { %3975 = vpow2.f32 %v838_v33 }
 0x537   :  { %v829_v21 = vpop.xlane.xlu2 %828  ;;  %v1009_v40 = vpop.xlane.xlu1 %1008 }
 0x538   :  { %v833_v36 = vsub.f32 %v815_v25, %v829_v21  ;;  %v1019_v42 = vsub.f32 %v978_v26, %v1009_v40 }
 0x53a   :  { %v3976_v37 = vpop.eup %3975  ;;  %v840_v39 = vmul.f32 1.442695, %v833_v36  ;;  %v888_v41 = vpop.f32.mrf.mxu2  ;;  %v1023_v45 = vmul.f32 1.442695, %v1019_v42 }
 0x53b   :  { %v916_v43 = vpack.c.bf16 %v888_v41, %v886_v20  ;;  %v848_v44 = vsel %vm441_vm1, %v3976_v37, 0.0 }
 0x53c   :  { %849 = vadd.xlane.f32.xlu2 %v848_v44  ;;  %3977 = vpow2.f32 %v840_v39  ;;  %v3820_v39 = vld [vmem:[#allocation7 + $0x38] sm:$0xff]  ;;  %v3819_v44 = vld [vmem:[#allocation7 + $0x30] sm:$0xff] }
 0x53d   :  { %3365 = vmatmul.msk.bf16.vlgmr.msrb.gmra.mxu0 %vm390_vm0, %v916_v43  ;;  %3979 = vpow2.f32 %v1023_v45  ;;  %1131 = vmatpush.bf16.msrb.mxu2 %v3820_v39 }
 0x53f   :  { %v1012_v48 = vpop.xlane.xlu0 %1011 }
 0x540   :  { %v1020_v52 = vsub.f32 %v980_v29, %v1012_v48 }
 0x541   :  { %1132 = vmatpush.bf16.msrb.mxu2 %v3819_v44 }
 0x542   :  { %v1002_v50 = vpop.f32.mrf.mxu2  ;;  %v3978_v51 = vpop.eup %3977  ;;  %v1025_v57 = vmul.f32 1.442695, %v1020_v52 }
 0x543   :  { %v1013_v55 = vsel %vm441_vm1, %v1002_v50, -inf  ;;  %v851_v56 = vsel %vm441_vm1, %v3978_v51, 0.0  ;;  %v3980_v38 = vpop.eup %3979 }
 0x544   :  { %1014 = vmax.xlane.f32.xlu2 %v1013_v55  ;;  %852 = vadd.xlane.f32.xlu0 %v851_v56  ;;  %3981 = vpow2.f32 %v1025_v57  ;;  %v1031_v58 = vsel %vm441_vm1, %v3980_v38, 0.0 }
 0x54a   :  { %v3982_v59 = vpop.eup %3981  ;;  %v1004_v49 = vpop.f32.mrf.mxu2 }
 0x54b   :  { %v1034_v61 = vsel %vm441_vm1, %v3982_v59, 0.0  ;;  %v1016_v62 = vsel %vm441_vm1, %v1004_v49, -inf }
 0x54c   :  { %1032 = vadd.xlane.f32.xlu0 %v1031_v58 }
 0x554   :  { %1035 = vadd.xlane.f32.xlu0 %v1034_v61 }
 0x55c   :  { %896 = vrot.lane.b32.xlu2 %v4449_v35, %s4287_s18  ;;  %1017 = vmax.xlane.f32.xlu0 %v1016_v62  ;;  %v723_v62 = vpop.f32.mrf.mxu0 }
 0x570   :  { %1060 = vrot.lane.b32.xlu0 %v4395_v6, %s4294_s5 }
 0x5af   :  { %v850_v0 = vpop.xlane.xlu2 %849 }
 0x5b0   :  { %3983 = vrcp.f32 %v850_v0  ;;  %v725_v0 = vpop.f32.mrf.mxu0 }
 0x5b6   :  { %v3984_v47 = vpop.eup %3983 }
 0x5b7   :  { %v1015_v1 = vpop.xlane.xlu2 %1014  ;;  %v853_v2 = vpop.xlane.xlu0 %852  ;;  %v860_v9 = vmul.f32 %v3984_v47, %v3976_v37 }
 0x5b8   :  { %v1021_v4 = vsub.f32 %v1002_v50, %v1015_v1  ;;  %3985 = vrcp.f32 %v853_v2  ;;  %v728_v2 = vpop.f32.mrf.mxu0 }
 0x5b9   :  { %v864_v14 = vpack.c.bf16 %v860_v9, %v860_v9 }
 0x5ba   :  { %v1027_v7 = vmul.f32 1.442695, %v1021_v4 }
 0x5bb   :  { %v893_v53 = vunpack.c.l.b16 %v864_v14 }
 0x5bc   :  { %3987 = vpow2.f32 %v1027_v7 }
 0x5be   :  { %v3986_v10 = vpop.eup %3985 }
 0x5bf   :  { %v897_v13 = vpop.permute.xlu2 %896  ;;  %v861_v16 = vmul.f32 %v3986_v10, %v3978_v51  ;;  %v1033_v17 = vpop.xlane.xlu0 %1032  ;;  %v761_v10 = vadd.f32 %v4499_v5, %v723_v62  ;;  %v4295_v5 = vmov 128.0   ;;  %v3832_v62 = vld [vmem:[#allocation8 + $0x54] sm:$0xf0] }
 0x5c0   :  { %909 = vmatpush.bf16.msra.mxu3 %v897_v13  ;;  %v730_v7 = vpop.f32.mrf.mxu0 }
 0x5c1   :  { %v865_v19 = vpack.c.bf16 %v861_v16, %v861_v16 }
 0x5c2   :  { %v3988_v34 = vpop.eup %3987 }
 0x5c3   :  { %v1037_v6 = vsel %vm441_vm1, %v3988_v34, 0.0  ;;  %v894_v54 = vunpack.c.l.b16 %v865_v19 }
 0x5c4   :  { %1038 = vadd.xlane.f32.xlu1 %v1037_v6  ;;  %v763_v6 = vadd.f32 %v4501_v15, %v725_v0  ;;  %v3831_v0 = vld [vmem:[#allocation8 + $0x54] sm:$0xf] }
 0x5c5   :  { %v895_v23 = vpack.c.b16 %v894_v54, %v893_v53 }
 0x5c7   :  { %v1036_v24 = vpop.xlane.xlu0 %1035  ;;  %3356 = vmatmul.msk.bf16.vlgmr.msra.gmra.mxu3 %vm441_vm1, %v895_v23 }
 0x5c8   :  { %3989 = vrcp.f32 %v1036_v24  ;;  %v945_v9 = vpop.f32.mrf.mxu0 }
 0x5c9   :  { %3991 = vrcp.f32 %v1033_v17  ;;  %v955_v13 = vadd.f32 %v945_v9, %v761_v10  ;;  %v1152_v17 = vperm.slane %v4372_v18, 1  ;;  %v766_v18 = vadd.f32 %v4504_v22, %v728_v2  ;;  %v3425_v2 = vld [vmem:[#allocation8 + $0x58] sm:$0xf0]  ;;  %v3829_v9 = vld [vmem:[#allocation8 + $0x44] sm:$0xf] }
 0x5ce   :  { %v3990_v28 = vpop.eup %3989 }
 0x5cf   :  { %v1018_v25 = vpop.xlane.xlu0 %1017  ;;  %v3992_v29 = vpop.eup %3991  ;;  %v1048_v30 = vmul.f32 %v3990_v28, %v3982_v59 }
 0x5d0   :  { %v1022_v26 = vsub.f32 %v1004_v49, %v1018_v25  ;;  %v1047_v8 = vmul.f32 %v3992_v29, %v3980_v38  ;;  %v947_v19 = vpop.f32.mrf.mxu0 }
 0x5d1   :  { %v1052_v3 = vpack.c.bf16 %v1048_v30, %v1048_v30  ;;  %v956_v54 = vadd.f32 %v947_v19, %v763_v6  ;;  %v3409_v6 = vld [vmem:[#allocation8 + $0x38] sm:$0xf0] }
 0x5d2   :  { %v1029_v27 = vmul.f32 1.442695, %v1022_v26  ;;  %v1051_v33 = vpack.c.bf16 %v1047_v8, %v1047_v8 }
 0x5d3   :  { %v1058_v20 = vunpack.c.l.b16 %v1052_v3 }
 0x5d4   :  { %3993 = vpow2.f32 %v1029_v27  ;;  %v1057_v21 = vunpack.c.l.b16 %v1051_v33  ;;  %v768_v33 = vadd.f32 %v4507_v46, %v730_v7  ;;  %v3830_v7 = vld [vmem:[#allocation8 + $0x44] sm:$0xf0] }
 0x5d6   :  { %v1059_v36 = vpack.c.b16 %v1058_v20, %v1057_v21 }
 0x5da   :  { %v3994_v31 = vpop.eup %3993 }
 0x5db   :  { %v1040_v32 = vsel %vm441_vm1, %v3994_v31, 0.0 }
 0x5dc   :  { %1041 = vadd.xlane.f32.xlu2 %v1040_v32 }
 0x5dd   :  { %1085 = vrot.lane.b32.xlu1 %v4449_v35, %s4294_s5 }
 0x5e2   :  { %v1061_v40 = vpop.permute.xlu0 %1060 }
 0x5e3   :  { %1073 = vmatpush.bf16.msrb.mxu3 %v1061_v40 }
 0x5e6   :  { %3369 = vmatmul.msk.bf16.vlgmr.msrb.gmra.mxu3 %vm441_vm1, %v1059_v36 }
 0x637   :  { %v1039_v37 = vpop.xlane.xlu1 %1038 }
 0x638   :  { %3995 = vrcp.f32 %v1039_v37 }
 0x63e   :  { %v3996_v45 = vpop.eup %3995 }
 0x63f   :  { %v1049_v48 = vmul.f32 %v3996_v45, %v3988_v34 }
 0x641   :  { %v1053_v52 = vpack.c.bf16 %v1049_v48, %v1049_v48  ;;  %v3836_v48 = vld [vmem:[#allocation8 + $0x74] sm:$0xf0] }
 0x643   :  { %v1082_v57 = vunpack.c.l.b16 %v1053_v52  ;;  %v3441_v52 = vld [vmem:[#allocation8 + $0x78] sm:$0xf0] }
 0x64a   :  { %v911_v41 = vpop.f32.mrf.mxu3 }
 0x64f   :  { %v1086_v42 = vpop.permute.xlu1 %1085  ;;  %v1042_v43 = vpop.xlane.xlu2 %1041 }
 0x650   :  { %1098 = vmatpush.bf16.msra.mxu1 %v1086_v42  ;;  %3997 = vrcp.f32 %v1042_v43 }
 0x651   :  { %3999 = vrcp.f32 %v4295_v5 }
 0x652   :  { %v913_v35 = vpop.f32.mrf.mxu3 }
 0x653   :  { %v917_v50 = vpack.c.bf16 %v913_v35, %v911_v41 }
 0x655   :  { %3366 = vmatmul.msk.bf16.gmra.mxu0 %vm390_vm0, %v917_v50  ;;  %v3835_v50 = vld [vmem:[#allocation8 + $0x74] sm:$0xf] }
 0x656   :  { %v3998_v51 = vpop.eup %3997 }
 0x657   :  { %v1050_v55 = vmul.f32 %v3998_v51, %v3994_v31  ;;  %v4000_v27 = vpop.eup %3999 }
 0x658   :  { %v1166_v29 = vmul.f32 128.0, %v4000_v27  ;;  %vm1170_vm2 = vweird.f32 %v4000_v27 }
 0x659   :  { %v1054_v56 = vpack.c.bf16 %v1050_v55, %v1050_v55  ;;  %v3444_v55 = vor.u32 %v3835_v50, %v3441_v52 }
 0x65b   :  { %v1083_v38 = vunpack.c.l.b16 %v1054_v56  ;;  %1373 = vmatpush.bf16.msra.mxu3 %v3444_v55  ;;  %v3431_v56 = vld [vmem:[#allocation8 + $0x60] sm:$0xf] }
 0x65d   :  { %v1084_v58 = vpack.c.b16 %v1083_v38, %v1082_v57  ;;  %v3834_v57 = vld [vmem:[#allocation8 + $0x64] sm:$0xf0]  ;;  %v3833_v38 = vld [vmem:[#allocation8 + $0x64] sm:$0xf] }
 0x65f   :  { %3370 = vmatmul.msk.bf16.vlgmr.msra.gmra.mxu1 %vm441_vm1, %v1084_v58  ;;  %v3432_v58 = vor.u32 %v3834_v57, %v3431_v56 }
 0x669   :  { %v1075_v59 = vpop.f32.mrf.mxu3 }
 0x671   :  { %v1077_v61 = vpop.f32.mrf.mxu3 }
 0x672   :  { %v1105_v49 = vpack.c.bf16 %v1077_v61, %v1075_v59  ;;  %v3433_v59 = vld [vmem:[#allocation8 + $0x68] sm:$0xf0] }
 0x673   :  { %v3436_v61 = vor.u32 %v3833_v38, %v3433_v59 }
 0x674   :  { %3379 = vmatmul.msk.bf16.vlgmr.msrb.gmra.mxu2 %vm390_vm0, %v1105_v49  ;;  %v3423_v49 = vld [vmem:[#allocation8 + $0x50] sm:$0xf] }
 0x675   :  { %1374 = vmatpush.bf16.msra.mxu3 %v3436_v61 }
 0x6d2   :  { %v950_v28 = vpop.f32.mrf.mxu0 }
 0x6d3   :  { %v957_v30 = vadd.f32 %v950_v28, %v766_v18 }
 0x6da   :  { %v952_v3 = vpop.f32.mrf.mxu0 }
 0x6db   :  { %v958_v21 = vadd.f32 %v952_v3, %v768_v33  ;;  %v3383_v3 = vld [vmem:[#allocation8] sm:$0xf]  ;;  %v3822_v33 = vld [vmem:[#allocation8 + $0x4] sm:$0xf0] }
 0x6dc   :  { %v1100_v1 = vpop.f32.mrf.mxu1 }
 0x6e4   :  { %v1102_v4 = vpop.f32.mrf.mxu1 }
 0x6e5   :  { %v1106_v47 = vpack.c.bf16 %v1102_v4, %v1100_v1  ;;  %v3424_v1 = vor.u32 %v3832_v62, %v3423_v49  ;;  %v3428_v4 = vor.u32 %v3831_v0, %v3425_v2  ;;  %v4576_v62 = vld [vmem:[#allocation11] sm:$0xff] }
 0x6e6   :  { %v4579_v0 = vperm.slane %v4576_v62, 2 }
 0x6e7   :  { %3380 = vmatmul.msk.bf16.gmra.mxu2 %vm390_vm0, %v1106_v47  ;;  %1375 = vmatpush.bf16.msra.mxu3 %v3428_v4  ;;  %v3415_v47 = vld [vmem:[#allocation8 + $0x40] sm:$0xf] }
 0x6e8   :  { %v3416_v10 = vor.u32 %v3830_v7, %v3415_v47  ;;  %v4583_v47 = vperm.slane %v4576_v62, 3 }
 0x6f7   :  { %v1134_v14 = vpop.f32.mrf.mxu2 }
 0x6f8   :  { %v1144_v16 = vadd.f32 %v1134_v14, %v955_v13  ;;  %v3417_v13 = vld [vmem:[#allocation8 + $0x48] sm:$0xf0] }
 0x6f9   :  { %v3420_v14 = vor.u32 %v3829_v9, %v3417_v13 }
 0x6fa   :  { %v1148_v34 = vadd.f32 %v1144_v16, %v4360_v60  ;;  %v1167_v60 = vsub.f32 1.0, %v1166_v29  ;;  %v3407_v16 = vld [vmem:[#allocation8 + $0x30] sm:$0xf] }
 0x6fb   :  { %1376 = vmatpush.bf16.msra.mxu3 %v3420_v14 }
 0x6fc   :  { %v1153_v53 = vadd.f32 %v1152_v17, %v1148_v34  ;;  %v1168_v8 = vmul.f32 %v4000_v27, %v1167_v60  ;;  %v3827_v34 = vld [vmem:[#allocation8 + $0x34] sm:$0xf]  ;;  %v3391_v60 = vld [vmem:[#allocation8 + $0x10] sm:$0xf] }
 0x6fe   :  { %1157 = vadd.xlane.f32.xlu0 %v1153_v53  ;;  %v1169_v20 = vadd.f32 %v4000_v27, %v1168_v8  ;;  %v3393_v8 = vld [vmem:[#allocation8 + $0x18] sm:$0xf0] }
 0x6ff   :  { %v1136_v23 = vpop.f32.mrf.mxu2 }
 0x700   :  { %v1145_v24 = vadd.f32 %v1136_v23, %v956_v54  ;;  %v4546_v22 = vsel %vm1170_vm2, %v4000_v27, %v1169_v20  ;;  %v3401_v27 = vld [vmem:[#allocation8 + $0x28] sm:$0xf0]  ;;  %v3821_v20 = vld [vmem:[#allocation8 + $0x4] sm:$0xf] }
 0x702   :  { %v1149_v25 = vadd.f32 %v1145_v24, %v4362_v63  ;;  %v3399_v24 = vld [vmem:[#allocation8 + $0x20] sm:$0xf] }
 0x704   :  { %v1154_v26 = vadd.f32 %v1152_v17, %v1149_v25  ;;  %v3826_v25 = vld [vmem:[#allocation8 + $0x24] sm:$0xf0] }
 0x705   :  { %v3400_v5 = vor.u32 %v3826_v25, %v3399_v24  ;;  %v3841_v25 = vld [vmem:[#allocation10 + $0x20] sm:$0xff] }
 0x706   :  { %1159 = vadd.xlane.f32.xlu1 %v1154_v26 }
 0x76a   :  { %v1139_v31 = vpop.f32.mrf.mxu2 }
 0x76b   :  { %v1146_v15 = vadd.f32 %v1139_v31, %v957_v30  ;;  %v3824_v30 = vld [vmem:[#allocation8 + $0x14] sm:$0xf0]  ;;  %v3823_v31 = vld [vmem:[#allocation8 + $0x14] sm:$0xf] }
 0x76d   :  { %v1150_v32 = vadd.f32 %v1146_v15, %v4366_v11  ;;  %v3392_v15 = vor.u32 %v3824_v30, %v3391_v60  ;;  %v3840_v30 = vld [vmem:[#allocation10 + $0x18] sm:$0xff] }
 0x76f   :  { %v4543_v63 = vadd.f32 %v1152_v17, %v1150_v32  ;;  %v3396_v32 = vor.u32 %v3823_v31, %v3393_v8 }
 0x771   :  { %1161 = vadd.xlane.f32.xlu2 %v4543_v63  ;;  %v1158_v37 = vpop.xlane.xlu0 %1157 }
 0x772   :  { %v1141_v40 = vpop.f32.mrf.mxu2  ;;  %v1172_v41 = vmul.f32 %v4546_v22, %v1158_v37 }
 0x773   :  { %v1147_v36 = vadd.f32 %v1141_v40, %v958_v21  ;;  %v3385_v40 = vld [vmem:[#allocation8 + $0x8] sm:$0xf0] }
 0x774   :  { %v4554_v43 = vsub.f32 %v1153_v53, %v1172_v41  ;;  %v3412_v53 = vor.u32 %v3827_v34, %v3409_v6  ;;  %v3388_v37 = vor.u32 %v3821_v20, %v3385_v40  ;;  %v3852_v6 = vld [vmem:[#allocation10 + $0x78] sm:$0xff] }
 0x775   :  { %v1151_v39 = vadd.f32 %v1147_v36, %v4368_v12  ;;  %v3439_v12 = vld [vmem:[#allocation8 + $0x70] sm:$0xf]  ;;  %1552 = vmatpush.bf16.msra.mxu2 %v3852_v6 }
 0x776   :  { %v1180_v35 = vmul.f32 %v4554_v43, %v4554_v43  ;;  %v3440_v51 = vor.u32 %v3836_v48, %v3439_v12  ;;  %1377 = vmatpush.bf16.msra.mxu3 %v3412_v53  ;;  %v3842_v53 = vld [vmem:[#allocation10 + $0x28] sm:$0xff] }
 0x777   :  { %v4550_v11 = vadd.f32 %v1152_v17, %v1151_v39  ;;  %v3828_v17 = vld [vmem:[#allocation8 + $0x34] sm:$0xf0] }
 0x778   :  { %1354 = vmatpush.bf16.msra.mxu0 %v3440_v51  ;;  %v3408_v19 = vor.u32 %v3828_v17, %v3407_v16  ;;  %v3843_v17 = vld [vmem:[#allocation10 + $0x30] sm:$0xff] }
 0x779   :  { %v1160_v42 = vpop.xlane.xlu1 %1159  ;;  %1163 = vadd.xlane.f32.xlu2 %v4550_v11 }
 0x77a   :  { %v1173_v46 = vmul.f32 %v4546_v22, %v1160_v42 }
 0x77c   :  { %v4556_v44 = vsub.f32 %v1154_v26, %v1173_v46  ;;  %1355 = vmatpush.bf16.msra.mxu0 %v3432_v58  ;;  %v3825_v26 = vld [vmem:[#allocation8 + $0x24] sm:$0xf] }
 0x77d   :  { %v3404_v29 = vor.u32 %v3825_v26, %v3401_v27 }
 0x77e   :  { %v1181_v45 = vmul.f32 %v4556_v44, %v4556_v44 }
 0x77f   :  { %1378 = vmatpush.bf16.msra.mxu3 %v3404_v29  ;;  %v3850_v29 = vld [vmem:[#allocation10 + $0x68] sm:$0xff] }
 0x780   :  { %1186 = vadd.xlane.f32.xlu0 %v1181_v45  ;;  %1356 = vmatpush.bf16.msra.mxu0 %v3424_v1 }
 0x781   :  { %1184 = vadd.xlane.f32.xlu2 %v1180_v35 }
 0x783   :  { %1379 = vmatpush.bf16.msra.mxu3 %v3396_v32 }
 0x784   :  { %1357 = vmatpush.bf16.msra.mxu0 %v3416_v10 }
 0x787   :  { %1380 = vmatpush.bf16.msra.mxu3 %v3388_v37 }
 0x788   :  { %1358 = vmatpush.bf16.msra.mxu0 %v3408_v19 }
 0x78c   :  { %1359 = vmatpush.bf16.msra.mxu0 %v3400_v5 }
 0x790   :  { %1360 = vmatpush.bf16.msra.mxu0 %v3392_v15  ;;  %v3849_v15 = vld [vmem:[#allocation10 + $0x60] sm:$0xff] }
 0x7e4   :  { %v1162_v54 = vpop.xlane.xlu2 %1161 }
 0x7e5   :  { %v1174_v23 = vmul.f32 %v4546_v22, %v1162_v54 }
 0x7e7   :  { %v4564_v28 = vsub.f32 %v4543_v63, %v1174_v23  ;;  %v3384_v63 = vor.u32 %v3822_v33, %v3383_v3  ;;  %v3851_v23 = vld [vmem:[#allocation10 + $0x70] sm:$0xff] }
 0x7e8   :  { %1553 = vmatpush.bf16.msra.mxu2 %v3851_v23  ;;  %v3839_v33 = vld [vmem:[#allocation10 + $0x10] sm:$0xff] }
 0x7e9   :  { %v1182_v18 = vmul.f32 %v4564_v28, %v4564_v28  ;;  %1361 = vmatpush.bf16.msra.mxu0 %v3384_v63 }
 0x7eb   :  { %1188 = vadd.xlane.f32.xlu2 %v1182_v18 }
 0x7ec   :  { %v1164_v21 = vpop.xlane.xlu2 %1163  ;;  %1554 = vmatpush.bf16.msra.mxu2 %v3850_v29 }
 0x7ed   :  { %v1175_v36 = vmul.f32 %v4546_v22, %v1164_v21  ;;  %v3848_v21 = vld [vmem:[#allocation10 + $0x58] sm:$0xff] }
 0x7ef   :  { %v4570_v39 = vsub.f32 %v4550_v11, %v1175_v36  ;;  %v3838_v36 = vld [vmem:[#allocation10 + $0x8] sm:$0xff] }
 0x7f0   :  { %1555 = vmatpush.bf16.msra.mxu2 %v3849_v15 }
 0x7f1   :  { %v1183_v41 = vmul.f32 %v4570_v39, %v4570_v39 }
 0x7f3   :  { %v1187_v42 = vpop.xlane.xlu0 %1186  ;;  %1190 = vadd.xlane.f32.xlu0 %v1183_v41  ;;  %v3847_v41 = vld [vmem:[#allocation10 + $0x50] sm:$0xff] }
 0x7f4   :  { %v1193_v46 = vmul.f32 %v1187_v42, %v4546_v22  ;;  %v1185_v45 = vpop.xlane.xlu2 %1184  ;;  %1556 = vmatpush.bf16.msra.mxu2 %v3848_v21 }
 0x7f5   :  { %v1192_v35 = vmul.f32 %v1185_v45, %v4546_v22  ;;  %v3837_v45 = vld [vmem:[#allocation10] sm:$0xff] }
 0x7f6   :  { %v1197_v12 = vadd.f32 1e-05, %v1193_v46 }
 0x7f7   :  { %v1196_v48 = vadd.f32 1e-05, %v1192_v35 }
 0x7f8   :  { %4001 = vrsqrt.f32 %v1197_v12  ;;  %vm1216_vm5 = vweird.f32 %v1197_v12  ;;  %1557 = vmatpush.bf16.msra.mxu2 %v3847_v41 }
 0x7f9   :  { %4003 = vrsqrt.f32 %v1196_v48  ;;  %vm1206_vm7 = vweird.f32 %v1196_v48 }
 0x7fe   :  { %v4002_v50 = vpop.eup %4001 }
 0x7ff   :  { %v4004_v51 = vpop.eup %4003  ;;  %v1211_v11 = vmul.f32 %v4002_v50, %v1197_v12  ;;  %vm1217_vm3 = vweird.f32 %v4002_v50  ;;  %v3846_v12 = vld [vmem:[#allocation10 + $0x48] sm:$0xff] }
 0x800   :  { %v1201_v52 = vmul.f32 %v4004_v51, %v1196_v48  ;;  %vm1207_vm4 = vweird.f32 %v4004_v51  ;;  %vm1218_vm6 = vmor %vm1216_vm5, %vm1217_vm3  ;;  %1558 = vmatpush.bf16.msra.mxu2 %v3846_v12 }
 0x801   :  { %v1212_v55 = vmul.f32 %v4002_v50, %v1211_v11  ;;  %vm1208_vm8 = vmor %vm1206_vm7, %vm1207_vm4  ;;  %v3845_v11 = vld [vmem:[#allocation10 + $0x40] sm:$0xff] }
 0x802   :  { %v1202_v56 = vmul.f32 %v4004_v51, %v1201_v52 }
 0x803   :  { %v1213_v57 = vmul.f32 0.5, %v1212_v55 }
 0x804   :  { %v1203_v38 = vmul.f32 0.5, %v1202_v56  ;;  %1559 = vmatpush.bf16.msra.mxu2 %v3845_v11 }
 0x805   :  { %v1214_v58 = vsub.f32 1.5, %v1213_v57  ;;  %v1272_v57 = vperm.slane %v4576_v62, 4 }
 0x806   :  { %v1204_v59 = vsub.f32 1.5, %v1203_v38 }
 0x807   :  { %v1215_v61 = vmul.f32 %v4002_v50, %v1214_v58 }
 0x808   :  { %v1205_v49 = vmul.f32 %v4004_v51, %v1204_v59  ;;  %v4098_v59 = vld [vmem:[#allocation11 + $0x8] sm:$0xff] }
 0x809   :  { %v1219_v1 = vsel %vm1218_vm6, %v4002_v50, %v1215_v61  ;;  %v1273_v61 = vperm.slane %v4098_v59, 4 }
 0x80a   :  { %v1241_v2 = vmul.f32 %v1219_v1, %v4556_v44  ;;  %v1209_v4 = vsel %vm1208_vm8, %v4004_v51, %v1205_v49  ;;  %v3844_v44 = vld [vmem:[#allocation10 + $0x38] sm:$0xff] }
 0x80b   :  { %v1240_v7 = vmul.f32 %v1209_v4, %v4554_v43  ;;  %1533 = vmatpush.bf16.msrb.mxu1 %v3844_v44 }
 0x80c   :  { %v1246_v9 = vmul.f32 %v4579_v0, %v1241_v2 }
 0x80d   :  { %v1245_v10 = vmul.f32 %v4579_v0, %v1240_v7 }
 0x80e   :  { %v4589_v13 = vadd.f32 %v4583_v47, %v1246_v9 }
 0x80f   :  { %v4592_v14 = vadd.f32 %v4583_v47, %v1245_v10  ;;  %1534 = vmatpush.bf16.msrb.mxu1 %v3843_v17 }
 0x811   :  { %v1254_v16 = vpack.c.bf16 %v4589_v13, %v4592_v14 }
 0x813   :  { %1362 = vmatmul.bf16.vlgmr.msra.gmra.mxu0 %v1254_v16  ;;  %1381 = vmatmul.bf16.vlgmr.msra.gmra.mxu3 %v1254_v16 }
 0x814   :  { %1535 = vmatpush.bf16.msrb.mxu1 %v3842_v53 }
 0x818   :  { %1536 = vmatpush.bf16.msrb.mxu1 %v3841_v25 }
 0x81c   :  { %1537 = vmatpush.bf16.msrb.mxu1 %v3840_v30 }
 0x820   :  { %1538 = vmatpush.bf16.msrb.mxu1 %v3839_v33 }
 0x824   :  { %1539 = vmatpush.bf16.msrb.mxu1 %v3838_v36 }
 0x828   :  { %1540 = vmatpush.bf16.msrb.mxu1 %v3837_v45 }
 0x85e   :  { %v1189_v34 = vpop.xlane.xlu2 %1188 }
 0x85f   :  { %v1194_v43 = vmul.f32 %v1189_v34, %v4546_v22 }
 0x861   :  { %v1198_v19 = vadd.f32 1e-05, %v1194_v43 }
 0x863   :  { %4005 = vrsqrt.f32 %v1198_v19  ;;  %vm1226_vm10 = vweird.f32 %v1198_v19 }
 0x866   :  { %v1191_v54 = vpop.xlane.xlu0 %1190 }
 0x867   :  { %v1195_v24 = vmul.f32 %v1191_v54, %v4546_v22 }
 0x869   :  { %v4006_v26 = vpop.eup %4005  ;;  %v1199_v5 = vadd.f32 1e-05, %v1195_v24 }
 0x86a   :  { %v1221_v27 = vmul.f32 %v4006_v26, %v1198_v19  ;;  %vm1227_vm9 = vweird.f32 %v4006_v26 }
 0x86b   :  { %4007 = vrsqrt.f32 %v1199_v5  ;;  %vm1228_vm11 = vmor %vm1226_vm10, %vm1227_vm9  ;;  %vm1236_vm13 = vweird.f32 %v1199_v5 }
 0x86c   :  { %v1222_v18 = vmul.f32 %v4006_v26, %v1221_v27 }
 0x86e   :  { %v1223_v60 = vmul.f32 0.5, %v1222_v18  ;;  %v1436_v18 = vperm.slane %v4576_v62, 5 }
 0x870   :  { %v1224_v31 = vsub.f32 1.5, %v1223_v60 }
 0x871   :  { %v4008_v8 = vpop.eup %4007 }
 0x872   :  { %v1225_v32 = vmul.f32 %v4006_v26, %v1224_v31  ;;  %v1231_v3 = vmul.f32 %v4008_v8, %v1199_v5  ;;  %vm1237_vm12 = vweird.f32 %v4008_v8 }
 0x873   :  { %vm1238_vm14 = vmor %vm1236_vm13, %vm1237_vm12 }
 0x874   :  { %v1232_v20 = vmul.f32 %v4008_v8, %v1231_v3  ;;  %v1229_v40 = vsel %vm1228_vm11, %v4006_v26, %v1225_v32 }
 0x875   :  { %v1242_v42 = vmul.f32 %v1229_v40, %v4564_v28 }
 0x876   :  { %v1233_v63 = vmul.f32 0.5, %v1232_v20 }
 0x877   :  { %v1247_v50 = vmul.f32 %v4579_v0, %v1242_v42 }
 0x878   :  { %v1234_v37 = vsub.f32 1.5, %v1233_v63 }
 0x879   :  { %v1252_v52 = vadd.f32 %v4583_v47, %v1247_v50 }
 0x87a   :  { %v1235_v46 = vmul.f32 %v4008_v8, %v1234_v37 }
 0x87c   :  { %v1239_v35 = vsel %vm1238_vm14, %v4008_v8, %v1235_v46 }
 0x87d   :  { %v1243_v48 = vmul.f32 %v1239_v35, %v4570_v39 }
 0x87f   :  { %v1248_v51 = vmul.f32 %v4579_v0, %v1243_v48 }
 0x881   :  { %v4604_v28 = vadd.f32 %v4583_v47, %v1248_v51 }
 0x883   :  { %v1255_v55 = vpack.c.bf16 %v4604_v28, %v1252_v52 }
 0x885   :  { %1367 = vmatmul.bf16.gmra.mxu0 %v1255_v55  ;;  %1386 = vmatmul.bf16.gmra.mxu3 %v1255_v55  ;;  %v3595_v55 = vld [vmem:[#allocation5 + $0x168] sm:$0xf] }
 0x890   :  { %v1363_v56 = vpop.f32.mrf.mxu0 }
 0x891   :  { %v1364_v38 = vadd.f32 %v1363_v56, %v1272_v57  ;;  %v3875_v56 = vld [vmem:[#allocation5 + $0x170] sm:$0xf0] }
 0x893   :  { %v1392_v0 = vmax.f32 %v1364_v38, 0.0  ;;  %v3597_v38 = vld [vmem:[#allocation5 + $0x174] sm:$0xf0] }
 0x896   :  { %v1382_v39 = vpop.f32.mrf.mxu3 }
 0x897   :  { %v1383_v2 = vadd.f32 %v1382_v39, %v1273_v61  ;;  %v3596_v39 = vor.u32 %v3875_v56, %v3595_v55  ;;  %v3523_v55 = vld [vmem:[#allocation5 + $0xd8] sm:$0xf]  ;;  %v3857_v56 = vld [vmem:[#allocation5 + $0xe0] sm:$0xf0] }
 0x898   :  { %v1365_v58 = vpop.f32.mrf.mxu0 }
 0x899   :  { %v1366_v49 = vadd.f32 %v1365_v58, %v1272_v57  ;;  %v1393_v9 = vmax.f32 %v1383_v2, 0.0  ;;  %v3603_v58 = vld [vmem:[#allocation5 + $0x170] sm:$0xf]  ;;  %1835 = vmatpush.bf16.msrb.mxu0 %v3596_v39  ;;  %v3524_v39 = vor.u32 %v3857_v56, %v3523_v55 }
 0x89b   :  { %v1394_v1 = vmax.f32 %v1366_v49, 0.0  ;;  %v3583_v49 = vld [vmem:[#allocation5 + $0x150] sm:$0xf] }
 0x89d   :  { %v1400_v4 = vpack.c.bf16 %v1394_v1, %v1392_v0  ;;  %v3872_v0 = vld [vmem:[#allocation5 + $0x158] sm:$0xf0]  ;;  %v3871_v1 = vld [vmem:[#allocation5 + $0x154] sm:$0xf] }
 0x89e   :  { %v1384_v47 = vpop.f32.mrf.mxu3  ;;  %v3584_v2 = vor.u32 %v3872_v0, %v3583_v49  ;;  %v3854_v49 = vld [vmem:[#allocation5 + $0xc8] sm:$0xf0]  ;;  %v3853_v0 = vld [vmem:[#allocation5 + $0xc4] sm:$0xf] }
 0x89f   :  { %v1385_v7 = vadd.f32 %v1384_v47, %v1273_v61  ;;  %1541 = vmatmul.bf16.vlgmr.msrb.gmra.mxu1 %v1400_v4  ;;  %v3585_v4 = vld [vmem:[#allocation5 + $0x15c] sm:$0xf0]  ;;  %v3591_v47 = vld [vmem:[#allocation5 + $0x158] sm:$0xf] }
 0x8a0   :  { %1836 = vmatpush.bf16.msrb.mxu0 %v3584_v2 }
 0x8a1   :  { %v1395_v10 = vmax.f32 %v1385_v7, 0.0  ;;  %v3873_v7 = vld [vmem:[#allocation5 + $0x160] sm:$0xf0] }
 0x8a3   :  { %v1401_v16 = vpack.c.bf16 %v1395_v10, %v1393_v9  ;;  %v3588_v9 = vor.u32 %v3871_v1, %v3585_v4  ;;  %v3592_v10 = vor.u32 %v3873_v7, %v3591_v47  ;;  %v3513_v47 = vld [vmem:[#allocation5 + $0xcc] sm:$0xf0]  ;;  %v3519_v7 = vld [vmem:[#allocation5 + $0xc8] sm:$0xf] }
 0x8a5   :  { %1560 = vmatmul.bf16.vlgmr.msra.gmra.mxu2 %v1401_v16  ;;  %v3571_v16 = vld [vmem:[#allocation5 + $0x138] sm:$0xf] }
 0x902   :  { %v1368_v44 = vpop.f32.mrf.mxu0 }
 0x903   :  { %v1369_v34 = vadd.f32 %v1368_v44, %v1272_v57  ;;  %v3869_v44 = vld [vmem:[#allocation5 + $0x140] sm:$0xf0] }
 0x905   :  { %v1396_v6 = vmax.f32 %v1369_v34, 0.0  ;;  %v3572_v34 = vor.u32 %v3869_v44, %v3571_v16  ;;  %v3516_v44 = vor.u32 %v3853_v0, %v3513_v47 }
 0x907   :  { %1837 = vmatpush.bf16.msrb.mxu0 %v3572_v34 }
 0x908   :  { %v1387_v17 = vpop.f32.mrf.mxu3 }
 0x909   :  { %v1388_v54 = vadd.f32 %v1387_v17, %v1273_v61  ;;  %v3868_v17 = vld [vmem:[#allocation5 + $0x13c] sm:$0xf] }
 0x90a   :  { %v1370_v43 = vpop.f32.mrf.mxu0 }
 0x90b   :  { %v1371_v19 = vadd.f32 %v1370_v43, %v1272_v57  ;;  %v1397_v26 = vmax.f32 %v1388_v54, 0.0  ;;  %v3874_v57 = vld [vmem:[#allocation5 + $0x16c] sm:$0xf]  ;;  %v3573_v43 = vld [vmem:[#allocation5 + $0x144] sm:$0xf0] }
 0x90c   :  { %v3600_v59 = vor.u32 %v3874_v57, %v3597_v38  ;;  %v3856_v57 = vld [vmem:[#allocation5 + $0xdc] sm:$0xf]  ;;  %v3525_v38 = vld [vmem:[#allocation5 + $0xe4] sm:$0xf0] }
 0x90d   :  { %v1398_v53 = vmax.f32 %v1371_v19, 0.0  ;;  %v3579_v19 = vld [vmem:[#allocation5 + $0x140] sm:$0xf] }
 0x90e   :  { %1854 = vmatpush.bf16.msrb.mxu3 %v3600_v59  ;;  %v3528_v59 = vor.u32 %v3856_v57, %v3525_v38 }
 0x90f   :  { %v1402_v23 = vpack.c.bf16 %v1398_v53, %v1396_v6  ;;  %v3870_v6 = vld [vmem:[#allocation5 + $0x148] sm:$0xf0]  ;;  %v3576_v53 = vor.u32 %v3868_v17, %v3573_v43 }
 0x910   :  { %v1389_v24 = vpop.f32.mrf.mxu3  ;;  %v3580_v54 = vor.u32 %v3870_v6, %v3579_v19 }
 0x911   :  { %v1390_v25 = vadd.f32 %v1389_v24, %v1273_v61  ;;  %1546 = vmatmul.bf16.gmra.mxu1 %v1402_v23  ;;  %v3559_v23 = vld [vmem:[#allocation5 + $0x120] sm:$0xf]  ;;  %v3866_v24 = vld [vmem:[#allocation5 + $0x128] sm:$0xf0] }
 0x912   :  { %1855 = vmatpush.bf16.msrb.mxu3 %v3588_v9  ;;  %v3855_v9 = vld [vmem:[#allocation5 + $0xd0] sm:$0xf0] }
 0x913   :  { %v1399_v5 = vmax.f32 %v1390_v25, 0.0  ;;  %v3865_v25 = vld [vmem:[#allocation5 + $0x124] sm:$0xf]  ;;  %v3520_v17 = vor.u32 %v3855_v9, %v3519_v7  ;;  %v4662_v7 = vld [vmem:[#allocation11 + $0x18] sm:$0xff] }
 0x915   :  { %v1403_v27 = vpack.c.bf16 %v1399_v5, %v1397_v26  ;;  %v3560_v26 = vor.u32 %v3866_v24, %v3559_v23  ;;  %v3561_v5 = vld [vmem:[#allocation5 + $0x12c] sm:$0xf0] }
 0x916   :  { %1856 = vmatpush.bf16.msrb.mxu3 %v3576_v53 }
 0x917   :  { %1565 = vmatmul.bf16.gmra.mxu2 %v1403_v27  ;;  %v3567_v27 = vld [vmem:[#allocation5 + $0x128] sm:$0xf]  ;;  %1838 = vmatpush.bf16.msrb.mxu0 %v3560_v26 }
 0x91c   :  { %v1542_v29 = vpop.f32.mrf.mxu1 }
 0x91d   :  { %v1543_v60 = vadd.f32 %v1542_v29, %v1436_v18  ;;  %v3867_v29 = vld [vmem:[#allocation5 + $0x130] sm:$0xf0] }
 0x924   :  { %v1544_v8 = vpop.f32.mrf.mxu1 }
 0x925   :  { %v1545_v32 = vadd.f32 %v1544_v8, %v1436_v18 }
 0x928   :  { %v1561_v30 = vpop.f32.mrf.mxu2 }
 0x929   :  { %v1562_v31 = vadd.f32 %v1561_v30, %v1543_v60  ;;  %v3568_v60 = vor.u32 %v3867_v29, %v3567_v27  ;;  %v3547_v30 = vld [vmem:[#allocation5 + $0x108] sm:$0xf] }
 0x92b   :  { %v1571_v15 = vadd.f32 %v1562_v31, %v4592_v14  ;;  %v3863_v31 = vld [vmem:[#allocation5 + $0x110] sm:$0xf0] }
 0x92c   :  { %v3548_v8 = vor.u32 %v3863_v31, %v3547_v30 }
 0x92d   :  { %1575 = vadd.xlane.f32.xlu1 %v1571_v15 }
 0x92e   :  { %1839 = vmatpush.bf16.msrb.mxu0 %v3548_v8  ;;  %v1655_v8 = vperm.slane %v4576_v62, 6 }
 0x930   :  { %v1563_v3 = vpop.f32.mrf.mxu2 }
 0x931   :  { %v1564_v33 = vadd.f32 %v1563_v3, %v1545_v32  ;;  %v3549_v32 = vld [vmem:[#allocation5 + $0x114] sm:$0xf0]  ;;  %v3555_v3 = vld [vmem:[#allocation5 + $0x110] sm:$0xf] }
 0x933   :  { %v1572_v20 = vadd.f32 %v1564_v33, %v4589_v13  ;;  %v3864_v33 = vld [vmem:[#allocation5 + $0x118] sm:$0xf0] }
 0x935   :  { %1577 = vadd.xlane.f32.xlu2 %v1572_v20 }
 0x98e   :  { %v1547_v21 = vpop.f32.mrf.mxu1 }
 0x98f   :  { %v1548_v63 = vadd.f32 %v1547_v21, %v1436_v18  ;;  %v3556_v21 = vor.u32 %v3864_v33, %v3555_v3 }
 0x996   :  { %v1549_v41 = vpop.f32.mrf.mxu1 }
 0x997   :  { %v1550_v46 = vadd.f32 %v1549_v41, %v1436_v18  ;;  %v3564_v18 = vor.u32 %v3865_v25, %v3561_v5  ;;  %v3860_v41 = vld [vmem:[#allocation5 + $0xf8] sm:$0xf0] }
 0x999   :  { %1857 = vmatpush.bf16.msrb.mxu3 %v3564_v18 }
 0x99a   :  { %v1566_v40 = vpop.f32.mrf.mxu2 }
 0x99b   :  { %v1567_v36 = vadd.f32 %v1566_v40, %v1548_v63 }
 0x99d   :  { %v4611_v37 = vadd.f32 %v1567_v36, %v1252_v52  ;;  %v3535_v36 = vld [vmem:[#allocation5 + $0xf0] sm:$0xf] }
 0x99f   :  { %1579 = vadd.xlane.f32.xlu0 %v4611_v37 }
 0x9a0   :  { %v1576_v42 = vpop.xlane.xlu1 %1575 }
 0x9a1   :  { %v1583_v14 = vmul.f32 %v1576_v42, %v4546_v22  ;;  %v3859_v42 = vld [vmem:[#allocation5 + $0xf4] sm:$0xf] }
 0x9a2   :  { %v1568_v45 = vpop.f32.mrf.mxu2 }
 0x9a3   :  { %v4615_v35 = vsub.f32 %v1571_v15, %v1583_v14  ;;  %v1569_v12 = vadd.f32 %v1568_v45, %v1550_v46  ;;  %v3862_v15 = vld [vmem:[#allocation5 + $0x10c] sm:$0xf]  ;;  %v3536_v46 = vor.u32 %v3860_v41, %v3535_v36  ;;  %v3537_v14 = vld [vmem:[#allocation5 + $0xfc] sm:$0xf0]  ;;  %v3543_v45 = vld [vmem:[#allocation5 + $0xf8] sm:$0xf] }
 0x9a5   :  { %v1591_v13 = vmul.f32 %v4615_v35, %v4615_v35  ;;  %v4620_v48 = vadd.f32 %v1569_v12, %v4604_v28  ;;  %v3876_v28 = vld [vmem:[#allocation5 + $0x178] sm:$0xf0]  ;;  %v3861_v12 = vld [vmem:[#allocation5 + $0x100] sm:$0xf0]  ;;  %1840 = vmatpush.bf16.msrb.mxu0 %v3536_v46 }
 0x9a6   :  { %v3604_v61 = vor.u32 %v3876_v28, %v3603_v58  ;;  %v3531_v58 = vld [vmem:[#allocation5 + $0xe0] sm:$0xf]  ;;  %v3858_v28 = vld [vmem:[#allocation5 + $0xe8] sm:$0xf0] }
 0x9a7   :  { %1595 = vadd.xlane.f32.xlu2 %v1591_v13  ;;  %1581 = vadd.xlane.f32.xlu1 %v4620_v48 }
 0x9a8   :  { %v1578_v50 = vpop.xlane.xlu2 %1577  ;;  %1873 = vmatpush.bf16.msra.mxu1 %v3604_v61  ;;  %v3532_v61 = vor.u32 %v3858_v28, %v3531_v58 }
 0x9a9   :  { %v1584_v51 = vmul.f32 %v1578_v50, %v4546_v22  ;;  %v3540_v50 = vor.u32 %v3859_v42, %v3537_v14  ;;  %1841 = vmatpush.bf16.msrb.mxu0 %v3524_v39 }
 0x9ab   :  { %v4624_v11 = vsub.f32 %v1572_v20, %v1584_v51  ;;  %v3552_v20 = vor.u32 %v3862_v15, %v3549_v32  ;;  %v3544_v51 = vor.u32 %v3861_v12, %v3543_v45 }
 0x9ac   :  { %1874 = vmatpush.bf16.msra.mxu1 %v3592_v10 }
 0x9ad   :  { %v1592_v52 = vmul.f32 %v4624_v11, %v4624_v11  ;;  %1858 = vmatpush.bf16.msrb.mxu3 %v3552_v20 }
 0x9af   :  { %1597 = vadd.xlane.f32.xlu0 %v1592_v52 }
 0x9b0   :  { %1875 = vmatpush.bf16.msra.mxu1 %v3580_v54 }
 0x9b1   :  { %1859 = vmatpush.bf16.msrb.mxu3 %v3540_v50 }
 0x9b4   :  { %1876 = vmatpush.bf16.msra.mxu1 %v3568_v60 }
 0x9b5   :  { %1860 = vmatpush.bf16.msrb.mxu3 %v3528_v59 }
 0x9b8   :  { %1877 = vmatpush.bf16.msra.mxu1 %v3556_v21  ;;  %v1660_v21 = vperm.slane %v4576_v62, 7 }
 0x9b9   :  { %1861 = vmatpush.bf16.msrb.mxu3 %v3516_v44  ;;  %v1667_v44 = vld [vmem:[#allocation11 + $0x20] sm:$0xff] }
 0x9bc   :  { %1878 = vmatpush.bf16.msra.mxu1 %v3544_v51 }
 0x9c0   :  { %1879 = vmatpush.bf16.msra.mxu1 %v3532_v61 }
 0x9c4   :  { %1880 = vmatpush.bf16.msra.mxu1 %v3520_v17 }
 0xa12   :  { %v1580_v63 = vpop.xlane.xlu0 %1579 }
 0xa13   :  { %v1585_v40 = vmul.f32 %v1580_v63, %v4546_v22 }
 0xa15   :  { %v4630_v13 = vsub.f32 %v4611_v37, %v1585_v40  ;;  %v3511_v37 = vld [vmem:[#allocation5 + $0xc0] sm:$0xf] }
 0xa16   :  { %v3512_v4 = vor.u32 %v3854_v49, %v3511_v37 }
 0xa17   :  { %v1593_v52 = vmul.f32 %v4630_v13, %v4630_v13 }
 0xa18   :  { %1842 = vmatpush.bf16.msrb.mxu0 %v3512_v4 }
 0xa19   :  { %1599 = vadd.xlane.f32.xlu1 %v1593_v52 }
 0xa1a   :  { %v1582_v1 = vpop.xlane.xlu1 %1581  ;;  %v1596_v2 = vpop.xlane.xlu2 %1595 }
 0xa1b   :  { %v1586_v10 = vmul.f32 %v1582_v1, %v4546_v22  ;;  %v1603_v16 = vmul.f32 %v1596_v2, %v4546_v22 }
 0xa1d   :  { %v4637_v34 = vsub.f32 %v4620_v48, %v1586_v10  ;;  %v1607_v43 = vadd.f32 1e-05, %v1603_v16 }
 0xa1f   :  { %4009 = vrsqrt.f32 %v1607_v43  ;;  %v1594_v19 = vmul.f32 %v4637_v34, %v4637_v34  ;;  %vm1617_vm2 = vweird.f32 %v1607_v43 }
 0xa21   :  { %1601 = vadd.xlane.f32.xlu2 %v1594_v19  ;;  %v1705_v19 = vperm.slane %v1667_v44, 0 }
 0xa22   :  { %v1598_v6 = vpop.xlane.xlu0 %1597 }
 0xa23   :  { %v1604_v53 = vmul.f32 %v1598_v6, %v4546_v22 }
 0xa25   :  { %v4010_v54 = vpop.eup %4009  ;;  %v1608_v23 = vadd.f32 1e-05, %v1604_v53 }
 0xa26   :  { %v1612_v24 = vmul.f32 %v4010_v54, %v1607_v43  ;;  %vm1618_vm15 = vweird.f32 %v4010_v54 }
 0xa27   :  { %4011 = vrsqrt.f32 %v1608_v23  ;;  %vm1619_vm3 = vmor %vm1617_vm2, %vm1618_vm15  ;;  %vm1627_vm5 = vweird.f32 %v1608_v23 }
 0xa28   :  { %v1613_v25 = vmul.f32 %v4010_v54, %v1612_v24 }
 0xa2a   :  { %v1614_v26 = vmul.f32 0.5, %v1613_v25 }
 0xa2c   :  { %v1615_v48 = vsub.f32 1.5, %v1614_v26 }
 0xa2d   :  { %v4012_v5 = vpop.eup %4011 }
 0xa2e   :  { %v1616_v27 = vmul.f32 %v4010_v54, %v1615_v48  ;;  %v1622_v29 = vmul.f32 %v4012_v5, %v1608_v23  ;;  %vm1628_vm4 = vweird.f32 %v4012_v5 }
 0xa2f   :  { %vm1629_vm6 = vmor %vm1627_vm5, %vm1628_vm4 }
 0xa30   :  { %v1623_v18 = vmul.f32 %v4012_v5, %v1622_v29  ;;  %v1620_v60 = vsel %vm1619_vm3, %v4010_v54, %v1616_v27 }
 0xa31   :  { %v1651_v15 = vmul.f32 %v1620_v60, %v4615_v35 }
 0xa32   :  { %v1624_v30 = vmul.f32 0.5, %v1623_v18 }
 0xa33   :  { %v1656_v20 = vmul.f32 %v1655_v8, %v1651_v15 }
 0xa34   :  { %v1625_v31 = vsub.f32 1.5, %v1624_v30 }
 0xa35   :  { %v4646_v40 = vadd.f32 %v1660_v21, %v1656_v20 }
 0xa36   :  { %v1626_v32 = vmul.f32 %v4012_v5, %v1625_v31 }
 0xa38   :  { %v1630_v3 = vsel %vm1629_vm6, %v4012_v5, %v1626_v32 }
 0xa39   :  { %v1652_v33 = vmul.f32 %v1630_v3, %v4624_v11 }
 0xa3b   :  { %v1657_v63 = vmul.f32 %v1655_v8, %v1652_v33 }
 0xa3d   :  { %v4648_v36 = vadd.f32 %v1660_v21, %v1657_v63 }
 0xa3f   :  { %v1669_v41 = vpack.c.bf16 %v4648_v36, %v4646_v40 }
 0xa41   :  { %1843 = vmatmul.bf16.vlgmr.msrb.gmra.mxu0 %v1669_v41  ;;  %1862 = vmatmul.bf16.vlgmr.msrb.gmra.mxu3 %v1669_v41 }
 0xa42   :  { %1881 = vmatmul.bf16.vlgmr.msra.gmra.mxu1 %v1669_v41 }
 0xa8c   :  { %v1600_v35 = vpop.xlane.xlu1 %1599 }
 0xa8d   :  { %v1605_v42 = vmul.f32 %v1600_v35, %v4546_v22 }
 0xa8f   :  { %v1609_v46 = vadd.f32 1e-05, %v1605_v42 }
 0xa91   :  { %4013 = vrsqrt.f32 %v1609_v46  ;;  %vm1637_vm8 = vweird.f32 %v1609_v46 }
 0xa94   :  { %v1602_v11 = vpop.xlane.xlu2 %1601 }
 0xa95   :  { %v1606_v14 = vmul.f32 %v1602_v11, %v4546_v22 }
 0xa97   :  { %v4014_v62 = vpop.eup %4013  ;;  %v1610_v45 = vadd.f32 1e-05, %v1606_v14 }
 0xa98   :  { %v1632_v12 = vmul.f32 %v4014_v62, %v1609_v46  ;;  %vm1638_vm7 = vweird.f32 %v4014_v62 }
 0xa99   :  { %4015 = vrsqrt.f32 %v1610_v45  ;;  %vm1639_vm9 = vmor %vm1637_vm8, %vm1638_vm7  ;;  %vm1647_vm11 = vweird.f32 %v1610_v45 }
 0xa9a   :  { %v1633_v50 = vmul.f32 %v4014_v62, %v1632_v12 }
 0xa9c   :  { %v1634_v51 = vmul.f32 0.5, %v1633_v50 }
 0xa9e   :  { %v1635_v52 = vsub.f32 1.5, %v1634_v51 }
 0xa9f   :  { %v4016_v55 = vpop.eup %4015 }
 0xaa0   :  { %v1636_v56 = vmul.f32 %v4014_v62, %v1635_v52  ;;  %v1642_v57 = vmul.f32 %v4016_v55, %v1610_v45  ;;  %vm1648_vm10 = vweird.f32 %v4016_v55 }
 0xaa1   :  { %vm1649_vm12 = vmor %vm1647_vm11, %vm1648_vm10 }
 0xaa2   :  { %v1643_v39 = vmul.f32 %v4016_v55, %v1642_v57  ;;  %v1640_v38 = vsel %vm1639_vm9, %v4014_v62, %v1636_v56 }
 0xaa3   :  { %v1653_v59 = vmul.f32 %v1640_v38, %v4630_v13  ;;  %v1704_v13 = vperm.slane %v4662_v7, 0 }
 0xaa4   :  { %v1644_v58 = vmul.f32 0.5, %v1643_v39 }
 0xaa5   :  { %v1658_v0 = vmul.f32 %v1655_v8, %v1653_v59 }
 0xaa6   :  { %v1645_v28 = vsub.f32 1.5, %v1644_v58 }
 0xaa7   :  { %v4656_v2 = vadd.f32 %v1660_v21, %v1658_v0 }
 0xaa8   :  { %v1646_v61 = vmul.f32 %v4016_v55, %v1645_v28 }
 0xaaa   :  { %v1650_v37 = vsel %vm1649_vm12, %v4016_v55, %v1646_v61 }
 0xaab   :  { %v1654_v49 = vmul.f32 %v1650_v37, %v4637_v34  ;;  %v1668_v34 = vld [vmem:[#allocation11 + $0x28] sm:$0xff] }
 0xaac   :  { %v1706_v53 = vperm.slane %v1668_v34, 0 }
 0xaad   :  { %v1659_v1 = vmul.f32 %v1655_v8, %v1654_v49 }
 0xaaf   :  { %v4658_v4 = vadd.f32 %v1660_v21, %v1659_v1 }
 0xab1   :  { %v1670_v47 = vpack.c.bf16 %v4658_v4, %v4656_v2 }
 0xab3   :  { %1848 = vmatmul.bf16.gmra.mxu0 %v1670_v47  ;;  %1867 = vmatmul.bf16.gmra.mxu3 %v1670_v47 }
 0xab4   :  { %1886 = vmatmul.bf16.gmra.mxu1 %v1670_v47 }
 0xabe   :  { %v1844_v9 = vpop.f32.mrf.mxu0 }
 0xabf   :  { %v1882_v10 = vpop.f32.mrf.mxu1  ;;  %v1845_v16 = vadd.f32 %v1844_v9, %v1704_v13 }
 0xac0   :  { %v1883_v5 = vadd.f32 %v1882_v10, %v1706_v53 }
 0xac1   :  { %v1892_v17 = vmul.f32 0.17677669, %v1845_v16 }
 0xac2   :  { %v1921_v8 = vpack.c.bf16 %v1883_v5, %v1883_v5 }
 0xac3   :  { %v1913_v24 = vpack.c.bf16 %v1892_v17, %v1892_v17 }
 0xac4   :  { %v1863_v43 = vpop.f32.mrf.mxu3  ;;  %v2040_v63 = vunpack.c.l.b16 %v1921_v8 }
 0xac5   :  { %v1864_v25 = vadd.f32 %v1863_v43, %v1705_v19  ;;  %v1927_v29 = vunpack.c.l.b16 %v1913_v24 }
 0xac6   :  { %v1846_v6 = vpop.f32.mrf.mxu0 }
 0xac7   :  { %v1847_v54 = vadd.f32 %v1846_v6, %v1704_v13  ;;  %v1884_v23 = vpop.f32.mrf.mxu1  ;;  %v1917_v60 = vpack.c.bf16 %v1864_v25, %v1864_v25 }
 0xac8   :  { %v1885_v48 = vadd.f32 %v1884_v23, %v1706_v53 }
 0xac9   :  { %v1893_v26 = vmul.f32 0.17677669, %v1847_v54  ;;  %v1932_v33 = vunpack.c.l.b16 %v1917_v60 }
 0xaca   :  { %v1922_v31 = vpack.c.bf16 %v1885_v48, %v1885_v48 }
 0xacb   :  { %v1914_v27 = vpack.c.bf16 %v1893_v26, %v1893_v26 }
 0xacc   :  { %v1865_v18 = vpop.f32.mrf.mxu3  ;;  %v2041_v20 = vunpack.c.l.b16 %v1922_v31 }
 0xacd   :  { %v1928_v30 = vunpack.c.l.b16 %v1914_v27  ;;  %v1866_v15 = vadd.f32 %v1865_v18, %v1705_v19 }
 0xace   :  { %v4671_v35 = vpack.c.b16 %v2041_v20, %v2040_v63 }
 0xacf   :  { %v4665_v32 = vpack.c.b16 %v1928_v30, %v1927_v29  ;;  %v1918_v3 = vpack.c.bf16 %v1866_v15, %v1866_v15 }
 0xad1   :  { %v1933_v21 = vunpack.c.l.b16 %v1918_v3  ;;  %2091 = vrot.lane.b32.xlu1 %v4665_v32, %s4293_s4 }
 0xad3   :  { %v4669_v41 = vpack.c.b16 %v1933_v21, %v1932_v33 }
 0xad5   :  { %2093 = vrot.lane.b32.xlu0 %v4669_v41, %s4293_s4  ;;  %v1939_v42 = vsel %vm390_vm0, %v4669_v41, 0 }
 0xad6   :  { %1948 = vmatpush.bf16.xpose.msrb.mxu2 %v1939_v42 }
 0xadd   :  { %3605 = vmatmul.msk.bf16.vlgmr.msrb.gmra.mxu2 %vm390_vm0, %v4665_v32 }
 0xade   :  { %2054 = vmatpush.bf16.msra.mxu2 %v4671_v35 }
 0xb30   :  { %v1849_v46 = vpop.f32.mrf.mxu0 }
 0xb31   :  { %v1887_v11 = vpop.f32.mrf.mxu1  ;;  %v1850_v58 = vadd.f32 %v1849_v46, %v1704_v13 }
 0xb32   :  { %v1888_v14 = vadd.f32 %v1887_v11, %v1706_v53 }
 0xb33   :  { %v1894_v0 = vmul.f32 0.17677669, %v1850_v58 }
 0xb34   :  { %v1923_v12 = vpack.c.bf16 %v1888_v14, %v1888_v14 }
 0xb35   :  { %v1915_v16 = vpack.c.bf16 %v1894_v0, %v1894_v0 }
 0xb36   :  { %v1868_v62 = vpop.f32.mrf.mxu3  ;;  %v2068_v57 = vunpack.c.l.b16 %v1923_v12 }
 0xb37   :  { %v1869_v52 = vadd.f32 %v1868_v62, %v1705_v19  ;;  %v1957_v43 = vunpack.c.l.b16 %v1915_v16 }
 0xb38   :  { %v1851_v50 = vpop.f32.mrf.mxu0 }
 0xb39   :  { %v1889_v45 = vpop.f32.mrf.mxu1  ;;  %v1852_v56 = vadd.f32 %v1851_v50, %v1704_v13  ;;  %v1919_v28 = vpack.c.bf16 %v1869_v52, %v1869_v52 }
 0xb3a   :  { %v1890_v51 = vadd.f32 %v1889_v45, %v1706_v53 }
 0xb3b   :  { %v1895_v37 = vmul.f32 0.17677669, %v1852_v56  ;;  %v1962_v1 = vunpack.c.l.b16 %v1919_v28 }
 0xb3c   :  { %v1924_v55 = vpack.c.bf16 %v1890_v51, %v1890_v51 }
 0xb3d   :  { %v1916_v9 = vpack.c.bf16 %v1895_v37, %v1895_v37 }
 0xb3e   :  { %v2069_v39 = vunpack.c.l.b16 %v1924_v55  ;;  %v1870_v38 = vpop.f32.mrf.mxu3 }
 0xb3f   :  { %v1871_v59 = vadd.f32 %v1870_v38, %v1705_v19  ;;  %v1958_v34 = vunpack.c.l.b16 %v1916_v9 }
 0xb40   :  { %v4680_v61 = vpack.c.b16 %v2069_v39, %v2068_v57 }
 0xb41   :  { %v1920_v49 = vpack.c.bf16 %v1871_v59, %v1871_v59  ;;  %v4688_v19 = vpack.c.b16 %v1958_v34, %v1957_v43 }
 0xb42   :  { %2082 = vmatpush.bf16.msra.mxu3 %v4680_v61 }
 0xb43   :  { %v1963_v47 = vunpack.c.l.b16 %v1920_v49  ;;  %v2092_v6 = vpop.permute.xlu1 %2091 }
 0xb45   :  { %v4683_v10 = vpack.c.b16 %v1963_v47, %v1962_v1 }
 0xb47   :  { %v2094_v44 = vpop.permute.xlu0 %2093  ;;  %v1969_v17 = vsel %vm390_vm0, %v4683_v10, 0 }
 0xb48   :  { %v2099_v13 = vsel %vm390_vm0, %v2094_v44, 0  ;;  %1978 = vmatpush.bf16.xpose.msra.mxu0 %v1969_v17 }
 0xb4f   :  { %3606 = vmatmul.msk.bf16.vlgmr.msra.gmra.mxu0 %vm390_vm0, %v4688_v19 }
 0xb50   :  { %2108 = vmatpush.bf16.xpose.msrb.mxu0 %v2099_v13 }
 0xb5f   :  { %3609 = vmatmul.msk.bf16.vlgmr.msrb.gmra.mxu0 %vm390_vm0, %v2092_v6 }
 0xb60   :  { %v1950_v53 = vpop.f32.mrf.mxu2 }
 0xb61   :  { %v1985_v54 = vsel %vm441_vm1, %v1950_v53, -inf }
 0xb62   :  { %1986 = vmax.xlane.f32.xlu2 %v1985_v54 }
 0xb68   :  { %v1952_v23 = vpop.f32.mrf.mxu2 }
 0xb69   :  { %v1988_v24 = vsel %vm441_vm1, %v1952_v23, -inf }
 0xb6a   :  { %1989 = vmax.xlane.f32.xlu2 %v1988_v24  ;;  %v3877_v24 = vld [vmem:[#allocation7 + $0x40] sm:$0xff] }
 0xbcc   :  { %v4695_v25 = vpop.f32.mrf.mxu0 }
 0xbcd   :  { %v1991_v63 = vsel %vm441_vm1, %v4695_v25, -inf }
 0xbd4   :  { %v4697_v26 = vpop.f32.mrf.mxu0 }
 0xbd5   :  { %v1987_v48 = vpop.xlane.xlu2 %1986  ;;  %v1994_v39 = vsel %vm441_vm1, %v4697_v26, -inf }
 0xbd6   :  { %v1997_v5 = vsub.f32 %v1950_v53, %v1987_v48 }
 0xbd8   :  { %v2001_v27 = vmul.f32 1.442695, %v1997_v5 }
 0xbda   :  { %4017 = vpow2.f32 %v2001_v27 }
 0xbdc   :  { %v2110_v29 = vpop.f32.mrf.mxu0 }
 0xbdd   :  { %v1990_v18 = vpop.xlane.xlu2 %1989  ;;  %v2139_v60 = vsel %vm441_vm1, %v2110_v29, -inf }
 0xbde   :  { %v1998_v30 = vsub.f32 %v1952_v23, %v1990_v18  ;;  %2140 = vmax.xlane.f32.xlu0 %v2139_v60  ;;  %v3878_v23 = vld [vmem:[#allocation7 + $0x48] sm:$0xff] }
 0xbe0   :  { %v4018_v31 = vpop.eup %4017  ;;  %v2003_v15 = vmul.f32 1.442695, %v1998_v30 }
 0xbe1   :  { %v2009_v8 = vsel %vm441_vm1, %v4018_v31, 0.0 }
 0xbe2   :  { %4019 = vpow2.f32 %v2003_v15  ;;  %2010 = vadd.xlane.f32.xlu1 %v2009_v8 }
 0xbe4   :  { %v2112_v20 = vpop.f32.mrf.mxu0 }
 0xbe5   :  { %v2142_v21 = vsel %vm441_vm1, %v2112_v20, -inf }
 0xbe8   :  { %v4020_v3 = vpop.eup %4019 }
 0xbe9   :  { %v2012_v33 = vsel %vm441_vm1, %v4020_v3, 0.0 }
 0xbea   :  { %2013 = vadd.xlane.f32.xlu2 %v2012_v33 }
 0xbf2   :  { %2115 = vrot.lane.b32.xlu0 %v4688_v19, %s4293_s4  ;;  %2143 = vmax.xlane.f32.xlu2 %v2142_v21 }
 0xbfa   :  { %2315 = vrot.lane.b32.xlu0 %v4669_v41, %s4287_s18 }
 0xc02   :  { %2313 = vrot.lane.b32.xlu0 %v4665_v32, %s4287_s18 }
 0xc0a   :  { %2117 = vrot.lane.b32.xlu2 %v4683_v10, %s4293_s4 }
 0xc2c   :  { %1992 = vmax.xlane.f32.xlu0 %v1991_v63 }
 0xc51   :  { %v2141_v42 = vpop.xlane.xlu0 %2140 }
 0xc52   :  { %v2151_v46 = vsub.f32 %v2110_v29, %v2141_v42 }
 0xc54   :  { %v2155_v11 = vmul.f32 1.442695, %v2151_v46 }
 0xc55   :  { %v2011_v14 = vpop.xlane.xlu1 %2010 }
 0xc56   :  { %4021 = vpow2.f32 %v2155_v11 }
 0xc57   :  { %4023 = vrcp.f32 %v2011_v14 }
 0xc5c   :  { %v4022_v62 = vpop.eup %4021 }
 0xc5d   :  { %v2014_v45 = vpop.xlane.xlu2 %2013  ;;  %v2163_v12 = vsel %vm441_vm1, %v4022_v62, 0.0  ;;  %v4024_v50 = vpop.eup %4023 }
 0xc5e   :  { %4025 = vrcp.f32 %v2014_v45  ;;  %2164 = vadd.xlane.f32.xlu2 %v2163_v12  ;;  %v2025_v51 = vmul.f32 %v4024_v50, %v4018_v31 }
 0xc60   :  { %v2029_v55 = vpack.c.bf16 %v2025_v51, %v2025_v51 }
 0xc62   :  { %v2035_v59 = vunpack.c.l.b16 %v2029_v55 }
 0xc64   :  { %v4026_v52 = vpop.eup %4025  ;;  %v2116_v16 = vpop.permute.xlu0 %2115 }
 0xc65   :  { %v2026_v56 = vmul.f32 %v4026_v52, %v4020_v3  ;;  %v2144_v57 = vpop.xlane.xlu2 %2143 }
 0xc66   :  { %v2152_v38 = vsub.f32 %v2112_v20, %v2144_v57  ;;  %1995 = vmax.xlane.f32.xlu2 %v1994_v39 }
 0xc67   :  { %v2030_v58 = vpack.c.bf16 %v2026_v56, %v2026_v56 }
 0xc68   :  { %v2157_v28 = vmul.f32 1.442695, %v2152_v38 }
 0xc69   :  { %v2036_v37 = vunpack.c.l.b16 %v2030_v58  ;;  %v3880_v58 = vld [vmem:[#allocation7 + $0x58] sm:$0xff] }
 0xc6a   :  { %4027 = vpow2.f32 %v2157_v28  ;;  %2263 = vmatpush.bf16.msra.mxu0 %v3880_v58 }
 0xc6b   :  { %v2037_v49 = vpack.c.b16 %v2036_v37, %v2035_v59 }
 0xc6c   :  { %v2316_v44 = vpop.permute.xlu0 %2315 }
 0xc6d   :  { %3607 = vmatmul.msk.bf16.vlgmr.msra.gmra.mxu2 %vm441_vm1, %v2037_v49  ;;  %v2118_v0 = vpop.permute.xlu2 %2117  ;;  %v2321_v12 = vsel %vm390_vm0, %v2316_v44, 0 }
 0xc6e   :  { %v2123_v1 = vsel %vm390_vm0, %v2118_v0, 0 }
 0xc6f   :  { %2132 = vmatpush.bf16.xpose.msrb.mxu1 %v2123_v1 }
 0xc70   :  { %v4028_v47 = vpop.eup %4027 }
 0xc71   :  { %v2166_v9 = vsel %vm441_vm1, %v4028_v47, 0.0 }
 0xc72   :  { %2167 = vadd.xlane.f32.xlu1 %v2166_v9 }
 0xc74   :  { %v2314_v17 = vpop.permute.xlu0 %2313 }
 0xc76   :  { %3610 = vmatmul.msk.bf16.vlgmr.msrb.gmra.mxu1 %vm390_vm0, %v2116_v16 }
 0xc77   :  { %2300 = vmatpush.bf16.msra.mxu1 %v3878_v23 }
 0xc7b   :  { %2301 = vmatpush.bf16.msra.mxu1 %v3877_v24 }
 0xc8b   :  { %2192 = vrot.lane.b32.xlu1 %v4671_v35, %s4293_s4 }
 0xc9f   :  { %v1993_v13 = vpop.xlane.xlu0 %1992 }
 0xca0   :  { %v1999_v34 = vsub.f32 %v4695_v25, %v1993_v13 }
 0xca2   :  { %v2005_v43 = vmul.f32 1.442695, %v1999_v34 }
 0xca4   :  { %4029 = vpow2.f32 %v2005_v43 }
 0xcaa   :  { %v4030_v6 = vpop.eup %4029 }
 0xcab   :  { %v2015_v53 = vsel %vm441_vm1, %v4030_v6, 0.0 }
 0xcb5   :  { %2016 = vadd.xlane.f32.xlu1 %v2015_v53 }
 0xcd1   :  { %v2165_v54 = vpop.xlane.xlu2 %2164 }
 0xcd9   :  { %v1996_v48 = vpop.xlane.xlu2 %1995 }
 0xcda   :  { %v2000_v5 = vsub.f32 %v4697_v26, %v1996_v48 }
 0xcdc   :  { %v2007_v27 = vmul.f32 1.442695, %v2000_v5 }
 0xcde   :  { %4031 = vpow2.f32 %v2007_v27 }
 0xce4   :  { %v4032_v29 = vpop.eup %4031 }
 0xce5   :  { %v2018_v18 = vsel %vm441_vm1, %v4032_v29, 0.0  ;;  %v2168_v25 = vpop.xlane.xlu1 %2167 }
 0xce6   :  { %2019 = vadd.xlane.f32.xlu2 %v2018_v18  ;;  %4033 = vrcp.f32 %v2168_v25 }
 0xce7   :  { %4035 = vrcp.f32 %v2165_v54 }
 0xcec   :  { %v4034_v60 = vpop.eup %4033 }
 0xced   :  { %v4036_v31 = vpop.eup %4035  ;;  %v2180_v15 = vmul.f32 %v4034_v60, %v4028_v47  ;;  %v3879_v47 = vld [vmem:[#allocation7 + $0x50] sm:$0xff] }
 0xcee   :  { %v2179_v33 = vmul.f32 %v4036_v31, %v4022_v62  ;;  %2264 = vmatpush.bf16.msra.mxu0 %v3879_v47 }
 0xcef   :  { %v2184_v20 = vpack.c.bf16 %v2180_v15, %v2180_v15 }
 0xcf0   :  { %v2056_v30 = vpop.f32.mrf.mxu2  ;;  %v2183_v21 = vpack.c.bf16 %v2179_v33, %v2179_v33 }
 0xcf1   :  { %v2190_v42 = vunpack.c.l.b16 %v2184_v20 }
 0xcf2   :  { %v2189_v14 = vunpack.c.l.b16 %v2183_v21 }
 0xcf3   :  { %v2134_v8 = vpop.f32.mrf.mxu1 }
 0xcf4   :  { %v2145_v3 = vsel %vm441_vm1, %v2134_v8, -inf  ;;  %v2191_v50 = vpack.c.b16 %v2190_v42, %v2189_v14 }
 0xcf5   :  { %2146 = vmax.xlane.f32.xlu2 %v2145_v3 }
 0xcf8   :  { %v2058_v26 = vpop.f32.mrf.mxu2 }
 0xcf9   :  { %v2089_v63 = vpack.c.bf16 %v2058_v26, %v2056_v30 }
 0xcfb   :  { %v2136_v46 = vpop.f32.mrf.mxu1  ;;  %3631 = vmatmul.msk.bf16.vlgmr.msra.gmra.mxu1 %vm390_vm0, %v2089_v63 }
 0xcfc   :  { %v2148_v11 = vsel %vm441_vm1, %v2136_v46, -inf }
 0xcfd   :  { %v2193_v45 = vpop.permute.xlu1 %2192  ;;  %2149 = vmax.xlane.f32.xlu2 %v2148_v11 }
 0xcfe   :  { %2205 = vmatpush.bf16.msrb.mxu2 %v2193_v45 }
 0xd01   :  { %3611 = vmatmul.msk.bf16.vlgmr.msrb.gmra.mxu2 %vm441_vm1, %v2191_v50 }
 0xd02   :  { %2330 = vmatpush.bf16.xpose.msra.mxu2 %v2321_v12 }
 0xd11   :  { %3633 = vmatmul.msk.bf16.vlgmr.msra.gmra.mxu2 %vm390_vm0, %v2314_v17 }
 0xd28   :  { %v2017_v62 = vpop.xlane.xlu1 %2016 }
 0xd29   :  { %4037 = vrcp.f32 %v2017_v62 }
 0xd2f   :  { %v4038_v52 = vpop.eup %4037 }
 0xd30   :  { %v2027_v55 = vmul.f32 %v4038_v52, %v4030_v6 }
 0xd32   :  { %v2031_v57 = vpack.c.bf16 %v2027_v55, %v2027_v55 }
 0xd34   :  { %v2063_v28 = vunpack.c.l.b16 %v2031_v57 }
 0xd59   :  { %v2020_v51 = vpop.xlane.xlu2 %2019 }
 0xd5a   :  { %4039 = vrcp.f32 %v2020_v51 }
 0xd60   :  { %v4040_v56 = vpop.eup %4039 }
 0xd61   :  { %v2028_v39 = vmul.f32 %v4040_v56, %v4032_v29 }
 0xd63   :  { %v2032_v38 = vpack.c.bf16 %v2028_v39, %v2028_v39 }
 0xd65   :  { %v2064_v59 = vunpack.c.l.b16 %v2032_v38 }
 0xd67   :  { %v2065_v37 = vpack.c.b16 %v2064_v59, %v2063_v28 }
 0xd68   :  { %v2147_v49 = vpop.xlane.xlu2 %2146 }
 0xd69   :  { %v2153_v0 = vsub.f32 %v2134_v8, %v2147_v49  ;;  %3608 = vmatmul.msk.bf16.vlgmr.msra.gmra.mxu3 %vm441_vm1, %v2065_v37 }
 0xd6b   :  { %v2159_v1 = vmul.f32 1.442695, %v2153_v0 }
 0xd6d   :  { %4041 = vpow2.f32 %v2159_v1 }
 0xd70   :  { %v2150_v9 = vpop.xlane.xlu2 %2149 }
 0xd71   :  { %v2154_v16 = vsub.f32 %v2136_v46, %v2150_v9 }
 0xd73   :  { %v4042_v44 = vpop.eup %4041  ;;  %v2161_v17 = vmul.f32 1.442695, %v2154_v16 }
 0xd74   :  { %v2169_v13 = vsel %vm441_vm1, %v4042_v44, 0.0 }
 0xd75   :  { %4043 = vpow2.f32 %v2161_v17  ;;  %2170 = vadd.xlane.f32.xlu2 %v2169_v13 }
 0xd78   :  { %v4763_v28 = vpop.f32.mrf.mxu1 }
 0xd7b   :  { %v4044_v34 = vpop.eup %4043 }
 0xd7c   :  { %v2172_v43 = vsel %vm441_vm1, %v4044_v34, 0.0 }
 0xd7d   :  { %2173 = vadd.xlane.f32.xlu1 %v2172_v43 }
 0xd80   :  { %v4765_v59 = vpop.f32.mrf.mxu1 }
 0xd84   :  { %v2207_v6 = vpop.f32.mrf.mxu2 }
 0xd8c   :  { %v2209_v53 = vpop.f32.mrf.mxu2 }
 0xd8d   :  { %v2237_v54 = vpack.c.bf16 %v2209_v53, %v2207_v6 }
 0xd8f   :  { %3621 = vmatmul.msk.bf16.vlgmr.msra.gmra.mxu0 %vm390_vm0, %v2237_v54 }
 0xd94   :  { %v2332_v23 = vpop.f32.mrf.mxu2 }
 0xd95   :  { %v2361_v24 = vsel %vm441_vm1, %v2332_v23, -inf }
 0xd96   :  { %2362 = vmax.xlane.f32.xlu2 %v2361_v24  ;;  %2337 = vrot.lane.b32.xlu1 %v4688_v19, %s4287_s18 }
 0xd9c   :  { %v2334_v48 = vpop.f32.mrf.mxu2 }
 0xd9d   :  { %v2364_v5 = vsel %vm441_vm1, %v2334_v48, -inf }
 0xd9e   :  { %2365 = vmax.xlane.f32.xlu0 %v2364_v5  ;;  %2504 = vrot.lane.b32.xlu1 %v4669_v41, %s4294_s5 }
 0xda6   :  { %2414 = vrot.lane.b32.xlu1 %v4671_v35, %s4287_s18 }
 0xdae   :  { %2339 = vrot.lane.b32.xlu2 %v4683_v10, %s4287_s18  ;;  %2502 = vrot.lane.b32.xlu1 %v4665_v32, %s4294_s5 }
 0xdb2   :  { %2217 = vrot.lane.b32.xlu0 %v4680_v61, %s4293_s4 }
 0xdb6   :  { %2528 = vrot.lane.b32.xlu1 %v4683_v10, %s4294_s5 }
 0xde8   :  { %v2171_v25 = vpop.xlane.xlu2 %2170 }
 0xdec   :  { %v2084_v27 = vpop.f32.mrf.mxu3 }
 0xdf0   :  { %v2174_v41 = vpop.xlane.xlu1 %2173 }
 0xdf4   :  { %v2086_v29 = vpop.f32.mrf.mxu3 }
 0xdf5   :  { %v2090_v18 = vpack.c.bf16 %v2086_v29, %v2084_v27 }
 0xdf7   :  { %3632 = vmatmul.msk.bf16.gmra.mxu1 %vm390_vm0, %v2090_v18 }
 0xe08   :  { %v2338_v60 = vpop.permute.xlu1 %2337 }
 0xe09   :  { %v2363_v30 = vpop.xlane.xlu2 %2362 }
 0xe0a   :  { %v2373_v31 = vsub.f32 %v2332_v23, %v2363_v30  ;;  %v3881_v30 = vld [vmem:[#allocation7 + $0x60] sm:$0xff] }
 0xe0c   :  { %v2377_v15 = vmul.f32 1.442695, %v2373_v31 }
 0xe0e   :  { %4045 = vpow2.f32 %v2377_v15 }
 0xe0f   :  { %4047 = vrcp.f32 %v2174_v41 }
 0xe10   :  { %v2505_v8 = vpop.permute.xlu1 %2504  ;;  %4049 = vrcp.f32 %v2171_v25 }
 0xe11   :  { %v2510_v32 = vsel %vm390_vm0, %v2505_v8, 0  ;;  %v2366_v3 = vpop.xlane.xlu0 %2365  ;;  %v2340_v52 = vpop.permute.xlu2 %2339 }
 0xe12   :  { %v2374_v33 = vsub.f32 %v2334_v48, %v2366_v3  ;;  %2519 = vmatpush.bf16.xpose.msrb.mxu1 %v2510_v32  ;;  %v2345_v57 = vsel %vm390_vm0, %v2340_v52, 0 }
 0xe14   :  { %v4046_v10 = vpop.eup %4045  ;;  %v2379_v20 = vmul.f32 1.442695, %v2374_v33 }
 0xe15   :  { %v2385_v26 = vsel %vm441_vm1, %v4046_v10, 0.0  ;;  %v4048_v21 = vpop.eup %4047 }
 0xe16   :  { %4051 = vpow2.f32 %v2379_v20  ;;  %2386 = vadd.xlane.f32.xlu0 %v2385_v26  ;;  %v4050_v42 = vpop.eup %4049  ;;  %v2182_v46 = vmul.f32 %v4048_v21, %v4044_v34 }
 0xe17   :  { %v2181_v14 = vmul.f32 %v4050_v42, %v4042_v44 }
 0xe18   :  { %v2415_v63 = vpop.permute.xlu1 %2414  ;;  %v2186_v12 = vpack.c.bf16 %v2182_v46, %v2182_v46 }
 0xe19   :  { %2427 = vmatpush.bf16.msrb.mxu2 %v2415_v63  ;;  %v2185_v50 = vpack.c.bf16 %v2181_v14, %v2181_v14 }
 0xe1a   :  { %v2215_v51 = vunpack.c.l.b16 %v2186_v12 }
 0xe1b   :  { %v2214_v55 = vunpack.c.l.b16 %v2185_v50 }
 0xe1c   :  { %v4052_v11 = vpop.eup %4051 }
 0xe1d   :  { %v2388_v45 = vsel %vm441_vm1, %v4052_v11, 0.0  ;;  %v2216_v39 = vpack.c.b16 %v2215_v51, %v2214_v55 }
 0xe1e   :  { %2389 = vadd.xlane.f32.xlu2 %v2388_v45 }
 0xe20   :  { %v2503_v62 = vpop.permute.xlu1 %2502 }
 0xe21   :  { %3647 = vmatmul.msk.bf16.vlgmr.msrb.gmra.mxu1 %vm390_vm0, %v2503_v62 }
 0xe24   :  { %v2218_v56 = vpop.permute.xlu0 %2217 }
 0xe25   :  { %2230 = vmatpush.bf16.msrb.mxu3 %v2218_v56 }
 0xe28   :  { %v2529_v38 = vpop.permute.xlu1 %2528  ;;  %3612 = vmatmul.msk.bf16.vlgmr.msrb.gmra.mxu3 %vm441_vm1, %v2216_v39 }
 0xe29   :  { %2354 = vmatpush.bf16.xpose.msra.mxu3 %v2345_v57  ;;  %v2534_v58 = vsel %vm390_vm0, %v2529_v38, 0 }
 0xe2a   :  { %2543 = vmatpush.bf16.xpose.msra.mxu2 %v2534_v58  ;;  %2526 = vrot.lane.b32.xlu0 %v4688_v19, %s4294_s5 }
 0xe38   :  { %3634 = vmatmul.msk.bf16.vlgmr.msra.gmra.mxu3 %vm390_vm0, %v2338_v60  ;;  %v3882_v60 = vld [vmem:[#allocation7 + $0x68] sm:$0xff] }
 0xe39   :  { %2485 = vmatpush.bf16.msrb.mxu0 %v3882_v60 }
 0xe3d   :  { %2486 = vmatpush.bf16.msrb.mxu0 %v3881_v30 }
 0xe74   :  { %v4767_v49 = vpop.f32.mrf.mxu1 }
 0xe7c   :  { %v4769_v9 = vpop.f32.mrf.mxu1 }
 0xe89   :  { %v2387_v37 = vpop.xlane.xlu0 %2386 }
 0xe8a   :  { %4053 = vrcp.f32 %v2387_v37 }
 0xe90   :  { %v4054_v1 = vpop.eup %4053 }
 0xe91   :  { %v2390_v0 = vpop.xlane.xlu2 %2389  ;;  %v2401_v47 = vmul.f32 %v4054_v1, %v4046_v10 }
 0xe92   :  { %4055 = vrcp.f32 %v2390_v0 }
 0xe93   :  { %v2405_v44 = vpack.c.bf16 %v2401_v47, %v2401_v47 }
 0xe95   :  { %v2411_v13 = vunpack.c.l.b16 %v2405_v44 }
 0xe98   :  { %v4056_v16 = vpop.eup %4055 }
 0xe99   :  { %v2402_v17 = vmul.f32 %v4056_v16, %v4052_v11 }
 0xe9b   :  { %v2406_v19 = vpack.c.bf16 %v2402_v17, %v2402_v17 }
 0xe9c   :  { %v2527_v24 = vpop.permute.xlu0 %2526 }
 0xe9d   :  { %v2412_v34 = vunpack.c.l.b16 %v2406_v19 }
 0xe9e   :  { %v2521_v43 = vpop.f32.mrf.mxu1 }
 0xe9f   :  { %v2413_v6 = vpack.c.b16 %v2412_v34, %v2411_v13  ;;  %v2550_v25 = vsel %vm441_vm1, %v2521_v43, -inf }
 0xea1   :  { %3635 = vmatmul.msk.bf16.vlgmr.msrb.gmra.mxu2 %vm441_vm1, %v2413_v6 }
 0xea6   :  { %v2523_v53 = vpop.f32.mrf.mxu1 }
 0xea7   :  { %v2553_v54 = vsel %vm441_vm1, %v2523_v53, -inf }
 0xea8   :  { %2554 = vmax.xlane.f32.xlu0 %v2553_v54 }
 0xeab   :  { %v2232_v23 = vpop.f32.mrf.mxu3 }
 0xeb1   :  { %3648 = vmatmul.msk.bf16.vlgmr.msra.gmra.mxu2 %vm390_vm0, %v2527_v24 }
 0xeb3   :  { %v2234_v48 = vpop.f32.mrf.mxu3 }
 0xeb4   :  { %v2238_v5 = vpack.c.bf16 %v2234_v48, %v2232_v23 }
 0xeb6   :  { %3622 = vmatmul.msk.bf16.gmra.mxu0 %vm390_vm0, %v2238_v5 }
 0xebb   :  { %v2356_v27 = vpop.f32.mrf.mxu3 }
 0xebc   :  { %2603 = vrot.lane.b32.xlu0 %v4671_v35, %s4294_s5  ;;  %v2367_v29 = vsel %vm441_vm1, %v2356_v27, -inf }
 0xebd   :  { %2368 = vmax.xlane.f32.xlu1 %v2367_v29 }
 0xec3   :  { %v2358_v18 = vpop.f32.mrf.mxu3 }
 0xec4   :  { %v2370_v41 = vsel %vm441_vm1, %v2358_v18, -inf }
 0xec5   :  { %2371 = vmax.xlane.f32.xlu2 %v2370_v41 }
 0xecd   :  { %2551 = vmax.xlane.f32.xlu2 %v2550_v25 }
 0xf1b   :  { %v2555_v42 = vpop.xlane.xlu0 %2554 }
 0xf1c   :  { %v2563_v45 = vsub.f32 %v2523_v53, %v2555_v42  ;;  %v3883_v42 = vld [vmem:[#allocation7 + $0x70] sm:$0xff] }
 0xf1e   :  { %v2568_v51 = vmul.f32 1.442695, %v2563_v45 }
 0xf24   :  { %v2429_v31 = vpop.f32.mrf.mxu2 }
 0xf2c   :  { %v2431_v15 = vpop.f32.mrf.mxu2 }
 0xf2d   :  { %v2459_v8 = vpack.c.bf16 %v2431_v15, %v2429_v31 }
 0xf2f   :  { %3645 = vmatmul.msk.bf16.vlgmr.msrb.gmra.mxu0 %vm390_vm0, %v2459_v8 }
 0xf30   :  { %v2369_v35 = vpop.xlane.xlu1 %2368 }
 0xf31   :  { %v2375_v32 = vsub.f32 %v2356_v27, %v2369_v35 }
 0xf33   :  { %v2381_v3 = vmul.f32 1.442695, %v2375_v32 }
 0xf34   :  { %v2545_v63 = vpop.f32.mrf.mxu2 }
 0xf35   :  { %4057 = vpow2.f32 %v2381_v3  ;;  %v2556_v50 = vsel %vm441_vm1, %v2545_v63, -inf }
 0xf38   :  { %v2372_v33 = vpop.xlane.xlu2 %2371 }
 0xf39   :  { %v2376_v10 = vsub.f32 %v2358_v18, %v2372_v33  ;;  %v2604_v18 = vpop.permute.xlu0 %2603 }
 0xf3b   :  { %v4058_v20 = vpop.eup %4057  ;;  %v2383_v26 = vmul.f32 1.442695, %v2376_v10 }
 0xf3c   :  { %v2391_v21 = vsel %vm441_vm1, %v4058_v20, 0.0  ;;  %v2547_v52 = vpop.f32.mrf.mxu2 }
 0xf3d   :  { %4059 = vpow2.f32 %v2383_v26  ;;  %2392 = vadd.xlane.f32.xlu2 %v2391_v21  ;;  %v2559_v56 = vsel %vm441_vm1, %v2547_v52, -inf  ;;  %v3884_v26 = vld [vmem:[#allocation7 + $0x78] sm:$0xff] }
 0xf3e   :  { %2674 = vmatpush.bf16.msrb.mxu2 %v3884_v26 }
 0xf40   :  { %v2552_v46 = vpop.xlane.xlu2 %2551 }
 0xf41   :  { %v2562_v11 = vsub.f32 %v2521_v43, %v2552_v46 }
 0xf42   :  { %2675 = vmatpush.bf16.msrb.mxu2 %v3883_v42 }
 0xf43   :  { %v4060_v14 = vpop.eup %4059  ;;  %v2566_v12 = vmul.f32 1.442695, %v2562_v11 }
 0xf44   :  { %v2394_v62 = vsel %vm441_vm1, %v4060_v14, 0.0 }
 0xf45   :  { %4061 = vpow2.f32 %v2566_v12  ;;  %2557 = vmax.xlane.f32.xlu2 %v2556_v50  ;;  %2395 = vadd.xlane.f32.xlu1 %v2394_v62 }
 0xf46   :  { %4063 = vpow2.f32 %v2568_v51 }
 0xf4b   :  { %v4062_v55 = vpop.eup %4061 }
 0xf4c   :  { %v2574_v57 = vsel %vm441_vm1, %v4062_v55, 0.0  ;;  %v4064_v39 = vpop.eup %4063 }
 0xf4d   :  { %2560 = vmax.xlane.f32.xlu2 %v2559_v56  ;;  %2575 = vadd.xlane.f32.xlu1 %v2574_v57  ;;  %v2577_v38 = vsel %vm441_vm1, %v4064_v39, 0.0 }
 0xf55   :  { %2578 = vadd.xlane.f32.xlu1 %v2577_v38 }
 0xf65   :  { %2439 = vrot.lane.b32.xlu2 %v4680_v61, %s4287_s18 }
 0xfb0   :  { %v2393_v58 = vpop.xlane.xlu2 %2392 }
 0xfb1   :  { %4065 = vrcp.f32 %v2393_v58  ;;  %v2266_v58 = vpop.f32.mrf.mxu0 }
 0xfb7   :  { %v4066_v16 = vpop.eup %4065 }
 0xfb8   :  { %v2396_v37 = vpop.xlane.xlu1 %2395  ;;  %v2558_v0 = vpop.xlane.xlu2 %2557  ;;  %v2403_v17 = vmul.f32 %v4066_v16, %v4058_v20 }
 0xfb9   :  { %4067 = vrcp.f32 %v2396_v37  ;;  %v2564_v1 = vsub.f32 %v2545_v63, %v2558_v0  ;;  %v2268_v37 = vpop.f32.mrf.mxu0 }
 0xfba   :  { %v2407_v23 = vpack.c.bf16 %v2403_v17, %v2403_v17 }
 0xfbb   :  { %v2570_v47 = vmul.f32 1.442695, %v2564_v1 }
 0xfbc   :  { %v2436_v5 = vunpack.c.l.b16 %v2407_v23  ;;  %v2306_v23 = vadd.f32 %v4765_v59, %v2268_v37  ;;  %v3893_v37 = vld [vmem:[#allocation8 + $0xc4] sm:$0xf] }
 0xfbd   :  { %4069 = vpow2.f32 %v2570_v47 }
 0xfbf   :  { %v4068_v44 = vpop.eup %4067 }
 0xfc0   :  { %v2404_v19 = vmul.f32 %v4068_v44, %v4060_v14  ;;  %v2576_v13 = vpop.xlane.xlu1 %2575  ;;  %v2561_v34 = vpop.xlane.xlu2 %2560 }
 0xfc1   :  { %v2565_v43 = vsub.f32 %v2547_v52, %v2561_v34  ;;  %v2271_v1 = vpop.f32.mrf.mxu0 }
 0xfc2   :  { %v2408_v6 = vpack.c.bf16 %v2404_v19, %v2404_v19  ;;  %v2304_v19 = vadd.f32 %v4763_v28, %v2266_v58  ;;  %v3894_v58 = vld [vmem:[#allocation8 + $0xc4] sm:$0xf0] }
 0xfc3   :  { %v4070_v53 = vpop.eup %4069  ;;  %v2572_v54 = vmul.f32 1.442695, %v2565_v43 }
 0xfc4   :  { %v2580_v24 = vsel %vm441_vm1, %v4070_v53, 0.0  ;;  %v2437_v48 = vunpack.c.l.b16 %v2408_v6  ;;  %v2695_v6 = vperm.slane %v4662_v7, 1 }
 0xfc5   :  { %4071 = vpow2.f32 %v2572_v54  ;;  %2581 = vadd.xlane.f32.xlu1 %v2580_v24 }
 0xfc6   :  { %4073 = vrcp.f32 %v2576_v13  ;;  %v2438_v41 = vpack.c.b16 %v2437_v48, %v2436_v5 }
 0xfc8   :  { %v2579_v27 = vpop.xlane.xlu1 %2578  ;;  %v2440_v29 = vpop.permute.xlu2 %2439 }
 0xfc9   :  { %4075 = vrcp.f32 %v2579_v27  ;;  %2452 = vmatpush.bf16.msrb.mxu3 %v2440_v29  ;;  %v2273_v44 = vpop.f32.mrf.mxu0 }
 0xfca   :  { %v2311_v59 = vadd.f32 %v4769_v9, %v2273_v44  ;;  %v3892_v44 = vld [vmem:[#allocation8 + $0xb4] sm:$0xf0] }
 0xfcb   :  { %v4072_v25 = vpop.eup %4071 }
 0xfcc   :  { %3636 = vmatmul.msk.bf16.vlgmr.msrb.gmra.mxu3 %vm441_vm1, %v2438_v41  ;;  %v2583_v60 = vsel %vm441_vm1, %v4072_v25, 0.0  ;;  %v4074_v30 = vpop.eup %4073  ;;  %v2309_v41 = vadd.f32 %v4767_v49, %v2271_v1  ;;  %v3697_v1 = vld [vmem:[#allocation8 + $0xc8] sm:$0xf0] }
 0xfcd   :  { %2616 = vmatpush.bf16.msra.mxu3 %v2604_v18  ;;  %2584 = vadd.xlane.f32.xlu2 %v2583_v60  ;;  %v2590_v15 = vmul.f32 %v4074_v30, %v4062_v55 }
 0xfcf   :  { %v4076_v31 = vpop.eup %4075  ;;  %v2594_v32 = vpack.c.bf16 %v2590_v15, %v2590_v15 }
 0xfd0   :  { %v2591_v8 = vmul.f32 %v4076_v31, %v4064_v39 }
 0xfd1   :  { %v2600_v33 = vunpack.c.l.b16 %v2594_v32  ;;  %v2488_v17 = vpop.f32.mrf.mxu0 }
 0xfd2   :  { %v2595_v35 = vpack.c.bf16 %v2591_v8, %v2591_v8  ;;  %v2498_v13 = vadd.f32 %v2488_v17, %v2304_v19  ;;  %v3891_v17 = vld [vmem:[#allocation8 + $0xb4] sm:$0xf] }
 0xfd4   :  { %v2601_v3 = vunpack.c.l.b16 %v2595_v35 }
 0xfd6   :  { %v2602_v10 = vpack.c.b16 %v2601_v3, %v2600_v33 }
 0xfd9   :  { %v2490_v54 = vpop.f32.mrf.mxu0 }
 0xfda   :  { %v2499_v48 = vadd.f32 %v2490_v54, %v2306_v23  ;;  %v3890_v54 = vld [vmem:[#allocation8 + $0xa4] sm:$0xf0]  ;;  %v3889_v23 = vld [vmem:[#allocation8 + $0xa4] sm:$0xf] }
 0xfdc   :  { %3649 = vmatmul.msk.bf16.vlgmr.msra.gmra.mxu3 %vm441_vm1, %v2602_v10 }
 0xfde   :  { %2628 = vrot.lane.b32.xlu1 %v4680_v61, %s4294_s5 }
0x1038   :  { %v2582_v20 = vpop.xlane.xlu1 %2581 }
0x1039   :  { %4077 = vrcp.f32 %v2582_v20 }
0x103f   :  { %v4078_v63 = vpop.eup %4077 }
0x1040   :  { %v2585_v21 = vpop.xlane.xlu2 %2584  ;;  %v2592_v11 = vmul.f32 %v4078_v63, %v4070_v53  ;;  %v3900_v63 = vld [vmem:[#allocation8 + $0xf4] sm:$0xf0] }
0x1041   :  { %4079 = vrcp.f32 %v2585_v21  ;;  %v3719_v21 = vld [vmem:[#allocation8 + $0xf0] sm:$0xf] }
0x1042   :  { %v2596_v12 = vpack.c.bf16 %v2592_v11, %v2592_v11  ;;  %v3720_v42 = vor.u32 %v3900_v63, %v3719_v21 }
0x1044   :  { %v2625_v51 = vunpack.c.l.b16 %v2596_v12  ;;  %2891 = vmatpush.bf16.msra.mxu0 %v3720_v42  ;;  %v3897_v12 = vld [vmem:[#allocation8 + $0xe4] sm:$0xf] }
0x1047   :  { %v4080_v46 = vpop.eup %4079 }
0x1048   :  { %v2593_v14 = vmul.f32 %v4080_v46, %v4072_v25  ;;  %v3721_v46 = vld [vmem:[#allocation8 + $0xf8] sm:$0xf0] }
0x104a   :  { %v2597_v45 = vpack.c.bf16 %v2593_v14, %v2593_v14  ;;  %v3711_v14 = vld [vmem:[#allocation8 + $0xe0] sm:$0xf] }
0x104c   :  { %v2626_v50 = vunpack.c.l.b16 %v2597_v45  ;;  %v3898_v45 = vld [vmem:[#allocation8 + $0xe4] sm:$0xf0] }
0x104e   :  { %v2627_v61 = vpack.c.b16 %v2626_v50, %v2625_v51  ;;  %v3712_v50 = vor.u32 %v3898_v45, %v3711_v14 }
0x104f   :  { %v2454_v62 = vpop.f32.mrf.mxu3 }
0x1050   :  { %v2629_v52 = vpop.permute.xlu1 %2628  ;;  %2892 = vmatpush.bf16.msra.mxu0 %v3712_v50 }
0x1051   :  { %2641 = vmatpush.bf16.msra.mxu1 %v2629_v52  ;;  %v3703_v52 = vld [vmem:[#allocation8 + $0xd0] sm:$0xf] }
0x1054   :  { %3650 = vmatmul.msk.bf16.vlgmr.msra.gmra.mxu1 %vm441_vm1, %v2627_v61  ;;  %v3896_v61 = vld [vmem:[#allocation8 + $0xd4] sm:$0xf0] }
0x1057   :  { %v2456_v55 = vpop.f32.mrf.mxu3 }
0x1058   :  { %v2460_v56 = vpack.c.bf16 %v2456_v55, %v2454_v62  ;;  %v3713_v62 = vld [vmem:[#allocation8 + $0xe8] sm:$0xf0]  ;;  %v3895_v55 = vld [vmem:[#allocation8 + $0xd4] sm:$0xf] }
0x1059   :  { %v3716_v51 = vor.u32 %v3897_v12, %v3713_v62 }
0x105a   :  { %3646 = vmatmul.msk.bf16.gmra.mxu0 %vm390_vm0, %v2460_v56  ;;  %v3704_v56 = vor.u32 %v3896_v61, %v3703_v52  ;;  %v4838_v61 = vld [vmem:[#allocation11 + $0x18] sm:$0xff] }
0x105c   :  { %2893 = vmatpush.bf16.msra.mxu0 %v3704_v56 }
0x105f   :  { %v2618_v57 = vpop.f32.mrf.mxu3 }
0x1067   :  { %v2620_v39 = vpop.f32.mrf.mxu3 }
0x1068   :  { %v2648_v38 = vpack.c.bf16 %v2620_v39, %v2618_v57  ;;  %v3705_v57 = vld [vmem:[#allocation8 + $0xd8] sm:$0xf0] }
0x1069   :  { %v3708_v39 = vor.u32 %v3895_v55, %v3705_v57  ;;  %v4841_v55 = vperm.slane %v4838_v61, 2 }
0x106a   :  { %3659 = vmatmul.msk.bf16.vlgmr.msrb.gmra.mxu2 %vm390_vm0, %v2648_v38  ;;  %v3695_v38 = vld [vmem:[#allocation8 + $0xc0] sm:$0xf] }
0x10d1   :  { %v2643_v0 = vpop.f32.mrf.mxu1 }
0x10d7   :  { %v2493_v28 = vpop.f32.mrf.mxu0 }
0x10d8   :  { %v2500_v25 = vadd.f32 %v2493_v28, %v2309_v41  ;;  %v3888_v28 = vld [vmem:[#allocation8 + $0x94] sm:$0xf0]  ;;  %v3887_v41 = vld [vmem:[#allocation8 + $0x94] sm:$0xf] }
0x10d9   :  { %v2645_v47 = vpop.f32.mrf.mxu1 }
0x10da   :  { %v2649_v16 = vpack.c.bf16 %v2645_v47, %v2643_v0  ;;  %v3696_v0 = vor.u32 %v3894_v58, %v3695_v38  ;;  %v3700_v47 = vor.u32 %v3893_v37, %v3697_v1  ;;  %v4845_v38 = vperm.slane %v4838_v61, 3 }
0x10dc   :  { %3660 = vmatmul.msk.bf16.gmra.mxu2 %vm390_vm0, %v2649_v16  ;;  %2894 = vmatpush.bf16.msra.mxu0 %v3696_v0  ;;  %v3687_v16 = vld [vmem:[#allocation8 + $0xb0] sm:$0xf] }
0x10dd   :  { %v3688_v19 = vor.u32 %v3892_v44, %v3687_v16  ;;  %v3908_v16 = vld [vmem:[#allocation10 + $0xb8] sm:$0xff] }
0x10de   :  { %3071 = vmatpush.bf16.msrb.mxu1 %v3908_v16 }
0x10df   :  { %v2495_v30 = vpop.f32.mrf.mxu0 }
0x10e0   :  { %v2501_v15 = vadd.f32 %v2495_v30, %v2311_v59  ;;  %2895 = vmatpush.bf16.msra.mxu0 %v3688_v19  ;;  %v3907_v19 = vld [vmem:[#allocation10 + $0xb0] sm:$0xff] }
0x10e2   :  { %3072 = vmatpush.bf16.msrb.mxu1 %v3907_v19 }
0x10ed   :  { %v2677_v34 = vpop.f32.mrf.mxu2 }
0x10ee   :  { %v2687_v43 = vadd.f32 %v2677_v34, %v2498_v13  ;;  %v3689_v13 = vld [vmem:[#allocation8 + $0xb8] sm:$0xf0] }
0x10f0   :  { %v2691_v53 = vadd.f32 %v2687_v43, %v4646_v40  ;;  %v3692_v43 = vor.u32 %v3891_v17, %v3689_v13  ;;  %v3916_v13 = vld [vmem:[#allocation10 + $0xf8] sm:$0xff] }
0x10f1   :  { %3090 = vmatpush.bf16.msra.mxu2 %v3916_v13 }
0x10f2   :  { %v2696_v24 = vadd.f32 %v2695_v6, %v2691_v53  ;;  %v3679_v53 = vld [vmem:[#allocation8 + $0xa0] sm:$0xf] }
0x10f4   :  { %2700 = vadd.xlane.f32.xlu0 %v2696_v24 }
0x10f5   :  { %v2679_v5 = vpop.f32.mrf.mxu2 }
0x10f6   :  { %v2688_v27 = vadd.f32 %v2679_v5, %v2499_v48  ;;  %v3680_v48 = vor.u32 %v3890_v54, %v3679_v53  ;;  %v3681_v5 = vld [vmem:[#allocation8 + $0xa8] sm:$0xf0]  ;;  %v3915_v53 = vld [vmem:[#allocation10 + $0xf0] sm:$0xff]  ;;  %v3905_v54 = vld [vmem:[#allocation10 + $0xa0] sm:$0xff] }
0x10f7   :  { %3091 = vmatpush.bf16.msra.mxu2 %v3915_v53 }
0x10f8   :  { %v2692_v29 = vadd.f32 %v2688_v27, %v4648_v36  ;;  %v3684_v27 = vor.u32 %v3889_v23, %v3681_v5  ;;  %2896 = vmatpush.bf16.msra.mxu0 %v3680_v48 }
0x10fa   :  { %v2697_v18 = vadd.f32 %v2695_v6, %v2692_v29 }
0x10fc   :  { %2702 = vadd.xlane.f32.xlu1 %v2697_v18 }
0x115f   :  { %v2682_v60 = vpop.f32.mrf.mxu2 }
0x1160   :  { %v2689_v7 = vadd.f32 %v2682_v60, %v2500_v25  ;;  %v3673_v60 = vld [vmem:[#allocation8 + $0x98] sm:$0xf0] }
0x1161   :  { %v3676_v30 = vor.u32 %v3887_v41, %v3673_v60  ;;  %v3913_v60 = vld [vmem:[#allocation10 + $0xe0] sm:$0xff] }
0x1162   :  { %v2693_v40 = vadd.f32 %v2689_v7, %v4656_v2 }
0x1164   :  { %v4807_v31 = vadd.f32 %v2695_v6, %v2693_v40 }
0x1166   :  { %2704 = vadd.xlane.f32.xlu2 %v4807_v31 }
0x1167   :  { %v2701_v8 = vpop.xlane.xlu0 %2700  ;;  %v2684_v36 = vpop.f32.mrf.mxu2 }
0x1168   :  { %v2708_v35 = vmul.f32 %v2701_v8, %v4546_v22  ;;  %v2690_v32 = vadd.f32 %v2684_v36, %v2501_v15  ;;  %v3663_v15 = vld [vmem:[#allocation8 + $0x80] sm:$0xf]  ;;  %v3886_v8 = vld [vmem:[#allocation8 + $0x84] sm:$0xf0]  ;;  %v3885_v36 = vld [vmem:[#allocation8 + $0x84] sm:$0xf] }
0x116a   :  { %v4811_v3 = vsub.f32 %v2696_v24, %v2708_v35  ;;  %v2694_v49 = vadd.f32 %v2690_v32, %v4658_v4  ;;  %v3899_v4 = vld [vmem:[#allocation8 + $0xf4] sm:$0xf] }
0x116b   :  { %v3724_v11 = vor.u32 %v3899_v4, %v3721_v46 }
0x116c   :  { %v2716_v2 = vmul.f32 %v4811_v3, %v4811_v3  ;;  %v4816_v33 = vadd.f32 %v2695_v6, %v2694_v49  ;;  %v3664_v49 = vor.u32 %v3886_v8, %v3663_v15 }
0x116d   :  { %2910 = vmatpush.bf16.msrb.mxu3 %v3724_v11 }
0x116e   :  { %2720 = vadd.xlane.f32.xlu0 %v2716_v2  ;;  %2706 = vadd.xlane.f32.xlu2 %v4816_v33  ;;  %v3665_v2 = vld [vmem:[#allocation8 + $0x88] sm:$0xf0] }
0x116f   :  { %v2703_v9 = vpop.xlane.xlu1 %2702 }
0x1170   :  { %v2709_v10 = vmul.f32 %v2703_v9, %v4546_v22  ;;  %v3668_v9 = vor.u32 %v3885_v36, %v3665_v2  ;;  %v3902_v36 = vld [vmem:[#allocation10 + $0x88] sm:$0xff]  ;;  %v3911_v2 = vld [vmem:[#allocation10 + $0xd0] sm:$0xff] }
0x1171   :  { %2911 = vmatpush.bf16.msrb.mxu3 %v3716_v51 }
0x1172   :  { %v4820_v20 = vsub.f32 %v2697_v18, %v2709_v10  ;;  %v3671_v18 = vld [vmem:[#allocation8 + $0x90] sm:$0xf] }
0x1173   :  { %v3672_v25 = vor.u32 %v3888_v28, %v3671_v18  ;;  %v3904_v28 = vld [vmem:[#allocation10 + $0x98] sm:$0xff] }
0x1174   :  { %v2717_v26 = vmul.f32 %v4820_v20, %v4820_v20 }
0x1175   :  { %2912 = vmatpush.bf16.msrb.mxu3 %v3708_v39  ;;  %2897 = vmatpush.bf16.msra.mxu0 %v3672_v25 }
0x1176   :  { %2722 = vadd.xlane.f32.xlu2 %v2717_v26 }
0x1179   :  { %2913 = vmatpush.bf16.msrb.mxu3 %v3700_v47  ;;  %2898 = vmatpush.bf16.msra.mxu0 %v3664_v49 }
0x117d   :  { %2914 = vmatpush.bf16.msrb.mxu3 %v3692_v43 }
0x1181   :  { %2915 = vmatpush.bf16.msrb.mxu3 %v3684_v27  ;;  %v3914_v27 = vld [vmem:[#allocation10 + $0xe8] sm:$0xff] }
0x1182   :  { %3092 = vmatpush.bf16.msra.mxu2 %v3914_v27 }
0x1185   :  { %2916 = vmatpush.bf16.msrb.mxu3 %v3676_v30  ;;  %v3903_v30 = vld [vmem:[#allocation10 + $0x90] sm:$0xff] }
0x1186   :  { %3093 = vmatpush.bf16.msra.mxu2 %v3913_v60 }
0x1189   :  { %2917 = vmatpush.bf16.msrb.mxu3 %v3668_v9 }
0x11d9   :  { %v2705_v34 = vpop.xlane.xlu2 %2704 }
0x11da   :  { %v2710_v6 = vmul.f32 %v2705_v34, %v4546_v22  ;;  %v3906_v34 = vld [vmem:[#allocation10 + $0xa8] sm:$0xff] }
0x11db   :  { %3073 = vmatpush.bf16.msrb.mxu1 %v3906_v34 }
0x11dc   :  { %v4826_v24 = vsub.f32 %v4807_v31, %v2710_v6 }
0x11de   :  { %v2718_v29 = vmul.f32 %v4826_v24, %v4826_v24 }
0x11df   :  { %3074 = vmatpush.bf16.msrb.mxu1 %v3905_v54 }
0x11e0   :  { %2724 = vadd.xlane.f32.xlu0 %v2718_v29 }
0x11e1   :  { %v2721_v7 = vpop.xlane.xlu0 %2720  ;;  %v2707_v40 = vpop.xlane.xlu2 %2706 }
0x11e2   :  { %v2728_v59 = vmul.f32 %v2721_v7, %v4546_v22  ;;  %v2711_v31 = vmul.f32 %v2707_v40, %v4546_v22 }
0x11e3   :  { %3075 = vmatpush.bf16.msrb.mxu1 %v3904_v28 }
0x11e4   :  { %v2732_v35 = vadd.f32 1e-05, %v2728_v59  ;;  %v4833_v32 = vsub.f32 %v4816_v33, %v2711_v31  ;;  %v3912_v31 = vld [vmem:[#allocation10 + $0xd8] sm:$0xff] }
0x11e5   :  { %3094 = vmatpush.bf16.msra.mxu2 %v3912_v31 }
0x11e6   :  { %4081 = vrsqrt.f32 %v2732_v35  ;;  %v2719_v10 = vmul.f32 %v4833_v32, %v4833_v32  ;;  %vm2742_vm1 = vweird.f32 %v2732_v35 }
0x11e7   :  { %3076 = vmatpush.bf16.msrb.mxu1 %v3903_v30 }
0x11e8   :  { %2726 = vadd.xlane.f32.xlu2 %v2719_v10  ;;  %v3901_v10 = vld [vmem:[#allocation10 + $0x80] sm:$0xff] }
0x11e9   :  { %v2723_v26 = vpop.xlane.xlu2 %2722  ;;  %3095 = vmatpush.bf16.msra.mxu2 %v3911_v2 }
0x11ea   :  { %v2729_v21 = vmul.f32 %v2723_v26, %v4546_v22 }
0x11eb   :  { %3077 = vmatpush.bf16.msrb.mxu1 %v3902_v36 }
0x11ec   :  { %v4082_v63 = vpop.eup %4081  ;;  %v2733_v4 = vadd.f32 1e-05, %v2729_v21 }
0x11ed   :  { %v2737_v42 = vmul.f32 %v4082_v63, %v2732_v35  ;;  %vm2743_vm0 = vweird.f32 %v4082_v63 }
0x11ee   :  { %4083 = vrsqrt.f32 %v2733_v4  ;;  %vm2744_vm13 = vmor %vm2742_vm1, %vm2743_vm0  ;;  %vm2752_vm15 = vweird.f32 %v2733_v4 }
0x11ef   :  { %v2738_v46 = vmul.f32 %v4082_v63, %v2737_v42  ;;  %3078 = vmatpush.bf16.msrb.mxu1 %v3901_v10 }
0x11f1   :  { %v2739_v33 = vmul.f32 0.5, %v2738_v46 }
0x11f3   :  { %v2740_v11 = vsub.f32 1.5, %v2739_v33  ;;  %v3909_v33 = vld [vmem:[#allocation10 + $0xc0] sm:$0xff] }
0x11f4   :  { %v4084_v14 = vpop.eup %4083 }
0x11f5   :  { %v2741_v45 = vmul.f32 %v4082_v63, %v2740_v11  ;;  %v2747_v12 = vmul.f32 %v4084_v14, %v2733_v4  ;;  %vm2753_vm14 = vweird.f32 %v4084_v14  ;;  %v3910_v4 = vld [vmem:[#allocation10 + $0xc8] sm:$0xff] }
0x11f6   :  { %vm2754_vm2 = vmor %vm2752_vm15, %vm2753_vm14  ;;  %3096 = vmatpush.bf16.msra.mxu2 %v3910_v4 }
0x11f7   :  { %v2748_v50 = vmul.f32 %v4084_v14, %v2747_v12  ;;  %v2745_v62 = vsel %vm2744_vm13, %v4082_v63, %v2741_v45 }
0x11f8   :  { %v2776_v56 = vmul.f32 %v2745_v62, %v4811_v3  ;;  %v4100_v62 = vld [vmem:[#allocation11 + $0x20] sm:$0xff] }
0x11f9   :  { %v2749_v51 = vmul.f32 0.5, %v2748_v50 }
0x11fa   :  { %v2781_v58 = vmul.f32 %v4841_v55, %v2776_v56  ;;  %3097 = vmatpush.bf16.msra.mxu2 %v3909_v33 }
0x11fb   :  { %v2750_v52 = vsub.f32 1.5, %v2749_v51  ;;  %v2810_v51 = vperm.slane %v4100_v62, 4 }
0x11fc   :  { %v4851_v1 = vadd.f32 %v4845_v38, %v2781_v58 }
0x11fd   :  { %v2751_v57 = vmul.f32 %v4084_v14, %v2750_v52 }
0x11ff   :  { %v2755_v39 = vsel %vm2754_vm2, %v4084_v14, %v2751_v57 }
0x1200   :  { %v2777_v37 = vmul.f32 %v2755_v39, %v4820_v20 }
0x1202   :  { %v2782_v0 = vmul.f32 %v4841_v55, %v2777_v37 }
0x1204   :  { %v4854_v47 = vadd.f32 %v4845_v38, %v2782_v0 }
0x1206   :  { %v2790_v3 = vpack.c.bf16 %v4854_v47, %v4851_v1 }
0x1208   :  { %2899 = vmatmul.bf16.vlgmr.msra.gmra.mxu0 %v2790_v3  ;;  %2918 = vmatmul.bf16.vlgmr.msrb.gmra.mxu3 %v2790_v3 }
0x1253   :  { %v2725_v44 = vpop.xlane.xlu0 %2724 }
0x1254   :  { %v2730_v17 = vmul.f32 %v2725_v44, %v4546_v22 }
0x1256   :  { %v2734_v20 = vadd.f32 1e-05, %v2730_v17 }
0x1258   :  { %4085 = vrsqrt.f32 %v2734_v20  ;;  %vm2762_vm4 = vweird.f32 %v2734_v20 }
0x125b   :  { %v2727_v43 = vpop.xlane.xlu2 %2726 }
0x125c   :  { %v2731_v6 = vmul.f32 %v2727_v43, %v4546_v22 }
0x125e   :  { %v4086_v23 = vpop.eup %4085  ;;  %v2735_v48 = vadd.f32 1e-05, %v2731_v6 }
0x125f   :  { %v2757_v5 = vmul.f32 %v4086_v23, %v2734_v20  ;;  %vm2763_vm3 = vweird.f32 %v4086_v23 }
0x1260   :  { %4087 = vrsqrt.f32 %v2735_v48  ;;  %vm2764_vm5 = vmor %vm2762_vm4, %vm2763_vm3  ;;  %vm2772_vm7 = vweird.f32 %v2735_v48 }
0x1261   :  { %v2758_v29 = vmul.f32 %v4086_v23, %v2757_v5 }
0x1263   :  { %v2759_v18 = vmul.f32 0.5, %v2758_v29  ;;  %v2974_v29 = vperm.slane %v4838_v61, 5 }
0x1265   :  { %v2760_v41 = vsub.f32 1.5, %v2759_v18 }
0x1266   :  { %v4088_v25 = vpop.eup %4087 }
0x1267   :  { %v2761_v7 = vmul.f32 %v4086_v23, %v2760_v41  ;;  %v2767_v40 = vmul.f32 %v4088_v25, %v2735_v48  ;;  %vm2773_vm6 = vweird.f32 %v4088_v25 }
0x1268   :  { %vm2774_vm8 = vmor %vm2772_vm7, %vm2773_vm6 }
0x1269   :  { %v2768_v59 = vmul.f32 %v4088_v25, %v2767_v40  ;;  %v2765_v15 = vsel %vm2764_vm5, %v4086_v23, %v2761_v7 }
0x126a   :  { %v2778_v49 = vmul.f32 %v2765_v15, %v4826_v24 }
0x126b   :  { %v2769_v8 = vmul.f32 0.5, %v2768_v59 }
0x126c   :  { %v2783_v63 = vmul.f32 %v4841_v55, %v2778_v49 }
0x126d   :  { %v2770_v35 = vsub.f32 1.5, %v2769_v8 }
0x126e   :  { %v2788_v46 = vadd.f32 %v4845_v38, %v2783_v63 }
0x126f   :  { %v2771_v9 = vmul.f32 %v4088_v25, %v2770_v35 }
0x1271   :  { %v2775_v26 = vsel %vm2774_vm8, %v4088_v25, %v2771_v9 }
0x1272   :  { %v2779_v21 = vmul.f32 %v2775_v26, %v4833_v32  ;;  %v2809_v32 = vperm.slane %v4838_v61, 4 }
0x1274   :  { %v2784_v42 = vmul.f32 %v4841_v55, %v2779_v21 }
0x1276   :  { %v4866_v24 = vadd.f32 %v4845_v38, %v2784_v42 }
0x1278   :  { %v2791_v11 = vpack.c.bf16 %v4866_v24, %v2788_v46 }
0x127a   :  { %2904 = vmatmul.bf16.gmra.mxu0 %v2791_v11  ;;  %2923 = vmatmul.bf16.gmra.mxu3 %v2791_v11 }
0x1285   :  { %v2900_v14 = vpop.f32.mrf.mxu0 }
0x1286   :  { %v2901_v12 = vadd.f32 %v2900_v14, %v2809_v32 }
0x1288   :  { %v2929_v55 = vmax.f32 %v2901_v12, 0.0 }
0x128b   :  { %v2919_v45 = vpop.f32.mrf.mxu3 }
0x128c   :  { %v2920_v57 = vadd.f32 %v2919_v45, %v2810_v51 }
0x128d   :  { %v2902_v50 = vpop.f32.mrf.mxu0 }
0x128e   :  { %v2903_v52 = vadd.f32 %v2902_v50, %v2809_v32  ;;  %v2930_v37 = vmax.f32 %v2920_v57, 0.0 }
0x1290   :  { %v2931_v56 = vmax.f32 %v2903_v52, 0.0 }
0x1292   :  { %v2937_v39 = vpack.c.bf16 %v2931_v56, %v2929_v55 }
0x1293   :  { %v2921_v38 = vpop.f32.mrf.mxu3 }
0x1294   :  { %v2922_v58 = vadd.f32 %v2921_v38, %v2810_v51  ;;  %3079 = vmatmul.bf16.vlgmr.msrb.gmra.mxu1 %v2937_v39 }
0x1296   :  { %v2932_v0 = vmax.f32 %v2922_v58, 0.0 }
0x1298   :  { %v2938_v3 = vpack.c.bf16 %v2932_v0, %v2930_v37 }
0x129a   :  { %3098 = vmatmul.bf16.vlgmr.msra.gmra.mxu2 %v2938_v3 }
0x12f7   :  { %v2905_v16 = vpop.f32.mrf.mxu0 }
0x12f8   :  { %v2906_v17 = vadd.f32 %v2905_v16, %v2809_v32 }
0x12fa   :  { %v2933_v13 = vmax.f32 %v2906_v17, 0.0 }
0x12fd   :  { %v2924_v44 = vpop.f32.mrf.mxu3 }
0x12fe   :  { %v2925_v43 = vadd.f32 %v2924_v44, %v2810_v51 }
0x12ff   :  { %v2907_v19 = vpop.f32.mrf.mxu0 }
0x1300   :  { %v2908_v20 = vadd.f32 %v2907_v19, %v2809_v32  ;;  %v2934_v23 = vmax.f32 %v2925_v43, 0.0  ;;  %v3193_v19 = vperm.slane %v4838_v61, 6  ;;  %v3198_v43 = vperm.slane %v4838_v61, 7 }
0x1302   :  { %v2935_v34 = vmax.f32 %v2908_v20, 0.0 }
0x1304   :  { %v2939_v6 = vpack.c.bf16 %v2935_v34, %v2933_v13 }
0x1305   :  { %v2926_v53 = vpop.f32.mrf.mxu3 }
0x1306   :  { %v2927_v54 = vadd.f32 %v2926_v53, %v2810_v51  ;;  %3084 = vmatmul.bf16.gmra.mxu1 %v2939_v6 }
0x1308   :  { %v2936_v48 = vmax.f32 %v2927_v54, 0.0 }
0x130a   :  { %v2940_v5 = vpack.c.bf16 %v2936_v48, %v2934_v23 }
0x130c   :  { %3103 = vmatmul.bf16.gmra.mxu2 %v2940_v5 }
0x1311   :  { %v3080_v27 = vpop.f32.mrf.mxu1 }
0x1312   :  { %v3081_v18 = vadd.f32 %v3080_v27, %v2974_v29 }
0x1319   :  { %v3082_v60 = vpop.f32.mrf.mxu1 }
0x131a   :  { %v3083_v7 = vadd.f32 %v3082_v60, %v2974_v29 }
0x131d   :  { %v3099_v28 = vpop.f32.mrf.mxu2 }
0x131e   :  { %v3100_v41 = vadd.f32 %v3099_v28, %v3081_v18 }
0x1320   :  { %v3109_v25 = vadd.f32 %v3100_v41, %v4851_v1 }
0x1322   :  { %3113 = vadd.xlane.f32.xlu0 %v3109_v25 }
0x1325   :  { %v3101_v40 = vpop.f32.mrf.mxu2 }
0x1326   :  { %v3102_v30 = vadd.f32 %v3101_v40, %v3083_v7 }
0x1328   :  { %v3110_v59 = vadd.f32 %v3102_v30, %v4854_v47 }
0x132a   :  { %3115 = vadd.xlane.f32.xlu1 %v3110_v59 }
0x1383   :  { %v3085_v31 = vpop.f32.mrf.mxu1 }
0x1384   :  { %v3086_v15 = vadd.f32 %v3085_v31, %v2974_v29 }
0x138b   :  { %v3087_v49 = vpop.f32.mrf.mxu1 }
0x138c   :  { %v3088_v9 = vadd.f32 %v3087_v49, %v2974_v29 }
0x138f   :  { %v3104_v8 = vpop.f32.mrf.mxu2 }
0x1390   :  { %v3105_v36 = vadd.f32 %v3104_v8, %v3086_v15 }
0x1392   :  { %v3111_v35 = vadd.f32 %v3105_v36, %v2788_v46 }
0x1394   :  { %3117 = vadd.xlane.f32.xlu2 %v3111_v35 }
0x1395   :  { %v3114_v2 = vpop.xlane.xlu0 %3113 }
0x1396   :  { %v3121_v10 = vmul.f32 %v3114_v2, %v4546_v22 }
0x1397   :  { %v3106_v1 = vpop.f32.mrf.mxu2 }
0x1398   :  { %v3125_v26 = vsub.f32 %v3109_v25, %v3121_v10  ;;  %v3107_v21 = vadd.f32 %v3106_v1, %v3088_v9 }
0x139a   :  { %v3129_v63 = vmul.f32 %v3125_v26, %v3125_v26  ;;  %v3112_v4 = vadd.f32 %v3107_v21, %v4866_v24 }
0x139c   :  { %3133 = vadd.xlane.f32.xlu1 %v3129_v63  ;;  %3119 = vadd.xlane.f32.xlu0 %v3112_v4 }
0x139d   :  { %v3116_v47 = vpop.xlane.xlu1 %3115 }
0x139e   :  { %v3122_v42 = vmul.f32 %v3116_v47, %v4546_v22 }
0x13a0   :  { %v3126_v33 = vsub.f32 %v3110_v59, %v3122_v42 }
0x13a2   :  { %v3130_v11 = vmul.f32 %v3126_v33, %v3126_v33 }
0x13a4   :  { %3135 = vadd.xlane.f32.xlu2 %v3130_v11 }
0x1407   :  { %v3118_v46 = vpop.xlane.xlu2 %3117 }
0x1408   :  { %v3123_v14 = vmul.f32 %v3118_v46, %v4546_v22 }
0x140a   :  { %v4877_v32 = vsub.f32 %v3111_v35, %v3123_v14 }
0x140c   :  { %v3131_v45 = vmul.f32 %v4877_v32, %v4877_v32 }
0x140e   :  { %3137 = vadd.xlane.f32.xlu0 %v3131_v45 }
0x140f   :  { %v3134_v12 = vpop.xlane.xlu1 %3133  ;;  %v3120_v50 = vpop.xlane.xlu0 %3119 }
0x1410   :  { %v3141_v24 = vmul.f32 %v3134_v12, %v4546_v22  ;;  %v3124_v62 = vmul.f32 %v3120_v50, %v4546_v22 }
0x1412   :  { %v3145_v51 = vadd.f32 1e-05, %v3141_v24  ;;  %v4883_v52 = vsub.f32 %v3112_v4, %v3124_v62 }
0x1414   :  { %4089 = vrsqrt.f32 %v3145_v51  ;;  %v3132_v55 = vmul.f32 %v4883_v52, %v4883_v52  ;;  %vm3155_vm10 = vweird.f32 %v3145_v51 }
0x1416   :  { %3139 = vadd.xlane.f32.xlu1 %v3132_v55 }
0x1417   :  { %v3136_v56 = vpop.xlane.xlu2 %3135 }
0x1418   :  { %v3142_v57 = vmul.f32 %v3136_v56, %v4546_v22 }
0x141a   :  { %v4090_v39 = vpop.eup %4089  ;;  %v3146_v38 = vadd.f32 1e-05, %v3142_v57 }
0x141b   :  { %v3150_v58 = vmul.f32 %v4090_v39, %v3145_v51  ;;  %vm3156_vm9 = vweird.f32 %v4090_v39 }
0x141c   :  { %4091 = vrsqrt.f32 %v3146_v38  ;;  %vm3157_vm11 = vmor %vm3155_vm10, %vm3156_vm9  ;;  %vm3165_vm0 = vweird.f32 %v3146_v38 }
0x141d   :  { %v3151_v37 = vmul.f32 %v4090_v39, %v3150_v58 }
0x141f   :  { %v3152_v0 = vmul.f32 0.5, %v3151_v37 }
0x1421   :  { %v3153_v3 = vsub.f32 1.5, %v3152_v0 }
0x1422   :  { %v4092_v16 = vpop.eup %4091 }
0x1423   :  { %v3154_v44 = vmul.f32 %v4090_v39, %v3153_v3  ;;  %v3160_v17 = vmul.f32 %v4092_v16, %v3146_v38  ;;  %vm3166_vm12 = vweird.f32 %v4092_v16 }
0x1424   :  { %vm3167_vm1 = vmor %vm3165_vm0, %vm3166_vm12 }
0x1425   :  { %v3158_v20 = vsel %vm3157_vm11, %v4090_v39, %v3154_v44  ;;  %v3161_v13 = vmul.f32 %v4092_v16, %v3160_v17 }
0x1426   :  { %v3189_v34 = vmul.f32 %v3158_v20, %v3125_v26 }
0x1427   :  { %v3162_v6 = vmul.f32 0.5, %v3161_v13 }
0x1428   :  { %v3194_v53 = vmul.f32 %v3193_v19, %v3189_v34 }
0x1429   :  { %v3163_v54 = vsub.f32 1.5, %v3162_v6 }
0x142a   :  { %v3199_v23 = vadd.f32 %v3198_v43, %v3194_v53 }
0x142b   :  { %v3164_v48 = vmul.f32 %v4092_v16, %v3163_v54 }
0x142c   :  { %3203 = vst [vmem:[#allocation13] sm:$0xff] %v3199_v23 }
0x142d   :  { %v3168_v5 = vsel %vm3167_vm1, %v4092_v16, %v3164_v48 }
0x142e   :  { %v3190_v27 = vmul.f32 %v3168_v5, %v3126_v33 }
0x1430   :  { %v3195_v29 = vmul.f32 %v3193_v19, %v3190_v27 }
0x1432   :  { %v3200_v18 = vadd.f32 %v3198_v43, %v3195_v29 }
0x1434   :  { %3204 = vst [vmem:[#allocation13 + $0x8] sm:$0xff] %v3200_v18 }
0x1481   :  { %v3138_v28 = vpop.xlane.xlu0 %3137 }
0x1482   :  { %v3143_v41 = vmul.f32 %v3138_v28, %v4546_v22 }
0x1484   :  { %v3147_v25 = vadd.f32 1e-05, %v3143_v41 }
0x1486   :  { %4093 = vrsqrt.f32 %v3147_v25  ;;  %vm3175_vm14 = vweird.f32 %v3147_v25 }
0x1489   :  { %v3140_v61 = vpop.xlane.xlu1 %3139 }
0x148a   :  { %v3144_v60 = vmul.f32 %v3140_v61, %v4546_v22 }
0x148c   :  { %v4094_v7 = vpop.eup %4093  ;;  %v3148_v40 = vadd.f32 1e-05, %v3144_v60 }
0x148d   :  { %v3170_v30 = vmul.f32 %v4094_v7, %v3147_v25  ;;  %vm3176_vm13 = vweird.f32 %v4094_v7 }
0x148e   :  { %4095 = vrsqrt.f32 %v3148_v40  ;;  %vm3177_vm15 = vmor %vm3175_vm14, %vm3176_vm13  ;;  %vm3185_vm3 = vweird.f32 %v3148_v40 }
0x148f   :  { %v3171_v59 = vmul.f32 %v4094_v7, %v3170_v30 }
0x1491   :  { %v3172_v31 = vmul.f32 0.5, %v3171_v59 }
0x1493   :  { %v3173_v15 = vsub.f32 1.5, %v3172_v31 }
0x1494   :  { %v4096_v8 = vpop.eup %4095 }
0x1495   :  { %v3174_v36 = vmul.f32 %v4094_v7, %v3173_v15  ;;  %v3180_v35 = vmul.f32 %v4096_v8, %v3148_v40  ;;  %vm3186_vm2 = vweird.f32 %v4096_v8 }
0x1496   :  { %vm3187_vm4 = vmor %vm3185_vm3, %vm3186_vm2 }
0x1497   :  { %v3178_v49 = vsel %vm3177_vm15, %v4094_v7, %v3174_v36  ;;  %v3181_v2 = vmul.f32 %v4096_v8, %v3180_v35 }
0x1498   :  { %v3191_v9 = vmul.f32 %v3178_v49, %v4877_v32 }
0x1499   :  { %v3182_v10 = vmul.f32 0.5, %v3181_v2 }
0x149a   :  { %v3196_v1 = vmul.f32 %v3193_v19, %v3191_v9 }
0x149b   :  { %v3183_v22 = vsub.f32 1.5, %v3182_v10 }
0x149c   :  { %v3201_v26 = vadd.f32 %v3198_v43, %v3196_v1 }
0x149d   :  { %v3184_v21 = vmul.f32 %v4096_v8, %v3183_v22 }
0x149e   :  { %3205 = vst [vmem:[#allocation13 + $0x10] sm:$0xff] %v3201_v26 }
0x149f   :  { %v3188_v63 = vsel %vm3187_vm4, %v4096_v8, %v3184_v21 }
0x14a0   :  { %v3192_v4 = vmul.f32 %v3188_v63, %v4883_v52 }
0x14a2   :  { %v3197_v47 = vmul.f32 %v3193_v19, %v3192_v4 }
0x14a4   :  { %v3202_v42 = vadd.f32 %v3198_v43, %v3197_v47 }
0x14a6   :  { %3206 = vst [vmem:[#allocation13 + $0x18] sm:$0xff] %v3202_v42 }
0x14a7   :  { %3219 = dma.vmem_to_hbm [thread:$0]  %s3212_s8, 512, %s3214_s11, [#allocation4], %s4283_s1, %s4283_s1, %s4284_s12  }
0x14a8   :  { %4277 = dma.done.wait [#allocation4], 512  }
0x14a9   :  { %4278 = vsyncadd [#allocation4], 4294966784 }
0x14aa   :  { %3224 = vsyncpa [#allocation3], 1 }
0x14ab   :  { %3225 = vsyncpa [#allocation6], 1 }
0x14ac   :  { %3226 = vsyncpa [#allocation9], 1 }
0x14ad   :  { %3227 = vsyncpa [#allocation12], 1 }
0x14ae   :  { %3228 = vsyncpa [#allocation4], 1 }

</bundles_post_ra>
